<compile_context>
chip_gen: v5e
topology: v5e:2x2
jax: 0.10.0
libtpu: 0.0.40
codegen_flags: <defaults>
</compile_context>

<pallas_src>
import functools

import jax
import jax.numpy as jnp
from jax.experimental import pallas as pl
from jax.experimental.pallas import tpu as pltpu


def _round_up(x, m):
    return ((x + m - 1) // m) * m


def _audio_mlp_kernel(x_ref,
                      w1_ref, b1_ref,
                      w2_ref, b2_ref,
                      w3_ref, b3_ref,
                      w4_ref, b4_ref,
                      o_ref):
    """One (tm, in_dim) batch tile through the whole MLP chain.

    x arrives f32 and is cast to bf16 in-kernel; all matmuls run on the bf16
    MXU path with f32 accumulation; ReLU'd activations are re-cast to bf16.
    The final layer is computed/stored in 256-lane N-chunks to keep the live
    f32 accumulator small at large tm.
    """
    x = x_ref[...].astype(jnp.bfloat16)                              # (tm, 1280) bf16

    h1 = jnp.dot(x, w1_ref[...], preferred_element_type=jnp.float32) + b1_ref[...]
    h1 = jnp.maximum(h1, 0.0).astype(jnp.bfloat16)                   # (tm, 128)

    h2 = jnp.dot(h1, w2_ref[...], preferred_element_type=jnp.float32) + b2_ref[...]
    h2 = jnp.maximum(h2, 0.0).astype(jnp.bfloat16)                   # (tm, 256)

    h3 = jnp.dot(h2, w3_ref[...], preferred_element_type=jnp.float32) + b3_ref[...]
    h3 = jnp.maximum(h3, 0.0).astype(jnp.bfloat16)                   # (tm, 512)

    # fc4 streamed in N-chunks: keeps the f32 accumulator <= ~64 vregs and
    # the stores lane-dense (chunk is a multiple of 128 when out_dim is).
    n_out = w4_ref.shape[1]
    nc = 256 if n_out % 256 == 0 else n_out
    for n0 in range(0, n_out, nc):
        y = jnp.dot(h3, w4_ref[:, n0:n0 + nc],
                    preferred_element_type=jnp.float32) + b4_ref[:, n0:n0 + nc]
        o_ref[:, n0:n0 + nc] = y.astype(o_ref.dtype)


@functools.partial(jax.jit, static_argnames=("block_m", "out_dtype"))
def audio_model_forward(x, params, *, block_m=256, out_dtype=jnp.bfloat16):
    """x: [B, input_dim] float32. params: bf16 [in,out] weights, f32 (1,out) biases.

    block_m: max batch-tile. 256 is a good default on v5e/v6e/v7x
    (~6 MiB total VMEM at tm=256, inside v5e's 16 MiB default scoped limit);
    512 is fine on v6e/v7x if vmem_limit_bytes is raised.
    """
    B, in_dim = x.shape
    out_dim = params["w4"].shape[1]

    # Batch tile: multiple of 16 (bf16 packs (16,128) per vreg).  If the
    # whole batch fits in one block, split it in two when big enough so both
    # v7x TensorCores get work along the "parallel" batch axis.
    tm_full = _round_up(B, 16)
    if tm_full <= block_m:
        if B > 16 and tm_full >= 32:
            tm = _round_up(pl.cdiv(B, 2), 16)
        else:
            tm = tm_full
    else:
        tm = block_m
    grid = (pl.cdiv(B, tm),)   # partial last block handled by Pallas (no pad)

    def x_map(i):
        return (i, 0)

    def const_map(i):
        return (0, 0)

    w_specs = []
    for wname, bname in (("w1", "b1"), ("w2", "b2"), ("w3", "b3"), ("w4", "b4")):
        # Full-array blocks, constant index, single-buffered -> weights stay
        # VMEM-resident across grid steps with no double-buffer copy.
        w_specs.append(pl.BlockSpec(params[wname].shape, const_map,
                                    pipeline_mode=pl.Buffered(1)))
        w_specs.append(pl.BlockSpec(params[bname].shape, const_map,
                                    pipeline_mode=pl.Buffered(1)))

    flops = 2 * B * (in_dim * 128 + 128 * 256 + 256 * 512 + 512 * out_dim)
    weight_bytes = sum(int(params[k].size) * params[k].dtype.itemsize for k in params)
    bytes_accessed = (weight_bytes
                      + int(x.size) * x.dtype.itemsize
                      + B * out_dim * jnp.dtype(out_dtype).itemsize)
    cost = pl.CostEstimate(flops=flops, transcendentals=0,
                           bytes_accessed=bytes_accessed)

    out = pl.pallas_call(
        _audio_mlp_kernel,
        out_shape=jax.ShapeDtypeStruct((B, out_dim), out_dtype),
        grid=grid,
        in_specs=[pl.BlockSpec((tm, in_dim), x_map)] + w_specs,
        out_specs=pl.BlockSpec((tm, out_dim), x_map),
        compiler_params=pltpu.CompilerParams(
            dimension_semantics=("parallel",)),   # batch tiles shard across v7x's 2 TCs
        cost_estimate=cost,
    )(x,
      params["w1"], params["b1"],
      params["w2"], params["b2"],
      params["w3"], params["b3"],
      params["w4"], params["b4"])

    return out


def init_params(key, input_dim=2 * 128 * 5, output_dim=1280):
    """Deterministic synthetic parameters.

    Weights stored as [in, out] (== PyTorch weight.T) in bfloat16; biases kept
    float32 (1, out) — they are added to the f32 MXU accumulator.
    """
    dims = [
        ("w1", "b1", input_dim, 128),
        ("w2", "b2", 128, 256),
        ("w3", "b3", 256, 512),
        ("w4", "b4", 512, output_dim),
    ]
    params = {}
    for wname, bname, d_in, d_out in dims:
        key, kw, kb = jax.random.split(key, 3)
        bound = 1.0 / jnp.sqrt(jnp.float32(d_in))
        w = jax.random.uniform(kw, (d_in, d_out), jnp.float32,
                               minval=-bound, maxval=bound)
        b = jax.random.uniform(kb, (1, d_out), jnp.float32,
                               minval=-bound, maxval=bound)
        params[wname] = w.astype(jnp.bfloat16)
        params[bname] = b
    return params


def reference_forward(x, params):
    """Plain-JAX reference mimicking the kernel numerics (bf16 inputs, f32 acc)."""
    def layer(h, w, b, relu):
        h = h.astype(jnp.bfloat16)
        y = jnp.dot(h.astype(jnp.float32), w.astype(jnp.float32)) + b
        if relu:
            y = jnp.maximum(y, 0.0)
        return y

    h = layer(x, params["w1"], params["b1"], True)
    h = layer(h, params["w2"], params["b2"], True)
    h = layer(h, params["w3"], params["b3"], True)
    return layer(h, params["w4"], params["b4"], False)


if __name__ == "__main__":
    key = jax.random.PRNGKey(0)
    key, kx, kp = jax.random.split(key, 3)

    B = 2
    INPUT_DIM = 2 * 128 * 5   # 1280, module default
    OUTPUT_DIM = 1280

    params = init_params(kp, INPUT_DIM, OUTPUT_DIM)
    x = jax.random.normal(kx, (B, INPUT_DIM), jnp.float32)

    y = audio_model_forward(x, params)
    y = jax.block_until_ready(y)

    y_ref = reference_forward(x, params)
    assert y.shape == (B, OUTPUT_DIM)
    # bf16 output -> slightly looser tolerance vs the f32 reference.
    assert jnp.allclose(y.astype(jnp.float32), y_ref, atol=2e-2, rtol=2e-2), (
        float(jnp.max(jnp.abs(y.astype(jnp.float32) - y_ref))))

    print("KERNEL_OK")
</pallas_src>

<mosaic_0001>
module attributes {stable_mosaic.version = 11 : i64} {
  func.func @_audio_mlp_kernel(%arg0: i32, %arg1: memref<16x1280xf32, #tpu.memory_space<vmem>>, %arg2: memref<1280x128xbf16, #tpu.memory_space<vmem>>, %arg3: memref<1x128xf32, #tpu.memory_space<vmem>>, %arg4: memref<128x256xbf16, #tpu.memory_space<vmem>>, %arg5: memref<1x256xf32, #tpu.memory_space<vmem>>, %arg6: memref<256x512xbf16, #tpu.memory_space<vmem>>, %arg7: memref<1x512xf32, #tpu.memory_space<vmem>>, %arg8: memref<512x1280xbf16, #tpu.memory_space<vmem>>, %arg9: memref<1x1280xf32, #tpu.memory_space<vmem>>, %arg10: memref<16x1280xbf16, #tpu.memory_space<vmem>>) attributes {dimension_semantics = [#tpu.dimension_semantics<parallel>], iteration_bounds = array<i64: 1>, scalar_prefetch = 0 : i64, scratch_operands = 0 : i64, tpu.core_type = #tpu.core_type<tc>, window_params = [{transform_indices = @transform_0, window_bounds = array<i64: 16, 1280>}, {pipeline_mode = #tpu.pipeline_mode<synchronous>, transform_indices = @transform_1, window_bounds = array<i64: 1280, 128>}, {pipeline_mode = #tpu.pipeline_mode<synchronous>, transform_indices = @transform_2, window_bounds = array<i64: 1, 128>}, {pipeline_mode = #tpu.pipeline_mode<synchronous>, transform_indices = @transform_3, window_bounds = array<i64: 128, 256>}, {pipeline_mode = #tpu.pipeline_mode<synchronous>, transform_indices = @transform_4, window_bounds = array<i64: 1, 256>}, {pipeline_mode = #tpu.pipeline_mode<synchronous>, transform_indices = @transform_5, window_bounds = array<i64: 256, 512>}, {pipeline_mode = #tpu.pipeline_mode<synchronous>, transform_indices = @transform_6, window_bounds = array<i64: 1, 512>}, {pipeline_mode = #tpu.pipeline_mode<synchronous>, transform_indices = @transform_7, window_bounds = array<i64: 512, 1280>}, {pipeline_mode = #tpu.pipeline_mode<synchronous>, transform_indices = @transform_8, window_bounds = array<i64: 1, 1280>}, {transform_indices = @transform_9, window_bounds = array<i64: 16, 1280>}]} {
    %c0 = arith.constant 0 : index
    %c0_0 = arith.constant 0 : index
    %0 = vector.load %arg1[%c0, %c0_0] : memref<16x1280xf32, #tpu.memory_space<vmem>>, vector<16x1280xf32>
    %1 = arith.truncf %0 : vector<16x1280xf32> to vector<16x1280xbf16>
    %c0_1 = arith.constant 0 : index
    %c0_2 = arith.constant 0 : index
    %2 = vector.load %arg2[%c0_1, %c0_2] : memref<1280x128xbf16, #tpu.memory_space<vmem>>, vector<1280x128xbf16>
    %cst = arith.constant dense<0.000000e+00> : vector<16x128xf32>
    %3 = tpu.matmul %1, %2, %cst {dimension_numbers = #tpu.dot_dimension_numbers<[1], [0], [0], [1], [0, 0, 1, 1], [], []>} : vector<16x1280xbf16>, vector<1280x128xbf16>, vector<16x128xf32> -> vector<16x128xf32>
    %c0_3 = arith.constant 0 : index
    %c0_4 = arith.constant 0 : index
    %4 = vector.load %arg3[%c0_3, %c0_4] : memref<1x128xf32, #tpu.memory_space<vmem>>, vector<1x128xf32>
    %5 = vector.broadcast %4 : vector<1x128xf32> to vector<16x128xf32>
    %6 = arith.addf %3, %5 : vector<16x128xf32>
    %cst_5 = arith.constant 0.000000e+00 : f32
    %7 = vector.broadcast %cst_5 : f32 to vector<16x128xf32>
    %8 = arith.maximumf %6, %7 : vector<16x128xf32>
    %9 = arith.truncf %8 : vector<16x128xf32> to vector<16x128xbf16>
    %c0_6 = arith.constant 0 : index
    %c0_7 = arith.constant 0 : index
    %10 = vector.load %arg4[%c0_6, %c0_7] : memref<128x256xbf16, #tpu.memory_space<vmem>>, vector<128x256xbf16>
    %cst_8 = arith.constant dense<0.000000e+00> : vector<16x256xf32>
    %11 = tpu.matmul %9, %10, %cst_8 {dimension_numbers = #tpu.dot_dimension_numbers<[1], [0], [0], [1], [0, 0, 1, 1], [], []>} : vector<16x128xbf16>, vector<128x256xbf16>, vector<16x256xf32> -> vector<16x256xf32>
    %c0_9 = arith.constant 0 : index
    %c0_10 = arith.constant 0 : index
    %12 = vector.load %arg5[%c0_9, %c0_10] : memref<1x256xf32, #tpu.memory_space<vmem>>, vector<1x256xf32>
    %13 = vector.broadcast %12 : vector<1x256xf32> to vector<16x256xf32>
    %14 = arith.addf %11, %13 : vector<16x256xf32>
    %cst_11 = arith.constant 0.000000e+00 : f32
    %15 = vector.broadcast %cst_11 : f32 to vector<16x256xf32>
    %16 = arith.maximumf %14, %15 : vector<16x256xf32>
    %17 = arith.truncf %16 : vector<16x256xf32> to vector<16x256xbf16>
    %c0_12 = arith.constant 0 : index
    %c0_13 = arith.constant 0 : index
    %18 = vector.load %arg6[%c0_12, %c0_13] : memref<256x512xbf16, #tpu.memory_space<vmem>>, vector<256x512xbf16>
    %cst_14 = arith.constant dense<0.000000e+00> : vector<16x512xf32>
    %19 = tpu.matmul %17, %18, %cst_14 {dimension_numbers = #tpu.dot_dimension_numbers<[1], [0], [0], [1], [0, 0, 1, 1], [], []>} : vector<16x256xbf16>, vector<256x512xbf16>, vector<16x512xf32> -> vector<16x512xf32>
    %c0_15 = arith.constant 0 : index
    %c0_16 = arith.constant 0 : index
    %20 = vector.load %arg7[%c0_15, %c0_16] : memref<1x512xf32, #tpu.memory_space<vmem>>, vector<1x512xf32>
    %21 = vector.broadcast %20 : vector<1x512xf32> to vector<16x512xf32>
    %22 = arith.addf %19, %21 : vector<16x512xf32>
    %cst_17 = arith.constant 0.000000e+00 : f32
    %23 = vector.broadcast %cst_17 : f32 to vector<16x512xf32>
    %24 = arith.maximumf %22, %23 : vector<16x512xf32>
    %25 = arith.truncf %24 : vector<16x512xf32> to vector<16x512xbf16>
    %c0_18 = arith.constant 0 : index
    %c0_19 = arith.constant 0 : index
    %26 = vector.load %arg8[%c0_18, %c0_19] : memref<512x1280xbf16, #tpu.memory_space<vmem>>, vector<512x256xbf16>
    %cst_20 = arith.constant dense<0.000000e+00> : vector<16x256xf32>
    %27 = tpu.matmul %25, %26, %cst_20 {dimension_numbers = #tpu.dot_dimension_numbers<[1], [0], [0], [1], [0, 0, 1, 1], [], []>} : vector<16x512xbf16>, vector<512x256xbf16>, vector<16x256xf32> -> vector<16x256xf32>
    %c0_21 = arith.constant 0 : index
    %c0_22 = arith.constant 0 : index
    %28 = vector.load %arg9[%c0_21, %c0_22] : memref<1x1280xf32, #tpu.memory_space<vmem>>, vector<1x256xf32>
    %29 = vector.broadcast %28 : vector<1x256xf32> to vector<16x256xf32>
    %30 = arith.addf %27, %29 : vector<16x256xf32>
    %31 = arith.truncf %30 : vector<16x256xf32> to vector<16x256xbf16>
    %c0_23 = arith.constant 0 : index
    %c0_24 = arith.constant 0 : index
    %32 = vector.load %arg10[%c0_23, %c0_24] : memref<16x1280xbf16, #tpu.memory_space<vmem>>, vector<16x256xbf16>
    tpu.vector_store %arg10[%c0_23, %c0_24], %31 {strides = array<i32>} : memref<16x1280xbf16, #tpu.memory_space<vmem>>, vector<16x256xbf16>,
    %c0_25 = arith.constant 0 : index
    %c256 = arith.constant 256 : index
    %33 = vector.load %arg8[%c0_25, %c256] : memref<512x1280xbf16, #tpu.memory_space<vmem>>, vector<512x256xbf16>
    %cst_26 = arith.constant dense<0.000000e+00> : vector<16x256xf32>
    %34 = tpu.matmul %25, %33, %cst_26 {dimension_numbers = #tpu.dot_dimension_numbers<[1], [0], [0], [1], [0, 0, 1, 1], [], []>} : vector<16x512xbf16>, vector<512x256xbf16>, vector<16x256xf32> -> vector<16x256xf32>
    %c0_27 = arith.constant 0 : index
    %c256_28 = arith.constant 256 : index
    %35 = vector.load %arg9[%c0_27, %c256_28] : memref<1x1280xf32, #tpu.memory_space<vmem>>, vector<1x256xf32>
    %36 = vector.broadcast %35 : vector<1x256xf32> to vector<16x256xf32>
    %37 = arith.addf %34, %36 : vector<16x256xf32>
    %38 = arith.truncf %37 : vector<16x256xf32> to vector<16x256xbf16>
    %c0_29 = arith.constant 0 : index
    %c256_30 = arith.constant 256 : index
    %39 = vector.load %arg10[%c0_29, %c256_30] : memref<16x1280xbf16, #tpu.memory_space<vmem>>, vector<16x256xbf16>
    tpu.vector_store %arg10[%c0_29, %c256_30], %38 {strides = array<i32>} : memref<16x1280xbf16, #tpu.memory_space<vmem>>, vector<16x256xbf16>,
    %c0_31 = arith.constant 0 : index
    %c512 = arith.constant 512 : index
    %40 = vector.load %arg8[%c0_31, %c512] : memref<512x1280xbf16, #tpu.memory_space<vmem>>, vector<512x256xbf16>
    %cst_32 = arith.constant dense<0.000000e+00> : vector<16x256xf32>
    %41 = tpu.matmul %25, %40, %cst_32 {dimension_numbers = #tpu.dot_dimension_numbers<[1], [0], [0], [1], [0, 0, 1, 1], [], []>} : vector<16x512xbf16>, vector<512x256xbf16>, vector<16x256xf32> -> vector<16x256xf32>
    %c0_33 = arith.constant 0 : index
    %c512_34 = arith.constant 512 : index
    %42 = vector.load %arg9[%c0_33, %c512_34] : memref<1x1280xf32, #tpu.memory_space<vmem>>, vector<1x256xf32>
    %43 = vector.broadcast %42 : vector<1x256xf32> to vector<16x256xf32>
    %44 = arith.addf %41, %43 : vector<16x256xf32>
    %45 = arith.truncf %44 : vector<16x256xf32> to vector<16x256xbf16>
    %c0_35 = arith.constant 0 : index
    %c512_36 = arith.constant 512 : index
    %46 = vector.load %arg10[%c0_35, %c512_36] : memref<16x1280xbf16, #tpu.memory_space<vmem>>, vector<16x256xbf16>
    tpu.vector_store %arg10[%c0_35, %c512_36], %45 {strides = array<i32>} : memref<16x1280xbf16, #tpu.memory_space<vmem>>, vector<16x256xbf16>,
    %c0_37 = arith.constant 0 : index
    %c768 = arith.constant 768 : index
    %47 = vector.load %arg8[%c0_37, %c768] : memref<512x1280xbf16, #tpu.memory_space<vmem>>, vector<512x256xbf16>
    %cst_38 = arith.constant dense<0.000000e+00> : vector<16x256xf32>
    %48 = tpu.matmul %25, %47, %cst_38 {dimension_numbers = #tpu.dot_dimension_numbers<[1], [0], [0], [1], [0, 0, 1, 1], [], []>} : vector<16x512xbf16>, vector<512x256xbf16>, vector<16x256xf32> -> vector<16x256xf32>
    %c0_39 = arith.constant 0 : index
    %c768_40 = arith.constant 768 : index
    %49 = vector.load %arg9[%c0_39, %c768_40] : memref<1x1280xf32, #tpu.memory_space<vmem>>, vector<1x256xf32>
    %50 = vector.broadcast %49 : vector<1x256xf32> to vector<16x256xf32>
    %51 = arith.addf %48, %50 : vector<16x256xf32>
    %52 = arith.truncf %51 : vector<16x256xf32> to vector<16x256xbf16>
    %c0_41 = arith.constant 0 : index
    %c768_42 = arith.constant 768 : index
    %53 = vector.load %arg10[%c0_41, %c768_42] : memref<16x1280xbf16, #tpu.memory_space<vmem>>, vector<16x256xbf16>
    tpu.vector_store %arg10[%c0_41, %c768_42], %52 {strides = array<i32>} : memref<16x1280xbf16, #tpu.memory_space<vmem>>, vector<16x256xbf16>,
    %c0_43 = arith.constant 0 : index
    %c1024 = arith.constant 1024 : index
    %54 = vector.load %arg8[%c0_43, %c1024] : memref<512x1280xbf16, #tpu.memory_space<vmem>>, vector<512x256xbf16>
    %cst_44 = arith.constant dense<0.000000e+00> : vector<16x256xf32>
    %55 = tpu.matmul %25, %54, %cst_44 {dimension_numbers = #tpu.dot_dimension_numbers<[1], [0], [0], [1], [0, 0, 1, 1], [], []>} : vector<16x512xbf16>, vector<512x256xbf16>, vector<16x256xf32> -> vector<16x256xf32>
    %c0_45 = arith.constant 0 : index
    %c1024_46 = arith.constant 1024 : index
    %56 = vector.load %arg9[%c0_45, %c1024_46] : memref<1x1280xf32, #tpu.memory_space<vmem>>, vector<1x256xf32>
    %57 = vector.broadcast %56 : vector<1x256xf32> to vector<16x256xf32>
    %58 = arith.addf %55, %57 : vector<16x256xf32>
    %59 = arith.truncf %58 : vector<16x256xf32> to vector<16x256xbf16>
    %c0_47 = arith.constant 0 : index
    %c1024_48 = arith.constant 1024 : index
    %60 = vector.load %arg10[%c0_47, %c1024_48] : memref<16x1280xbf16, #tpu.memory_space<vmem>>, vector<16x256xbf16>
    tpu.vector_store %arg10[%c0_47, %c1024_48], %59 {strides = array<i32>} : memref<16x1280xbf16, #tpu.memory_space<vmem>>, vector<16x256xbf16>,
    return
  }
  func.func @transform_0(%arg0: i32) -> (i32, i32) {
    %c0_i32 = arith.constant 0 : i32
    %c0_i32_0 = arith.constant 0 : i32
    return %arg0, %c0_i32 : i32, i32
  }
  func.func @transform_1(%arg0: i32) -> (i32, i32) {
    %c0_i32 = arith.constant 0 : i32
    %c0_i32_0 = arith.constant 0 : i32
    %c0_i32_1 = arith.constant 0 : i32
    return %c0_i32, %c0_i32_0 : i32, i32
  }
  func.func @transform_2(%arg0: i32) -> (i32, i32) {
    %c0_i32 = arith.constant 0 : i32
    %c0_i32_0 = arith.constant 0 : i32
    %c0_i32_1 = arith.constant 0 : i32
    return %c0_i32, %c0_i32_0 : i32, i32
  }
  func.func @transform_3(%arg0: i32) -> (i32, i32) {
    %c0_i32 = arith.constant 0 : i32
    %c0_i32_0 = arith.constant 0 : i32
    %c0_i32_1 = arith.constant 0 : i32
    return %c0_i32, %c0_i32_0 : i32, i32
  }
  func.func @transform_4(%arg0: i32) -> (i32, i32) {
    %c0_i32 = arith.constant 0 : i32
    %c0_i32_0 = arith.constant 0 : i32
    %c0_i32_1 = arith.constant 0 : i32
    return %c0_i32, %c0_i32_0 : i32, i32
  }
  func.func @transform_5(%arg0: i32) -> (i32, i32) {
    %c0_i32 = arith.constant 0 : i32
    %c0_i32_0 = arith.constant 0 : i32
    %c0_i32_1 = arith.constant 0 : i32
    return %c0_i32, %c0_i32_0 : i32, i32
  }
  func.func @transform_6(%arg0: i32) -> (i32, i32) {
    %c0_i32 = arith.constant 0 : i32
    %c0_i32_0 = arith.constant 0 : i32
    %c0_i32_1 = arith.constant 0 : i32
    return %c0_i32, %c0_i32_0 : i32, i32
  }
  func.func @transform_7(%arg0: i32) -> (i32, i32) {
    %c0_i32 = arith.constant 0 : i32
    %c0_i32_0 = arith.constant 0 : i32
    %c0_i32_1 = arith.constant 0 : i32
    return %c0_i32, %c0_i32_0 : i32, i32
  }
  func.func @transform_8(%arg0: i32) -> (i32, i32) {
    %c0_i32 = arith.constant 0 : i32
    %c0_i32_0 = arith.constant 0 : i32
    %c0_i32_1 = arith.constant 0 : i32
    return %c0_i32, %c0_i32_0 : i32, i32
  }
  func.func @transform_9(%arg0: i32) -> (i32, i32) {
    %c0_i32 = arith.constant 0 : i32
    %c0_i32_0 = arith.constant 0 : i32
    return %arg0, %c0_i32 : i32, i32
  }
}

</mosaic_0001>

<bundles_post_ra>
// kernel: audio_model_forward.1
= control target key start
LH: loop header
LB: loop body
LE: loop exit
PB: predicated region body
PF: predicated region fallthrough
CT: control target
= control target key end

     0   :  { %14 = vsyncpa [#allocation3], 0  ;;  %s7487_s0 = inlined_call_operand.hbm [shape: f32[2,1280], index: 0, kind: input, shape index: {}]   ;;  %s7488_s1 = inlined_call_operand.hbm [shape: bf16[1280,128], index: 1, kind: input, shape index: {}]   ;;  %s7489_s2 = inlined_call_operand.hbm [shape: f32[1,128], index: 2, kind: input, shape index: {}]   ;;  %s7490_s3 = inlined_call_operand.hbm [shape: bf16[128,256], index: 3, kind: input, shape index: {}]   ;;  %s7491_s4 = inlined_call_operand.hbm [shape: f32[1,256], index: 4, kind: input, shape index: {}]   ;;  %s7492_s5 = inlined_call_operand.hbm [shape: bf16[256,512], index: 5, kind: input, shape index: {}]   ;;  %s7493_s6 = inlined_call_operand.hbm [shape: f32[1,512], index: 6, kind: input, shape index: {}]   ;;  %s7494_s7 = inlined_call_operand.hbm [shape: bf16[512,1280], index: 7, kind: input, shape index: {}]   ;;  %s7495_s8 = inlined_call_operand.hbm [shape: f32[1,1280], index: 8, kind: input, shape index: {}]   ;;  %s7496_s9 = inlined_call_operand.hbm [shape: bf16[2,1280], index: 9, kind: output, shape index: {}]  }
   0x1   :  { %15 = vsyncpa [#allocation6], 0 }
   0x2   :  { %16 = vsyncpa [#allocation9], 0 }
   0x3   :  { %17 = vsyncpa [#allocation12], 0 }
   0x4   :  { %18 = vsyncpa [#allocation15], 0 }
   0x5   :  { %19 = vsyncpa [#allocation4], 0  ;;  %s37_s11 = sshll.u32 %s7488_s1, 4  ;;  %s38_s11 = int_to_ptr.hbm [resolvable:$true] %s37_s11 }
   0x6   :  { %23 = vsyncadd [#allocation3], 2240  ;;  %s7177_s12 = smov [#allocation5]   ;;  %s61_s16 = sshll.u32 %s7490_s3, 4  ;;  %s62_s16 = int_to_ptr.hbm [resolvable:$true] %s61_s16 }
   0x7   :  { %s39_s13 = sshll.u32 %s7177_s12, 4  ;;  %s7178_s17 = smov 64   ;;  %s40_s13 = int_to_ptr.vmem [resolvable:$true] %s39_s13 }
   0x8   :  { %s7179_s18 = smov 4   ;;  %s7180_s19 = smov [#allocation8]  }
   0x9   :  { %45 = dma.hbm_to_vmem [thread:$0]  %s38_s11, 10240, %s40_s13, [#allocation6], %s7178_s17, %s7178_s17, %s7179_s18  }
   0xa   :  { %s63_s20 = sshll.u32 %s7180_s19, 4  ;;  %s7181_s21 = smov 128   ;;  %s64_s20 = int_to_ptr.vmem [resolvable:$true] %s63_s20 }
   0xb   :  { %s7182_s22 = smov 8   ;;  %s85_s24 = sshll.u32 %s7492_s5, 4  ;;  %s86_s24 = int_to_ptr.hbm [resolvable:$true] %s85_s24 }
   0xc   :  { %69 = dma.hbm_to_vmem [thread:$0]  %s62_s16, 2048, %s64_s20, [#allocation9], %s7181_s21, %s7181_s21, %s7182_s22  }
   0xd   :  { %s7183_s25 = smov [#allocation11]   ;;  %s109_s28 = sshll.u32 %s7494_s7, 4  ;;  %s110_s28 = int_to_ptr.hbm [resolvable:$true] %s109_s28 }
   0xe   :  { %s87_s26 = sshll.u32 %s7183_s25, 4  ;;  %s7184_s29 = smov 256   ;;  %s88_s26 = int_to_ptr.vmem [resolvable:$true] %s87_s26 }
   0xf   :  { %s7185_s30 = smov 16   ;;  %s7186_s10 = smov [#allocation14]  }
  0x10   :  { %93 = dma.hbm_to_vmem [thread:$0]  %s86_s24, 8192, %s88_s26, [#allocation12], %s7184_s29, %s7184_s29, %s7185_s30  }
  0x11   :  { %s111_s11 = sshll.u32 %s7186_s10, 4  ;;  %s7187_s12 = smov 640   ;;  %s112_s11 = int_to_ptr.vmem [resolvable:$true] %s111_s11 }
  0x12   :  { %s7188_s13 = smov 40   ;;  %s24_s15 = sshll.u32 %s7487_s0, 4  ;;  %s25_s15 = int_to_ptr.hbm [resolvable:$true] %s24_s15 }
  0x13   :  { %117 = dma.hbm_to_vmem [thread:$0]  %s110_s28, 40960, %s112_s11, [#allocation15], %s7187_s12, %s7187_s12, %s7188_s13  }
  0x14   :  { %s7189_s16 = smov [#allocation2]   ;;  %s51_s19 = sshll.u32 %s7489_s2, 4  ;;  %s52_s19 = int_to_ptr.hbm [resolvable:$true] %s51_s19 }
  0x15   :  { %s26_s17 = sshll.u32 %s7189_s16, 4  ;;  %s7190_s20 = smov 320   ;;  %s27_s17 = int_to_ptr.vmem [resolvable:$true] %s26_s17 }
  0x16   :  { %s7191_s21 = smov 20   ;;  %s7192_s22 = smov [#allocation7]  }
  0x17   :  { %32 = dma.hbm_to_vmem [thread:$0]  %s25_s15, 320, %s27_s17, [#allocation3], %s7190_s20, %s7190_s20, %s7191_s21  }
  0x18   :  { %s53_s1 = sshll.u32 %s7192_s22, 4  ;;  %s75_s25 = sshll.u32 %s7491_s4, 4  ;;  %s54_s1 = int_to_ptr.vmem [resolvable:$true] %s53_s1  ;;  %s76_s25 = int_to_ptr.hbm [resolvable:$true] %s75_s25 }
  0x19   :  { %56 = dma.hbm_to_vmem [thread:$0]  %s52_s19, 16, %s54_s1, [#allocation6]  }
  0x1a   :  { %s99_s27 = sshll.u32 %s7493_s6, 4  ;;  %s7193_s3 = smov [#allocation10]   ;;  %s100_s27 = int_to_ptr.hbm [resolvable:$true] %s99_s27 }
  0x1b   :  { %s77_s28 = sshll.u32 %s7193_s3, 4  ;;  %s7194_s2 = smov [#allocation13]   ;;  %s78_s28 = int_to_ptr.vmem [resolvable:$true] %s77_s28 }
  0x1c   :  { %80 = dma.hbm_to_vmem [thread:$0]  %s76_s25, 32, %s78_s28, [#allocation9]  }
  0x1d   :  { %s101_s29 = sshll.u32 %s7194_s2, 4  ;;  %s123_s11 = sshll.u32 %s7495_s8, 4  ;;  %s102_s29 = int_to_ptr.vmem [resolvable:$true] %s101_s29  ;;  %s124_s11 = int_to_ptr.hbm [resolvable:$true] %s123_s11 }
  0x1e   :  { %104 = dma.hbm_to_vmem [thread:$0]  %s100_s27, 64, %s102_s29, [#allocation12]  }
  0x1f   :  { %s7195_s4 = smov [#allocation16]  }
  0x20   :  { %s125_s12 = sshll.u32 %s7195_s4, 4  ;;  %s126_s12 = int_to_ptr.vmem [resolvable:$true] %s125_s12 }
  0x21   :  { %128 = dma.hbm_to_vmem [thread:$0]  %s124_s11, 160, %s126_s12, [#allocation15]  }
  0x22   :  { %7165 = dma.done.wait [#allocation3], 2560  }
  0x23   :  { %7166 = vsyncadd [#allocation3], 4294964736 }
  0x24   :  { %7167 = dma.done.wait [#allocation6], 10256  }
  0x25   :  { %7168 = vsyncadd [#allocation6], 4294957040 }
  0x26   :  { %7169 = dma.done.wait [#allocation9], 2080  }
  0x27   :  { %7170 = vsyncadd [#allocation9], 4294965216 }
  0x28   :  { %7171 = dma.done.wait [#allocation12], 8256  }
  0x29   :  { %7172 = vsyncadd [#allocation12], 4294959040 }
  0x2a   :  { %7173 = dma.done.wait [#allocation15], 41120  }
  0x2b   :  { %7174 = vsyncadd [#allocation15], 4294926176  ;;  %v6429_v0 = vld [vmem:[#allocation5 + $0x38] sm:$0xff]  ;;  %v6428_v4 = vld [vmem:[#allocation5 + $0x30] sm:$0xff]  ;;  %vm2243_vm0 = vcmask 1040384   ;;  %vm2247_vm1 = vcmask 1041409  }
  0x2c   :  { %v6437_v1 = vld [vmem:[#allocation5 + $0x78] sm:$0xff]  ;;  %938 = vmatpush.bf16.msra.mxu0 %v6429_v0  ;;  %v6436_v5 = vld [vmem:[#allocation5 + $0x70] sm:$0xff]  ;;  %v6427_v8 = vld [vmem:[#allocation5 + $0x28] sm:$0xff]  ;;  %vm2251_vm2 = vcmask 1042434   ;;  %vm2255_vm3 = vcmask 1043459  }
  0x2d   :  { %v6445_v2 = vld [vmem:[#allocation5 + $0xb8] sm:$0xff]  ;;  %952 = vmatpush.bf16.msra.mxu1 %v6437_v1  ;;  %v6444_v6 = vld [vmem:[#allocation5 + $0xb0] sm:$0xff]  ;;  %v6435_v9 = vld [vmem:[#allocation5 + $0x68] sm:$0xff] }
  0x2e   :  { %v6453_v3 = vld [vmem:[#allocation5 + $0xf8] sm:$0xff]  ;;  %966 = vmatpush.bf16.msra.mxu2 %v6445_v2  ;;  %v6452_v7 = vld [vmem:[#allocation5 + $0xf0] sm:$0xff]  ;;  %v6443_v10 = vld [vmem:[#allocation5 + $0xa8] sm:$0xff] }
  0x2f   :  { %980 = vmatpush.bf16.msra.mxu3 %v6453_v3  ;;  %v6451_v11 = vld [vmem:[#allocation5 + $0xe8] sm:$0xff]  ;;  %v6426_v12 = vld [vmem:[#allocation5 + $0x20] sm:$0xff]  ;;  %v6425_v16 = vld [vmem:[#allocation5 + $0x18] sm:$0xff] }
  0x30   :  { %939 = vmatpush.bf16.msra.mxu0 %v6428_v4  ;;  %v6434_v13 = vld [vmem:[#allocation5 + $0x60] sm:$0xff]  ;;  %v6433_v17 = vld [vmem:[#allocation5 + $0x58] sm:$0xff]  ;;  %v6424_v22 = vld [vmem:[#allocation5 + $0x10] sm:$0xff] }
  0x31   :  { %953 = vmatpush.bf16.msra.mxu1 %v6436_v5  ;;  %v6442_v14 = vld [vmem:[#allocation5 + $0xa0] sm:$0xff]  ;;  %v6441_v18 = vld [vmem:[#allocation5 + $0x98] sm:$0xff]  ;;  %v171_v23 = vld [vmem:[#allocation2 + $0x28] sm:$0xff] }
  0x32   :  { %967 = vmatpush.bf16.msra.mxu2 %v6444_v6  ;;  %v6450_v15 = vld [vmem:[#allocation5 + $0xe0] sm:$0xff]  ;;  %v6449_v19 = vld [vmem:[#allocation5 + $0xd8] sm:$0xff]  ;;  %v6432_v24 = vld [vmem:[#allocation5 + $0x50] sm:$0xff]  ;;  %217 = vst [vmem:[#allocation1 + $0x2] ss:$4 sm:$0xff] %v171_v23 }
  0x33   :  { %981 = vmatpush.bf16.msra.mxu3 %v6452_v7  ;;  %v165_v20 = vld [vmem:[#allocation2] sm:$0xff]  ;;  %v168_v21 = vld [vmem:[#allocation2 + $0x14] sm:$0xff]  ;;  %v166_v25 = vld [vmem:[#allocation2 + $0x8] sm:$0xff] }
  0x34   :  { %940 = vmatpush.bf16.msra.mxu0 %v6427_v8  ;;  %213 = vst [vmem:[#allocation1] ss:$4 sm:$0xff] %v165_v20  ;;  %v174_v26 = vld [vmem:[#allocation2 + $0x3c] sm:$0xff]  ;;  %v6440_v27 = vld [vmem:[#allocation5 + $0x90] sm:$0xff]  ;;  %v175_v31 = vld [vmem:[#allocation2 + $0x44] sm:$0xff] }
  0x35   :  { %954 = vmatpush.bf16.msra.mxu1 %v6435_v9  ;;  %215 = vst [vmem:[#allocation1 + $0x1] ss:$4 sm:$0xff] %v168_v21  ;;  %v6448_v28 = vld [vmem:[#allocation5 + $0xd0] sm:$0xff]  ;;  %v169_v29 = vld [vmem:[#allocation2 + $0x1c] sm:$0xff]  ;;  %v6423_v32 = vld [vmem:[#allocation5 + $0x8] sm:$0xff] }
  0x36   :  { %968 = vmatpush.bf16.msra.mxu2 %v6443_v10  ;;  %v172_v30 = vld [vmem:[#allocation2 + $0x30] sm:$0xff]  ;;  %219 = vst [vmem:[#allocation1 + $0x3] ss:$4 sm:$0xff] %v174_v26  ;;  %v6431_v33 = vld [vmem:[#allocation5 + $0x48] sm:$0xff]  ;;  %v6422_v36 = vld [vmem:[#allocation5] sm:$0xff] }
  0x37   :  { %982 = vmatpush.bf16.msra.mxu3 %v6451_v11  ;;  %221 = vst [vmem:[#allocation1 + $0x20] ss:$4 sm:$0xff] %v166_v25  ;;  %v6439_v34 = vld [vmem:[#allocation5 + $0x88] sm:$0xff]  ;;  %v6430_v37 = vld [vmem:[#allocation5 + $0x40] sm:$0xff]  ;;  %v6461_v39 = vld [vmem:[#allocation5 + $0x138] sm:$0xff] }
  0x38   :  { %941 = vmatpush.bf16.msra.mxu0 %v6426_v12  ;;  %223 = vst [vmem:[#allocation1 + $0x21] ss:$4 sm:$0xff] %v169_v29  ;;  %v6447_v35 = vld [vmem:[#allocation5 + $0xc8] sm:$0xff]  ;;  %v6438_v38 = vld [vmem:[#allocation5 + $0x80] sm:$0xff]  ;;  %v6469_v40 = vld [vmem:[#allocation5 + $0x178] sm:$0xff] }
  0x39   :  { %955 = vmatpush.bf16.msra.mxu1 %v6434_v13  ;;  %225 = vst [vmem:[#allocation1 + $0x22] ss:$4 sm:$0xff] %v172_v30  ;;  %v6477_v41 = vld [vmem:[#allocation5 + $0x1b8] sm:$0xff]  ;;  %v167_v42 = vld [vmem:[#allocation2 + $0x10] sm:$0xf]  ;;  %v6446_v48 = vld [vmem:[#allocation5 + $0xc0] sm:$0xff] }
  0x3a   :  { %969 = vmatpush.bf16.msra.mxu2 %v6442_v14  ;;  %227 = vst [vmem:[#allocation1 + $0x23] ss:$4 sm:$0xff] %v175_v31  ;;  %v170_v43 = vld [vmem:[#allocation2 + $0x24] sm:$0xf]  ;;  %v6485_v49 = vld [vmem:[#allocation5 + $0x1f8] sm:$0xff]  ;;  %v6460_v50 = vld [vmem:[#allocation5 + $0x130] sm:$0xff] }
  0x3b   :  { %983 = vmatpush.bf16.msra.mxu3 %v6450_v15  ;;  %v6468_v51 = vld [vmem:[#allocation5 + $0x170] sm:$0xff]  ;;  %v180_v54 = vld [vmem:[#allocation2 + $0x64] sm:$0xff]  ;;  %v183_v55 = vld [vmem:[#allocation2 + $0x78] sm:$0xff] }
  0x3c   :  { %942 = vmatpush.bf16.msra.mxu0 %v6425_v16  ;;  %v6476_v52 = vld [vmem:[#allocation5 + $0x1b0] sm:$0xff]  ;;  %v173_v62 = vld [vmem:[#allocation2 + $0x38] sm:$0xf]  ;;  %v6459_v63 = vld [vmem:[#allocation5 + $0x128] sm:$0xff] }
  0x3d   :  { %956 = vmatpush.bf16.msra.mxu1 %v6433_v17  ;;  %v7276_v44 = vld.sshfl [vmem:[#allocation1] sm:$0xff pattern:$0x73625140]  ;;  %v7278_v45 = vld.sshfl [vmem:[#allocation1 + $0x10] sm:$0xff pattern:$0x73625140] }
  0x3e   :  { %970 = vmatpush.bf16.msra.mxu2 %v6441_v18  ;;  %v7280_v46 = vld.sshfl [vmem:[#allocation1 + $0x8] sm:$0xff pattern:$0x73625140]  ;;  %v7282_v47 = vld.sshfl [vmem:[#allocation1 + $0x18] sm:$0xff pattern:$0x73625140] }
  0x3f   :  { %984 = vmatpush.bf16.msra.mxu3 %v6449_v19  ;;  %236 = vst [vmem:[#allocation1] ss:$4 sm:$0xff] %v167_v42  ;;  %v177_v53 = vld [vmem:[#allocation2 + $0x50] sm:$0xff]  ;;  %v176_v0 = vld [vmem:[#allocation2 + $0x4c] sm:$0xf]  ;;  %v6458_v4 = vld [vmem:[#allocation5 + $0x120] sm:$0xff] }
  0x40   :  { %943 = vmatpush.bf16.msra.mxu0 %v6424_v22  ;;  %237 = vst [vmem:[#allocation1 + $0x1] ss:$4 sm:$0xff] %v170_v43  ;;  %v186_v60 = vld [vmem:[#allocation2 + $0x8c] sm:$0xff]  ;;  %v6466_v5 = vld [vmem:[#allocation5 + $0x160] sm:$0xff]  ;;  %v6457_v8 = vld [vmem:[#allocation5 + $0x118] sm:$0xff] }
  0x41   :  { %957 = vmatpush.bf16.msra.mxu1 %v6432_v24  ;;  %v7284_v56 = vld.sshfl [vmem:[#allocation1 + $0x20] sm:$0xff pattern:$0x73625140]  ;;  %v7286_v57 = vld.sshfl [vmem:[#allocation1 + $0x28] sm:$0xff pattern:$0x73625140] }
  0x42   :  { %971 = vmatpush.bf16.msra.mxu2 %v6440_v27  ;;  %v7288_v58 = vld.sshfl [vmem:[#allocation1 + $0x30] sm:$0xff pattern:$0x73625140]  ;;  %v7290_v59 = vld.sshfl [vmem:[#allocation1 + $0x38] sm:$0xff pattern:$0x73625140] }
  0x43   :  { %985 = vmatpush.bf16.msra.mxu3 %v6448_v28  ;;  %240 = vst [vmem:[#allocation1 + $0x20] ss:$4 sm:$0xff] %v177_v53  ;;  %v6484_v61 = vld [vmem:[#allocation5 + $0x1f0] sm:$0xff]  ;;  %v6467_v1 = vld [vmem:[#allocation5 + $0x168] sm:$0xff]  ;;  %v6474_v6 = vld [vmem:[#allocation5 + $0x1a0] sm:$0xff] }
  0x44   :  { %944 = vmatpush.bf16.msra.mxu0 %v6423_v32  ;;  %241 = vst [vmem:[#allocation1 + $0x21] ss:$4 sm:$0xff] %v180_v54  ;;  %v6475_v2 = vld [vmem:[#allocation5 + $0x1a8] sm:$0xff]  ;;  %v6482_v7 = vld [vmem:[#allocation5 + $0x1e0] sm:$0xff]  ;;  %v6465_v9 = vld [vmem:[#allocation5 + $0x158] sm:$0xff] }
  0x45   :  { %958 = vmatpush.bf16.msra.mxu1 %v6431_v33  ;;  %242 = vst [vmem:[#allocation1 + $0x22] ss:$4 sm:$0xff] %v183_v55  ;;  %v6483_v3 = vld [vmem:[#allocation5 + $0x1e8] sm:$0xff]  ;;  %v6473_v10 = vld [vmem:[#allocation5 + $0x198] sm:$0xff]  ;;  %v179_v11 = vld [vmem:[#allocation2 + $0x60] sm:$0xf] }
  0x46   :  { %972 = vmatpush.bf16.msra.mxu2 %v6439_v34  ;;  %243 = vst [vmem:[#allocation1 + $0x23] ss:$4 sm:$0xff] %v186_v60  ;;  %v182_v12 = vld [vmem:[#allocation2 + $0x74] sm:$0xf]  ;;  %v185_v13 = vld [vmem:[#allocation2 + $0x88] sm:$0xf] }
  0x47   :  { %986 = vmatpush.bf16.msra.mxu3 %v6447_v35  ;;  %238 = vst [vmem:[#allocation1 + $0x2] ss:$4 sm:$0xff] %v173_v62  ;;  %v188_v16 = vld [vmem:[#allocation2 + $0x9c] sm:$0xf]  ;;  %v6456_v27 = vld [vmem:[#allocation5 + $0x110] sm:$0xff]  ;;  %v184_v31 = vld [vmem:[#allocation2 + $0x80] sm:$0xff] }
  0x48   :  { %945 = vmatpush.bf16.msra.mxu0 %v6422_v36  ;;  %239 = vst [vmem:[#allocation1 + $0x3] ss:$4 sm:$0xff] %v176_v0  ;;  %v6481_v23 = vld [vmem:[#allocation5 + $0x1d8] sm:$0xff]  ;;  %v181_v28 = vld [vmem:[#allocation2 + $0x6c] sm:$0xff]  ;;  %v6478_v43 = vld [vmem:[#allocation5 + $0x1c0] sm:$0xff] }
  0x49   :  { %959 = vmatpush.bf16.msra.mxu1 %v6430_v37  ;;  %v178_v25 = vld [vmem:[#allocation2 + $0x58] sm:$0xff]  ;;  %v6464_v29 = vld [vmem:[#allocation5 + $0x150] sm:$0xff]  ;;  %v6455_v34 = vld [vmem:[#allocation5 + $0x108] sm:$0xff] }
  0x4a   :  { %973 = vmatpush.bf16.msra.mxu2 %v6438_v38  ;;  %v6472_v30 = vld [vmem:[#allocation5 + $0x190] sm:$0xff]  ;;  %v6463_v35 = vld [vmem:[#allocation5 + $0x148] sm:$0xff]  ;;  %v6454_v38 = vld [vmem:[#allocation5 + $0x100] sm:$0xff] }
  0x4b   :  { %987 = vmatpush.bf16.msra.mxu3 %v6446_v48  ;;  %v187_v32 = vld [vmem:[#allocation2 + $0x94] sm:$0xff]  ;;  %v6471_v36 = vld [vmem:[#allocation5 + $0x188] sm:$0xff]  ;;  %v6486_v0 = vld [vmem:[#allocation5 + $0x200] sm:$0xff] }
  0x4c   :  { %994 = vmatpush.bf16.msrb.mxu0 %v6461_v39  ;;  %v6480_v33 = vld [vmem:[#allocation5 + $0x1d0] sm:$0xff]  ;;  %v6479_v37 = vld [vmem:[#allocation5 + $0x1c8] sm:$0xff]  ;;  %v6462_v39 = vld [vmem:[#allocation5 + $0x140] sm:$0xff] }
  0x4d   :  { %1008 = vmatpush.bf16.msrb.mxu1 %v6469_v40  ;;  %v246_v14 = vld.sshfl [vmem:[#allocation1 + $0x20] sm:$0xff pattern:$0x73625140]  ;;  %v248_v15 = vld.sshfl [vmem:[#allocation1 + $0x30] sm:$0xff pattern:$0x73625140] }
  0x4e   :  { %1022 = vmatpush.bf16.msrb.mxu2 %v6477_v41  ;;  %v284_v17 = vpack.c.bf16 %v246_v14, %v7276_v44  ;;  %v286_v18 = vpack.c.bf16 %v248_v15, %v7278_v45  ;;  %v247_v19 = vld.sshfl [vmem:[#allocation1 + $0x28] sm:$0xff pattern:$0x73625140]  ;;  %v249_v20 = vld.sshfl [vmem:[#allocation1 + $0x38] sm:$0xff pattern:$0x73625140] }
  0x4f   :  { %1036 = vmatpush.bf16.msrb.mxu3 %v6485_v49  ;;  %v285_v21 = vpack.c.bf16 %v247_v19, %v7280_v46  ;;  %254 = vst [vmem:[#allocation1 + $0x20] ss:$4 sm:$0xff] %v179_v11  ;;  %v287_v22 = vpack.c.bf16 %v249_v20, %v7282_v47  ;;  %v7296_v24 = vld.sshfl [vmem:[#allocation1] sm:$0xff pattern:$0x73625140]  ;;  %v6470_v40 = vld [vmem:[#allocation5 + $0x180] sm:$0xff] }
  0x50   :  { %995 = vmatpush.bf16.msrb.mxu0 %v6460_v50  ;;  %255 = vst [vmem:[#allocation1 + $0x21] ss:$4 sm:$0xff] %v182_v12  ;;  %v7298_v26 = vld.sshfl [vmem:[#allocation1 + $0x8] sm:$0xff pattern:$0x73625140]  ;;  %974 = vmatmul.bf16.vlgmr.msra.gmra.mxu2 %v286_v18  ;;  %v6493_v41 = vld [vmem:[#allocation5 + $0x238] sm:$0xff] }
  0x51   :  { %1009 = vmatpush.bf16.msrb.mxu1 %v6468_v51  ;;  %946 = vmatmul.bf16.vlgmr.msra.gmra.mxu0 %v284_v17  ;;  %256 = vst [vmem:[#allocation1 + $0x22] ss:$4 sm:$0xff] %v185_v13  ;;  %v6501_v42 = vld [vmem:[#allocation5 + $0x278] sm:$0xff]  ;;  %v6500_v53 = vld [vmem:[#allocation5 + $0x270] sm:$0xff]  ;;  %v6491_v54 = vld [vmem:[#allocation5 + $0x228] sm:$0xff] }
  0x52   :  { %1023 = vmatpush.bf16.msrb.mxu2 %v6476_v52  ;;  %257 = vst [vmem:[#allocation1 + $0x23] ss:$4 sm:$0xff] %v188_v16  ;;  %960 = vmatmul.bf16.vlgmr.msra.gmra.mxu1 %v285_v21  ;;  %v6492_v52 = vld [vmem:[#allocation5 + $0x230] sm:$0xff]  ;;  %v6499_v55 = vld [vmem:[#allocation5 + $0x268] sm:$0xff]  ;;  %v6497_v60 = vld [vmem:[#allocation5 + $0x258] sm:$0xff] }
  0x53   :  { %1037 = vmatpush.bf16.msrb.mxu3 %v6484_v61  ;;  %250 = vst [vmem:[#allocation1] ss:$4 sm:$0xff] %v178_v25  ;;  %v6496_v61 = vld [vmem:[#allocation5 + $0x250] sm:$0xff]  ;;  %v6487_v62 = vld [vmem:[#allocation5 + $0x208] sm:$0xff]  ;;  %v4872_v12 = vld [vmem:[#allocation8 + $0x60] sm:$0xf] }
  0x54   :  { %996 = vmatpush.bf16.msrb.mxu0 %v6459_v63  ;;  %988 = vmatmul.bf16.vlgmr.msra.gmra.mxu3 %v287_v22  ;;  %251 = vst [vmem:[#allocation1 + $0x1] ss:$4 sm:$0xff] %v181_v28  ;;  %v6495_v63 = vld [vmem:[#allocation5 + $0x248] sm:$0xff]  ;;  %v4864_v17 = vld [vmem:[#allocation8 + $0x50] sm:$0xf] }
  0x55   :  { %1010 = vmatpush.bf16.msrb.mxu1 %v6467_v1  ;;  %252 = vst [vmem:[#allocation1 + $0x2] ss:$4 sm:$0xff] %v184_v31  ;;  %v6494_v1 = vld [vmem:[#allocation5 + $0x240] sm:$0xff]  ;;  %v6515_v13 = vld [vmem:[#allocation8 + $0x64] sm:$0xf0] }
  0x56   :  { %1024 = vmatpush.bf16.msrb.mxu2 %v6475_v2  ;;  %253 = vst [vmem:[#allocation1 + $0x3] ss:$4 sm:$0xff] %v187_v32  ;;  %v6514_v14 = vld [vmem:[#allocation8 + $0x64] sm:$0xf]  ;;  %v4873_v15 = vor.u32 %v6515_v13, %v4872_v12  ;;  %v4874_v16 = vld [vmem:[#allocation8 + $0x68] sm:$0xf0] }
  0x57   :  { %1038 = vmatpush.bf16.msrb.mxu3 %v6483_v3  ;;  %v6513_v18 = vld [vmem:[#allocation8 + $0x54] sm:$0xf0]  ;;  %v4877_v19 = vor.u32 %v6514_v14, %v4874_v16  ;;  %v6512_v20 = vld [vmem:[#allocation8 + $0x54] sm:$0xf]  ;;  %v4866_v21 = vld [vmem:[#allocation8 + $0x58] sm:$0xf0] }
  0x58   :  { %997 = vmatpush.bf16.msrb.mxu0 %v6458_v4  ;;  %v4865_v22 = vor.u32 %v6513_v18, %v4864_v17  ;;  %v6511_v25 = vld [vmem:[#allocation8 + $0x44] sm:$0xf0]  ;;  %v4848_v32 = vld [vmem:[#allocation8 + $0x30] sm:$0xf]  ;;  %v5002_v12 = vld [vmem:[#allocation11 + $0xf0] sm:$0xf0] }
  0x59   :  { %1011 = vmatpush.bf16.msrb.mxu1 %v6466_v5  ;;  %v262_v2 = vld.sshfl [vmem:[#allocation1 + $0x20] sm:$0xff pattern:$0x73625140]  ;;  %v263_v3 = vld.sshfl [vmem:[#allocation1 + $0x28] sm:$0xff pattern:$0x73625140] }
  0x5a   :  { %1025 = vmatpush.bf16.msrb.mxu2 %v6474_v6  ;;  %v292_v4 = vpack.c.bf16 %v262_v2, %v7296_v24  ;;  %v293_v5 = vpack.c.bf16 %v263_v3, %v7298_v26  ;;  %v4880_v6 = vld [vmem:[#allocation8 + $0x70] sm:$0xf]  ;;  %v4856_v24 = vld [vmem:[#allocation8 + $0x40] sm:$0xf]  ;;  %v6510_v26 = vld [vmem:[#allocation8 + $0x44] sm:$0xf] }
  0x5b   :  { %1039 = vmatpush.bf16.msrb.mxu3 %v6482_v7  ;;  %v6517_v7 = vld [vmem:[#allocation8 + $0x74] sm:$0xf0]  ;;  %v6578_v16 = vld [vmem:[#allocation11 + $0x1e4] sm:$0xf]  ;;  %v4984_v18 = vld [vmem:[#allocation11 + $0xc0] sm:$0xf] }
  0x5c   :  { %998 = vmatpush.bf16.msrb.mxu0 %v6457_v8  ;;  %v6516_v8 = vld [vmem:[#allocation8 + $0x74] sm:$0xf] }
  0x5d   :  { %1012 = vmatpush.bf16.msrb.mxu1 %v6465_v9  ;;  %v258_v44 = vld.sshfl [vmem:[#allocation1] sm:$0xff pattern:$0x73625140]  ;;  %v260_v45 = vld.sshfl [vmem:[#allocation1 + $0x10] sm:$0xff pattern:$0x73625140]  ;;  %v4881_v9 = vor.u32 %v6517_v7, %v4880_v6 }
  0x5e   :  { %1026 = vmatpush.bf16.msrb.mxu2 %v6473_v10  ;;  %v288_v46 = vpack.c.bf16 %v258_v44, %v7284_v56  ;;  %v290_v47 = vpack.c.bf16 %v260_v45, %v7288_v58  ;;  %v259_v48 = vld.sshfl [vmem:[#allocation1 + $0x8] sm:$0xff pattern:$0x73625140]  ;;  %v261_v49 = vld.sshfl [vmem:[#allocation1 + $0x18] sm:$0xff pattern:$0x73625140] }
  0x5f   :  { %1040 = vmatpush.bf16.msrb.mxu3 %v6481_v23  ;;  %v289_v50 = vpack.c.bf16 %v259_v48, %v7286_v57  ;;  %v291_v51 = vpack.c.bf16 %v261_v49, %v7290_v59  ;;  %v6490_v56 = vld [vmem:[#allocation5 + $0x220] sm:$0xff]  ;;  %v6489_v57 = vld [vmem:[#allocation5 + $0x218] sm:$0xff]  ;;  %v6488_v59 = vld [vmem:[#allocation5 + $0x210] sm:$0xff]  ;;  %v4869_v23 = vor.u32 %v6512_v20, %v4866_v21 }
  0x60   :  { %999 = vmatpush.bf16.msrb.mxu0 %v6456_v27  ;;  %v6498_v58 = vld [vmem:[#allocation5 + $0x260] sm:$0xff]  ;;  %v4858_v27 = vld [vmem:[#allocation8 + $0x48] sm:$0xf0]  ;;  %v6548_v6 = vld [vmem:[#allocation11 + $0xec] sm:$0xf0] }
  0x61   :  { %1013 = vmatpush.bf16.msrb.mxu1 %v6464_v29  ;;  %v4882_v10 = vld [vmem:[#allocation8 + $0x78] sm:$0xf0]  ;;  %v4861_v31 = vor.u32 %v6510_v26, %v4858_v27  ;;  %v5128_v7 = vld [vmem:[#allocation11 + $0x1e0] sm:$0xf]  ;;  %v5130_v17 = vld [vmem:[#allocation11 + $0x1f0] sm:$0xf0] }
  0x62   :  { %1027 = vmatpush.bf16.msrb.mxu2 %v6472_v30  ;;  %v4885_v11 = vor.u32 %v6516_v8, %v4882_v10  ;;  %v4857_v30 = vor.u32 %v6511_v25, %v4856_v24  ;;  %v6580_v10 = vld [vmem:[#allocation11 + $0x1ec] sm:$0xf0]  ;;  %v5112_v21 = vld [vmem:[#allocation11 + $0x1c0] sm:$0xf]  ;;  %v6542_v26 = vld [vmem:[#allocation11 + $0xc4] sm:$0xf] }
  0x63   :  { %1041 = vmatpush.bf16.msrb.mxu3 %v6480_v33  ;;  %v6509_v33 = vld [vmem:[#allocation8 + $0x34] sm:$0xf0]  ;;  %v5129_v14 = vor.u32 %v6580_v10, %v5128_v7  ;;  %v6544_v20 = vld [vmem:[#allocation11 + $0xcc] sm:$0xf0] }
  0x64   :  { %1000 = vmatpush.bf16.msrb.mxu0 %v6455_v34  ;;  %v6508_v34 = vld [vmem:[#allocation8 + $0x34] sm:$0xf]  ;;  %v4985_v24 = vor.u32 %v6544_v20, %v4984_v18  ;;  %v5048_v18 = vld [vmem:[#allocation11 + $0x140] sm:$0xf] }
  0x65   :  { %1014 = vmatpush.bf16.msrb.mxu1 %v6463_v35  ;;  %v4849_v35 = vor.u32 %v6509_v33, %v4848_v32  ;;  %v4986_v27 = vld [vmem:[#allocation11 + $0xd0] sm:$0xf0]  ;;  %v4968_v32 = vld [vmem:[#allocation11 + $0xa0] sm:$0xf]  ;;  %v6540_v33 = vld [vmem:[#allocation11 + $0xac] sm:$0xf0] }
  0x66   :  { %1028 = vmatpush.bf16.msrb.mxu2 %v6471_v36  ;;  %v4850_v36 = vld [vmem:[#allocation8 + $0x38] sm:$0xf0]  ;;  %v4938_v7 = vld [vmem:[#allocation11 + $0x70] sm:$0xf0] }
  0x67   :  { %1042 = vmatpush.bf16.msrb.mxu3 %v6479_v37 }
  0x68   :  { %1001 = vmatpush.bf16.msrb.mxu0 %v6454_v38  ;;  %v4853_v38 = vor.u32 %v6508_v34, %v4850_v36  ;;  %v5096_v36 = vld [vmem:[#allocation11 + $0x1a0] sm:$0xf] }
  0x69   :  { %1015 = vmatpush.bf16.msrb.mxu1 %v6462_v39  ;;  %v6924_v39 = vld [vmem:[#allocation7] ss:$0 sm:$0xff] }
  0x6a   :  { %1029 = vmatpush.bf16.msrb.mxu2 %v6470_v40  ;;  %v4840_v40 = vld [vmem:[#allocation8 + $0x20] sm:$0xf] }
  0x6b   :  { %1043 = vmatpush.bf16.msrb.mxu3 %v6478_v43  ;;  %1002 = vmatmul.bf16.vlgmr.msrb.gmra.mxu0 %v288_v46  ;;  %v4842_v46 = vld [vmem:[#allocation8 + $0x28] sm:$0xf0] }
  0x6c   :  { %1050 = vmatpush.bf16.msra.mxu0 %v6493_v41  ;;  %1016 = vmatmul.bf16.vlgmr.msrb.gmra.mxu1 %v289_v50  ;;  %v6507_v41 = vld [vmem:[#allocation8 + $0x24] sm:$0xf0]  ;;  %v4832_v50 = vld [vmem:[#allocation8 + $0x10] sm:$0xf] }
  0x6d   :  { %1064 = vmatpush.bf16.msra.mxu1 %v6501_v42  ;;  %1030 = vmatmul.bf16.vlgmr.msrb.gmra.mxu2 %v290_v47  ;;  %v6506_v42 = vld [vmem:[#allocation8 + $0x24] sm:$0xf]  ;;  %v4841_v45 = vor.u32 %v6507_v41, %v4840_v40  ;;  %v4969_v41 = vor.u32 %v6540_v33, %v4968_v32  ;;  %v6524_v33 = vld [vmem:[#allocation11 + $0x2c] sm:$0xf0] }
  0x6e   :  { %1044 = vmatmul.bf16.vlgmr.msrb.gmra.mxu3 %v291_v51  ;;  %1183 = vmatpush.bf16.msra.mxu2 %v4881_v9  ;;  %v4845_v47 = vor.u32 %v6506_v42, %v4842_v46  ;;  %v6505_v51 = vld [vmem:[#allocation8 + $0x14] sm:$0xf0]  ;;  %v4904_v32 = vld [vmem:[#allocation11 + $0x20] sm:$0xf] }
  0x6f   :  { %1197 = vmatpush.bf16.msra.mxu3 %v4885_v11  ;;  %v6546_v11 = vld [vmem:[#allocation11 + $0xe4] sm:$0xf]  ;;  %v4970_v42 = vld [vmem:[#allocation11 + $0xb0] sm:$0xf0] }
  0x70   :  { %1051 = vmatpush.bf16.msra.mxu0 %v6492_v52  ;;  %v6504_v52 = vld [vmem:[#allocation8 + $0x14] sm:$0xf] }
  0x71   :  { %1065 = vmatpush.bf16.msra.mxu1 %v6500_v53  ;;  %v4833_v53 = vor.u32 %v6505_v51, %v4832_v50 }
  0x72   :  { %1184 = vmatpush.bf16.msra.mxu2 %v4873_v15  ;;  %v5005_v15 = vor.u32 %v6546_v11, %v5002_v12 }
  0x73   :  { %1198 = vmatpush.bf16.msra.mxu3 %v4877_v19  ;;  %v5133_v19 = vor.u32 %v6578_v16, %v5130_v17  ;;  %v4920_v16 = vld [vmem:[#allocation11 + $0x40] sm:$0xf]  ;;  %v6528_v17 = vld [vmem:[#allocation11 + $0x4c] sm:$0xf0] }
  0x74   :  { %1052 = vmatpush.bf16.msra.mxu0 %v6491_v54  ;;  %v4834_v54 = vld [vmem:[#allocation8 + $0x18] sm:$0xf0] }
  0x75   :  { %1066 = vmatpush.bf16.msra.mxu1 %v6499_v55  ;;  %v4837_v55 = vor.u32 %v6504_v52, %v4834_v54  ;;  %v6534_v54 = vld [vmem:[#allocation11 + $0x84] sm:$0xf] }
  0x76   :  { %1185 = vmatpush.bf16.msra.mxu2 %v4865_v22  ;;  %v6576_v22 = vld [vmem:[#allocation11 + $0x1cc] sm:$0xf0] }
  0x77   :  { %1199 = vmatpush.bf16.msra.mxu3 %v4869_v23  ;;  %v5113_v25 = vor.u32 %v6576_v22, %v5112_v21  ;;  %v6560_v21 = vld [vmem:[#allocation11 + $0x14c] sm:$0xf0]  ;;  %v6526_v22 = vld [vmem:[#allocation11 + $0x44] sm:$0xf] }
  0x78   :  { %1053 = vmatpush.bf16.msra.mxu0 %v6490_v56 }
  0x79   :  { %1067 = vmatpush.bf16.msra.mxu1 %v6498_v58 }
  0x7a   :  { %1186 = vmatpush.bf16.msra.mxu2 %v4857_v30  ;;  %v4989_v30 = vor.u32 %v6542_v26, %v4986_v27  ;;  %v5050_v26 = vld [vmem:[#allocation11 + $0x150] sm:$0xf0] }
  0x7b   :  { %1200 = vmatpush.bf16.msra.mxu3 %v4861_v31  ;;  %v5114_v31 = vld [vmem:[#allocation11 + $0x1d0] sm:$0xf0] }
  0x7c   :  { %1054 = vmatpush.bf16.msra.mxu0 %v6489_v57  ;;  %v4824_v57 = vld [vmem:[#allocation8] sm:$0xf] }
  0x7d   :  { %1068 = vmatpush.bf16.msra.mxu1 %v6497_v60  ;;  %v6503_v60 = vld [vmem:[#allocation8 + $0x4] sm:$0xf0] }
  0x7e   :  { %1187 = vmatpush.bf16.msra.mxu2 %v4849_v35 }
  0x7f   :  { %1201 = vmatpush.bf16.msra.mxu3 %v4853_v38  ;;  %v6538_v38 = vld [vmem:[#allocation11 + $0xa4] sm:$0xf] }
  0x80   :  { %1055 = vmatpush.bf16.msra.mxu0 %v6488_v59  ;;  %v6502_v59 = vld [vmem:[#allocation8 + $0x4] sm:$0xf]  ;;  %v4973_v46 = vor.u32 %v6538_v38, %v4970_v42  ;;  %v4906_v38 = vld [vmem:[#allocation11 + $0x30] sm:$0xf0] }
  0x81   :  { %1069 = vmatpush.bf16.msra.mxu1 %v6496_v61  ;;  %v4825_v61 = vor.u32 %v6503_v60, %v4824_v57  ;;  %v5082_v57 = vld [vmem:[#allocation11 + $0x190] sm:$0xf0] }
  0x82   :  { %1188 = vmatpush.bf16.msra.mxu2 %v4841_v45 }
  0x83   :  { %1202 = vmatpush.bf16.msra.mxu3 %v4845_v47  ;;  %v4952_v47 = vld [vmem:[#allocation11 + $0x80] sm:$0xf] }
  0x84   :  { %1056 = vmatpush.bf16.msra.mxu0 %v6487_v62  ;;  %v4826_v62 = vld [vmem:[#allocation8 + $0x8] sm:$0xf0] }
  0x85   :  { %1070 = vmatpush.bf16.msra.mxu1 %v6495_v63  ;;  %v4829_v63 = vor.u32 %v6502_v59, %v4826_v62 }
  0x86   :  { %1189 = vmatpush.bf16.msra.mxu2 %v4833_v53  ;;  %v6568_v53 = vld [vmem:[#allocation11 + $0x18c] sm:$0xf0] }
  0x87   :  { %1203 = vmatpush.bf16.msra.mxu3 %v4837_v55  ;;  %v4954_v55 = vld [vmem:[#allocation11 + $0x90] sm:$0xf0] }
  0x88   :  { %1057 = vmatpush.bf16.msra.mxu0 %v6486_v0  ;;  %v4957_v62 = vor.u32 %v6534_v54, %v4954_v55  ;;  %v6552_v54 = vld [vmem:[#allocation11 + $0x10c] sm:$0xf0]  ;;  %v6518_v55 = vld [vmem:[#allocation11 + $0x4] sm:$0xf] }
  0x89   :  { %1071 = vmatpush.bf16.msra.mxu1 %v6494_v1 }
  0x8a   :  { %1190 = vmatpush.bf16.msra.mxu2 %v4825_v61 }
  0x8b   :  { %1058 = vmatmul.bf16.vlgmr.msra.gmra.mxu0 %v292_v4  ;;  %1204 = vmatpush.bf16.msra.mxu3 %v4829_v63  ;;  %v4936_v63 = vld [vmem:[#allocation11 + $0x60] sm:$0xf] }
  0x8c   :  { %1072 = vmatmul.bf16.vlgmr.msra.gmra.mxu1 %v293_v5  ;;  %v5000_v5 = vld [vmem:[#allocation11 + $0xe0] sm:$0xf] }
  0x8d   :  { %v5001_v9 = vor.u32 %v6548_v6, %v5000_v5  ;;  %1625 = vmatpush.bf16.msrb.mxu1 %v5129_v14  ;;  %v6564_v5 = vld [vmem:[#allocation11 + $0x16c] sm:$0xf0]  ;;  %v6530_v6 = vld [vmem:[#allocation11 + $0x64] sm:$0xf] }
  0x8e   :  { %1639 = vmatpush.bf16.msrb.mxu2 %v5005_v15  ;;  %v4941_v15 = vor.u32 %v6530_v6, %v4938_v7  ;;  %v6581_v7 = vld [vmem:[#allocation11 + $0x1f4] sm:$0xf0] }
  0x8f   :  { %1611 = vmatpush.bf16.msrb.mxu0 %v5001_v9  ;;  %1653 = vmatpush.bf16.msrb.mxu3 %v5133_v19  ;;  %v5066_v9 = vld [vmem:[#allocation11 + $0x170] sm:$0xf0] }
  0x91   :  { %1626 = vmatpush.bf16.msrb.mxu1 %v5113_v25  ;;  %v6558_v25 = vld [vmem:[#allocation11 + $0x144] sm:$0xf] }
  0x92   :  { %1640 = vmatpush.bf16.msrb.mxu2 %v4989_v30  ;;  %v5049_v30 = vor.u32 %v6560_v21, %v5048_v18  ;;  %v6577_v18 = vld [vmem:[#allocation11 + $0x1d4] sm:$0xf0] }
  0x93   :  { %1612 = vmatpush.bf16.msrb.mxu0 %v4985_v24 }
  0x96   :  { %1641 = vmatpush.bf16.msrb.mxu2 %v4973_v46 }
  0x97   :  { %1613 = vmatpush.bf16.msrb.mxu0 %v4969_v41  ;;  %v5034_v41 = vld [vmem:[#allocation11 + $0x130] sm:$0xf0] }
  0x9a   :  { %1642 = vmatpush.bf16.msrb.mxu2 %v4957_v62 }
  0x9e   :  { %1643 = vmatpush.bf16.msrb.mxu2 %v4941_v15  ;;  %v6545_v15 = vld [vmem:[#allocation11 + $0xd4] sm:$0xf0] }
  0xce   :  { %v947_v28 = vpop.f32.mrf.mxu0 }
  0xcf   :  { %v961_v29 = vpop.f32.mrf.mxu1  ;;  %v948_v48 = vadd.f32 %v6924_v39, %v947_v28  ;;  %v6574_v28 = vld [vmem:[#allocation11 + $0x1c4] sm:$0xf] }
  0xd0   :  { %v5117_v35 = vor.u32 %v6574_v28, %v5114_v31 }
  0xd1   :  { %v962_v56 = vadd.f32 %v961_v29, %v948_v48  ;;  %v6536_v48 = vld [vmem:[#allocation11 + $0x8c] sm:$0xf0] }
  0xd2   :  { %1654 = vmatpush.bf16.msrb.mxu3 %v5117_v35  ;;  %v4953_v60 = vor.u32 %v6536_v48, %v4952_v47  ;;  %v5053_v35 = vor.u32 %v6558_v25, %v5050_v26  ;;  %v4888_v48 = vld [vmem:[#allocation11] sm:$0xf]  ;;  %v4976_v26 = vld [vmem:[#allocation11 + $0xa8] sm:$0xf] }
  0xd3   :  { %v975_v37 = vpop.f32.mrf.mxu2 }
  0xd4   :  { %v976_v0 = vadd.f32 %v975_v37, %v962_v56  ;;  %v6572_v37 = vld [vmem:[#allocation11 + $0x1ac] sm:$0xf0]  ;;  %1614 = vmatpush.bf16.msrb.mxu0 %v4953_v60  ;;  %v5018_v60 = vld [vmem:[#allocation11 + $0x110] sm:$0xf0] }
  0xd5   :  { %v5097_v45 = vor.u32 %v6572_v37, %v5096_v36  ;;  %v6556_v36 = vld [vmem:[#allocation11 + $0x12c] sm:$0xf0]  ;;  %v6522_v37 = vld [vmem:[#allocation11 + $0x24] sm:$0xf] }
  0xd6   :  { %v949_v43 = vpop.f32.mrf.mxu0  ;;  %v4909_v47 = vor.u32 %v6522_v37, %v4906_v38  ;;  %v4960_v38 = vld [vmem:[#allocation11 + $0x88] sm:$0xf] }
  0xd7   :  { %v963_v44 = vpop.f32.mrf.mxu1  ;;  %v989_v49 = vpop.f32.mrf.mxu3  ;;  %v950_v3 = vadd.f32 %v6924_v39, %v949_v43  ;;  %v6570_v43 = vld [vmem:[#allocation11 + $0x1a4] sm:$0xf]  ;;  %1627 = vmatpush.bf16.msrb.mxu1 %v5097_v45 }
  0xd8   :  { %v990_v8 = vadd.f32 %v989_v49, %v976_v0  ;;  %v5080_v49 = vld [vmem:[#allocation11 + $0x180] sm:$0xf]  ;;  %v6532_v0 = vld [vmem:[#allocation11 + $0x6c] sm:$0xf0] }
  0xd9   :  { %v964_v13 = vadd.f32 %v963_v44, %v950_v3  ;;  %v5098_v44 = vld [vmem:[#allocation11 + $0x1b0] sm:$0xf0]  ;;  %v5081_v61 = vor.u32 %v6568_v53, %v5080_v49  ;;  %v4937_v12 = vor.u32 %v6532_v0, %v4936_v63  ;;  %v6520_v49 = vld [vmem:[#allocation11 + $0xc] sm:$0xf0] }
  0xda   :  { %v5101_v52 = vor.u32 %v6570_v43, %v5098_v44  ;;  %v4905_v44 = vor.u32 %v6524_v33, %v4904_v32  ;;  %v4978_v32 = vld [vmem:[#allocation11 + $0xb8] sm:$0xf0] }
  0xdb   :  { %v977_v58 = vpop.f32.mrf.mxu2  ;;  %1628 = vmatpush.bf16.msrb.mxu1 %v5081_v61  ;;  %1615 = vmatpush.bf16.msrb.mxu0 %v4937_v12  ;;  %v5138_v12 = vld [vmem:[#allocation11 + $0x1f8] sm:$0xf0] }
  0xdc   :  { %v978_v34 = vadd.f32 %v977_v58, %v964_v13  ;;  %v6566_v58 = vld [vmem:[#allocation11 + $0x184] sm:$0xf]  ;;  %1655 = vmatpush.bf16.msrb.mxu3 %v5101_v52  ;;  %v5016_v52 = vld [vmem:[#allocation11 + $0x100] sm:$0xf] }
  0xdd   :  { %v5085_v3 = vor.u32 %v6566_v58, %v5082_v57  ;;  %v4889_v58 = vor.u32 %v6520_v49, %v4888_v48  ;;  %v6550_v57 = vld [vmem:[#allocation11 + $0x104] sm:$0xf]  ;;  %v5017_v62 = vor.u32 %v6552_v54, %v5016_v52  ;;  %v5090_v48 = vld [vmem:[#allocation11 + $0x198] sm:$0xf0]  ;;  %v5072_v52 = vld [vmem:[#allocation11 + $0x168] sm:$0xf] }
  0xde   :  { %v6565_v54 = vld [vmem:[#allocation11 + $0x174] sm:$0xf0] }
  0xdf   :  { %v991_v4 = vpop.f32.mrf.mxu3 }
  0xe0   :  { %v992_v56 = vadd.f32 %v991_v4, %v978_v34  ;;  %v6562_v4 = vld [vmem:[#allocation11 + $0x164] sm:$0xf]  ;;  %1656 = vmatpush.bf16.msrb.mxu3 %v5085_v3  ;;  %v5032_v34 = vld [vmem:[#allocation11 + $0x120] sm:$0xf]  ;;  %v6549_v3 = vld [vmem:[#allocation11 + $0xf4] sm:$0xf0] }
  0xe1   :  { %v5069_v20 = vor.u32 %v6562_v4, %v5066_v9  ;;  %v5033_v46 = vor.u32 %v6556_v36, %v5032_v34  ;;  %v5010_v4 = vld [vmem:[#allocation11 + $0xf8] sm:$0xf0] }
  0xe2   :  { %v5106_v36 = vld [vmem:[#allocation11 + $0x1b8] sm:$0xf0] }
  0xe4   :  { %1657 = vmatpush.bf16.msrb.mxu3 %v5069_v20  ;;  %v4994_v20 = vld [vmem:[#allocation11 + $0xd8] sm:$0xf0] }
  0xe8   :  { %v1003_v1 = vpop.f32.mrf.mxu0  ;;  %1658 = vmatpush.bf16.msrb.mxu3 %v5053_v35  ;;  %v6571_v35 = vld [vmem:[#allocation11 + $0x1ac] sm:$0xf] }
  0xe9   :  { %v1017_v2 = vpop.f32.mrf.mxu1  ;;  %v1004_v29 = vadd.f32 %v1003_v1, %v990_v8  ;;  %v5064_v1 = vld [vmem:[#allocation11 + $0x160] sm:$0xf]  ;;  %v5109_v37 = vor.u32 %v6571_v35, %v5106_v36 }
  0xea   :  { %v5065_v14 = vor.u32 %v6564_v5, %v5064_v1  ;;  %v5021_v1 = vor.u32 %v6550_v57, %v5018_v60  ;;  %v5136_v5 = vld [vmem:[#allocation11 + $0x1e8] sm:$0xf]  ;;  %v6563_v60 = vld [vmem:[#allocation11 + $0x16c] sm:$0xf] }
  0xeb   :  { %v1018_v50 = vadd.f32 %v1017_v2, %v1004_v29  ;;  %v4921_v29 = vor.u32 %v6528_v17, %v4920_v16  ;;  %v5137_v9 = vor.u32 %v6581_v7, %v5136_v5  ;;  %v5120_v16 = vld [vmem:[#allocation11 + $0x1c8] sm:$0xf]  ;;  %v6527_v5 = vld [vmem:[#allocation11 + $0x4c] sm:$0xf] }
  0xec   :  { %1629 = vmatpush.bf16.msrb.mxu1 %v5065_v14  ;;  %v4992_v14 = vld [vmem:[#allocation11 + $0xc8] sm:$0xf]  ;;  %v5121_v21 = vor.u32 %v6577_v18, %v5120_v16  ;;  %v6559_v7 = vld [vmem:[#allocation11 + $0x14c] sm:$0xf]  ;;  %v4914_v16 = vld [vmem:[#allocation11 + $0x38] sm:$0xf0] }
  0xed   :  { %1616 = vmatpush.bf16.msrb.mxu0 %v4921_v29  ;;  %v4993_v17 = vor.u32 %v6545_v15, %v4992_v14  ;;  %v6523_v14 = vld [vmem:[#allocation11 + $0x2c] sm:$0xf]  ;;  %v5042_v18 = vld [vmem:[#allocation11 + $0x138] sm:$0xf0] }
  0xf0   :  { %v1031_v23 = vpop.f32.mrf.mxu2  ;;  %v1005_v39 = vpop.f32.mrf.mxu0  ;;  %1630 = vmatpush.bf16.msrb.mxu1 %v5049_v30  ;;  %v6573_v30 = vld [vmem:[#allocation11 + $0x1b4] sm:$0xf0] }
  0xf1   :  { %v1019_v40 = vpop.f32.mrf.mxu1  ;;  %v1045_v51 = vpop.f32.mrf.mxu3  ;;  %v1006_v59 = vadd.f32 %v1005_v39, %v992_v56  ;;  %v1032_v2 = vadd.f32 %v1031_v23, %v1018_v50  ;;  %v4922_v23 = vld [vmem:[#allocation11 + $0x50] sm:$0xf0]  ;;  %1617 = vmatpush.bf16.msrb.mxu0 %v4905_v44  ;;  %v4962_v44 = vld [vmem:[#allocation11 + $0x98] sm:$0xf0] }
  0xf2   :  { %v4925_v31 = vor.u32 %v6526_v22, %v4922_v23  ;;  %v4890_v56 = vld [vmem:[#allocation11 + $0x10] sm:$0xf0]  ;;  %v6575_v23 = vld [vmem:[#allocation11 + $0x1cc] sm:$0xf] }
  0xf3   :  { %v1020_v13 = vadd.f32 %v1019_v40, %v1006_v59  ;;  %v1046_v19 = vadd.f32 %v1045_v51, %v1032_v2  ;;  %v6554_v40 = vld [vmem:[#allocation11 + $0x124] sm:$0xf]  ;;  %v4893_v63 = vor.u32 %v6518_v55, %v4890_v56  ;;  %v5008_v2 = vld [vmem:[#allocation11 + $0xe8] sm:$0xf]  ;;  %v6531_v55 = vld [vmem:[#allocation11 + $0x6c] sm:$0xf] }
  0xf4   :  { %1644 = vmatpush.bf16.msrb.mxu2 %v4925_v31  ;;  %v5037_v51 = vor.u32 %v6554_v40, %v5034_v41  ;;  %1631 = vmatpush.bf16.msrb.mxu1 %v5033_v46  ;;  %v5009_v6 = vor.u32 %v6549_v3, %v5008_v2  ;;  %v6539_v31 = vld [vmem:[#allocation11 + $0xac] sm:$0xf]  ;;  %v5088_v40 = vld [vmem:[#allocation11 + $0x188] sm:$0xf]  ;;  %v4946_v56 = vld [vmem:[#allocation11 + $0x78] sm:$0xf0] }
  0xf5   :  { %1618 = vmatpush.bf16.msrb.mxu0 %v4889_v58  ;;  %v4981_v34 = vor.u32 %v6539_v31, %v4978_v32  ;;  %v5073_v58 = vor.u32 %v6565_v54, %v5072_v52  ;;  %v4949_v57 = vor.u32 %v6531_v55, %v4946_v56  ;;  %v6629_v52 = vld [vmem:[#allocation14 + $0x754] sm:$0xf0]  ;;  %v5392_v55 = vld [vmem:[#allocation14 + $0x9b0] sm:$0xf] }
  0xf6   :  { %1659 = vmatpush.bf16.msrb.mxu3 %v5037_v51  ;;  %v6533_v51 = vld [vmem:[#allocation11 + $0x74] sm:$0xf0]  ;;  %v6645_v56 = vld [vmem:[#allocation14 + $0x9d4] sm:$0xf0] }
  0xf8   :  { %v1033_v8 = vpop.f32.mrf.mxu2  ;;  %1645 = vmatpush.bf16.msrb.mxu2 %v4909_v47  ;;  %1632 = vmatpush.bf16.msrb.mxu1 %v5017_v62  ;;  %v6567_v47 = vld [vmem:[#allocation11 + $0x18c] sm:$0xf] }
  0xf9   :  { %v1034_v24 = vadd.f32 %v1033_v8, %v1020_v13  ;;  %v1047_v27 = vpop.f32.mrf.mxu3  ;;  %v6547_v8 = vld [vmem:[#allocation11 + $0xec] sm:$0xf]  ;;  %1667 = vmatpush.bf16.msra.mxu0 %v5009_v6  ;;  %v5093_v49 = vor.u32 %v6567_v47, %v5090_v48  ;;  %v4930_v6 = vld [vmem:[#allocation11 + $0x58] sm:$0xf0]  ;;  %v5264_v47 = vld [vmem:[#allocation14 + $0x4b0] sm:$0xf] }
  0xfa   :  { %1660 = vmatpush.bf16.msrb.mxu3 %v5021_v1  ;;  %v6561_v1 = vld [vmem:[#allocation11 + $0x154] sm:$0xf0]  ;;  %v6613_v48 = vld [vmem:[#allocation14 + $0x4d4] sm:$0xf0] }
  0xfb   :  { %v1048_v39 = vadd.f32 %v1047_v27, %v1034_v24  ;;  %v5122_v24 = vld [vmem:[#allocation11 + $0x1d8] sm:$0xf0]  ;;  %v6541_v27 = vld [vmem:[#allocation11 + $0xb4] sm:$0xf0] }
  0xfc   :  { %1646 = vmatpush.bf16.msrb.mxu2 %v4893_v63  ;;  %1681 = vmatpush.bf16.msra.mxu1 %v5137_v9  ;;  %v5125_v25 = vor.u32 %v6575_v23, %v5122_v24  ;;  %v4977_v29 = vor.u32 %v6541_v27, %v4976_v26  ;;  %v6529_v63 = vld [vmem:[#allocation11 + $0x54] sm:$0xf0]  ;;  %v4912_v9 = vld [vmem:[#allocation11 + $0x28] sm:$0xf]  ;;  %v6519_v26 = vld [vmem:[#allocation11 + $0xc] sm:$0xf] }
  0xfd   :  { %1668 = vmatpush.bf16.msra.mxu0 %v4993_v17  ;;  %v6555_v17 = vld [vmem:[#allocation11 + $0x12c] sm:$0xf]  ;;  %v5024_v23 = vld [vmem:[#allocation11 + $0x108] sm:$0xf]  ;;  %v4898_v27 = vld [vmem:[#allocation11 + $0x18] sm:$0xf0] }
  0xfe   :  { %v5045_v24 = vor.u32 %v6555_v17, %v5042_v18  ;;  %v4901_v32 = vor.u32 %v6519_v26, %v4898_v27  ;;  %v5376_v17 = vld [vmem:[#allocation14 + $0x910] sm:$0xf]  ;;  %v6641_v18 = vld [vmem:[#allocation14 + $0x934] sm:$0xf0]  ;;  %v5304_v26 = vld [vmem:[#allocation14 + $0x640] sm:$0xf] }
  0xff   :  { %v5377_v27 = vor.u32 %v6641_v18, %v5376_v17 }
 0x100   :  { %1682 = vmatpush.bf16.msra.mxu1 %v5121_v21  ;;  %v4896_v21 = vld [vmem:[#allocation11 + $0x8] sm:$0xf] }
 0x101   :  { %1669 = vmatpush.bf16.msra.mxu0 %v4977_v29  ;;  %v5026_v29 = vld [vmem:[#allocation11 + $0x118] sm:$0xf0] }
 0x108   :  { %v1059_v10 = vpop.f32.mrf.mxu0 }
 0x109   :  { %v1073_v11 = vpop.f32.mrf.mxu1  ;;  %v1060_v28 = vadd.f32 %v1059_v10, %v1046_v19  ;;  %v5013_v10 = vor.u32 %v6547_v8, %v5010_v4  ;;  %v6543_v19 = vld [vmem:[#allocation11 + $0xcc] sm:$0xf]  ;;  %v4933_v8 = vor.u32 %v6527_v5, %v4930_v6  ;;  %v5058_v4 = vld [vmem:[#allocation11 + $0x158] sm:$0xf0]  ;;  %v5384_v6 = vld [vmem:[#allocation14 + $0x960] sm:$0xf] }
 0x10a   :  { %v4997_v22 = vor.u32 %v6543_v19, %v4994_v20  ;;  %v4917_v20 = vor.u32 %v6523_v14, %v4914_v16  ;;  %v6627_v5 = vld [vmem:[#allocation14 + $0x704] sm:$0xf0]  ;;  %v5312_v14 = vld [vmem:[#allocation14 + $0x690] sm:$0xf]  ;;  %v6625_v16 = vld [vmem:[#allocation14 + $0x6b4] sm:$0xf0] }
 0x10b   :  { %v1074_v42 = vadd.f32 %v1073_v11, %v1060_v28  ;;  %v6579_v11 = vld [vmem:[#allocation11 + $0x1ec] sm:$0xf]  ;;  %v5104_v28 = vld [vmem:[#allocation11 + $0x1a8] sm:$0xf] }
 0x10c   :  { %v5141_v13 = vor.u32 %v6579_v11, %v5138_v12  ;;  %v5105_v33 = vor.u32 %v6573_v30, %v5104_v28  ;;  %v5061_v11 = vor.u32 %v6559_v7, %v5058_v4  ;;  %v5040_v12 = vld [vmem:[#allocation11 + $0x128] sm:$0xf]  ;;  %v6551_v28 = vld [vmem:[#allocation11 + $0x10c] sm:$0xf]  ;;  %v5184_v4 = vld [vmem:[#allocation14 + $0x190] sm:$0xf] }
 0x10d   :  { %v1078_v59 = vmax.f32 %v1074_v42, 0.0  ;;  %v6569_v42 = vld [vmem:[#allocation11 + $0x194] sm:$0xf0]  ;;  %v6643_v7 = vld [vmem:[#allocation14 + $0x984] sm:$0xf0] }
 0x10e   :  { %1683 = vmatpush.bf16.msra.mxu1 %v5105_v33  ;;  %v5029_v33 = vor.u32 %v6551_v28, %v5026_v29  ;;  %v6623_v28 = vld [vmem:[#allocation14 + $0x664] sm:$0xf0]  ;;  %v5368_v29 = vld [vmem:[#allocation14 + $0x8c0] sm:$0xf] }
 0x110   :  { %v1061_v43 = vpop.f32.mrf.mxu0 }
 0x111   :  { %v1062_v45 = vadd.f32 %v1061_v43, %v1048_v39  ;;  %v1075_v50 = vpop.f32.mrf.mxu1  ;;  %v6537_v39 = vld [vmem:[#allocation11 + $0x94] sm:$0xf0]  ;;  %v6535_v43 = vld [vmem:[#allocation11 + $0x8c] sm:$0xf] }
 0x112   :  { %v4961_v41 = vor.u32 %v6537_v39, %v4960_v38  ;;  %v4965_v46 = vor.u32 %v6535_v43, %v4962_v44  ;;  %v5200_v43 = vld [vmem:[#allocation14 + $0x230] sm:$0xf] }
 0x113   :  { %v1076_v53 = vadd.f32 %v1075_v50, %v1062_v45  ;;  %v5089_v45 = vor.u32 %v6569_v42, %v5088_v40  ;;  %v4944_v50 = vld [vmem:[#allocation11 + $0x68] sm:$0xf] }
 0x114   :  { %1670 = vmatpush.bf16.msra.mxu0 %v4961_v41 }
 0x115   :  { %v1079_v61 = vmax.f32 %v1076_v53, 0.0  ;;  %1684 = vmatpush.bf16.msra.mxu1 %v5089_v45  ;;  %v4945_v53 = vor.u32 %v6533_v51, %v4944_v50  ;;  %v5328_v51 = vld [vmem:[#allocation14 + $0x730] sm:$0xf] }
 0x117   :  { %v1080_v0 = vpack.c.bf16 %v1079_v61, %v1078_v59  ;;  %v5074_v59 = vld [vmem:[#allocation11 + $0x178] sm:$0xf0]  ;;  %v4928_v61 = vld [vmem:[#allocation11 + $0x48] sm:$0xf] }
 0x118   :  { %1671 = vmatpush.bf16.msra.mxu0 %v4945_v53  ;;  %v5077_v62 = vor.u32 %v6563_v60, %v5074_v59  ;;  %v4929_v2 = vor.u32 %v6529_v63, %v4928_v61  ;;  %v5192_v59 = vld [vmem:[#allocation14 + $0x1e0] sm:$0xf]  ;;  %v6595_v61 = vld [vmem:[#allocation14 + $0x204] sm:$0xf0] }
 0x119   :  { %1191 = vmatmul.bf16.vlgmr.msra.gmra.mxu2 %v1080_v0  ;;  %1205 = vmatmul.bf16.vlgmr.msra.gmra.mxu3 %v1080_v0  ;;  %v5056_v0 = vld [vmem:[#allocation11 + $0x148] sm:$0xf]  ;;  %v5256_v63 = vld [vmem:[#allocation14 + $0x460] sm:$0xf] }
 0x11a   :  { %1695 = vmatpush.bf16.msra.mxu2 %v5013_v10  ;;  %1709 = vmatpush.bf16.msra.mxu3 %v5141_v13  ;;  %v5057_v3 = vor.u32 %v6561_v1, %v5056_v0  ;;  %v6525_v10 = vld [vmem:[#allocation11 + $0x34] sm:$0xf0]  ;;  %v6611_v0 = vld [vmem:[#allocation14 + $0x484] sm:$0xf0]  ;;  %v5329_v1 = vor.u32 %v6629_v52, %v5328_v51  ;;  %v5288_v51 = vld [vmem:[#allocation14 + $0x5a0] sm:$0xf] }
 0x11b   :  { %1685 = vmatpush.bf16.msra.mxu1 %v5073_v58  ;;  %v6557_v13 = vld [vmem:[#allocation11 + $0x134] sm:$0xf0]  ;;  %v4913_v15 = vor.u32 %v6525_v10, %v4912_v9  ;;  %v6593_v9 = vld [vmem:[#allocation14 + $0x1b4] sm:$0xf0]  ;;  %v5257_v10 = vor.u32 %v6611_v0, %v5256_v63  ;;  %v6619_v52 = vld [vmem:[#allocation14 + $0x5c4] sm:$0xf0] }
 0x11c   :  { %1672 = vmatpush.bf16.msra.mxu0 %v4929_v2  ;;  %v5041_v19 = vor.u32 %v6557_v13, %v5040_v12  ;;  %v5320_v2 = vld [vmem:[#allocation14 + $0x6e0] sm:$0xf]  ;;  %v6609_v12 = vld [vmem:[#allocation14 + $0x434] sm:$0xf0] }
 0x11d   :  { %v5321_v13 = vor.u32 %v6627_v5, %v5320_v2  ;;  %v6617_v63 = vld [vmem:[#allocation14 + $0x574] sm:$0xf0]  ;;  %v6599_v5 = vld [vmem:[#allocation14 + $0x2a4] sm:$0xf0] }
 0x11e   :  { %1696 = vmatpush.bf16.msra.mxu2 %v4997_v22  ;;  %1710 = vmatpush.bf16.msra.mxu3 %v5125_v25  ;;  %v6521_v22 = vld [vmem:[#allocation11 + $0x14] sm:$0xf0] }
 0x11f   :  { %1686 = vmatpush.bf16.msra.mxu1 %v5057_v3  ;;  %v6553_v25 = vld [vmem:[#allocation11 + $0x114] sm:$0xf0]  ;;  %v4897_v30 = vor.u32 %v6521_v22, %v4896_v21  ;;  %v5393_v3 = vor.u32 %v6645_v56, %v5392_v55  ;;  %v6591_v21 = vld [vmem:[#allocation14 + $0x164] sm:$0xf0]  ;;  %v6585_v56 = vld [vmem:[#allocation14 + $0x74] sm:$0xf0] }
 0x120   :  { %1673 = vmatpush.bf16.msra.mxu0 %v4913_v15  ;;  %v5025_v31 = vor.u32 %v6553_v25, %v5024_v23  ;;  %v5385_v15 = vor.u32 %v6643_v7, %v5384_v6  ;;  %v5240_v23 = vld [vmem:[#allocation14 + $0x3c0] sm:$0xf]  ;;  %v5313_v25 = vor.u32 %v6625_v16, %v5312_v14  ;;  %v5202_v7 = vld [vmem:[#allocation14 + $0x258] sm:$0xf0]  ;;  %v5194_v14 = vld [vmem:[#allocation14 + $0x208] sm:$0xf0] }
 0x121   :  { %v5258_v16 = vld [vmem:[#allocation14 + $0x488] sm:$0xf0] }
 0x122   :  { %1697 = vmatpush.bf16.msra.mxu2 %v4981_v34  ;;  %1711 = vmatpush.bf16.msra.mxu3 %v5109_v37  ;;  %v1097_v34 = vld [vmem:[#allocation10] sm:$0x3] }
 0x123   :  { %1687 = vmatpush.bf16.msra.mxu1 %v5041_v19  ;;  %v1099_v37 = vperm.slane %v1097_v34, 0  ;;  %v1100_v38 = vperm.slane %v1097_v34, 1  ;;  %v5185_v19 = vor.u32 %v6593_v9, %v5184_v4  ;;  %v5266_v4 = vld [vmem:[#allocation14 + $0x4d8] sm:$0xf0] }
 0x124   :  { %1674 = vmatpush.bf16.msra.mxu0 %v4897_v30  ;;  %v6639_v30 = vld [vmem:[#allocation14 + $0x8e4] sm:$0xf0] }
 0x126   :  { %1698 = vmatpush.bf16.msra.mxu2 %v4965_v46  ;;  %1712 = vmatpush.bf16.msra.mxu3 %v5093_v49  ;;  %v6597_v46 = vld [vmem:[#allocation14 + $0x254] sm:$0xf0] }
 0x127   :  { %1688 = vmatpush.bf16.msra.mxu1 %v5025_v31  ;;  %v5201_v60 = vor.u32 %v6597_v46, %v5200_v43  ;;  %v6587_v46 = vld [vmem:[#allocation14 + $0xc4] sm:$0xf0] }
 0x12a   :  { %1699 = vmatpush.bf16.msra.mxu2 %v4949_v57  ;;  %1713 = vmatpush.bf16.msra.mxu3 %v5077_v62  ;;  %v5265_v62 = vor.u32 %v6613_v48, %v5264_v47  ;;  %v5224_v47 = vld [vmem:[#allocation14 + $0x320] sm:$0xf]  ;;  %v6603_v48 = vld [vmem:[#allocation14 + $0x344] sm:$0xf0] }
 0x12b   :  { %v5225_v55 = vor.u32 %v6603_v48, %v5224_v47  ;;  %v5162_v47 = vld [vmem:[#allocation14 + $0xc8] sm:$0xf0]  ;;  %v6626_v48 = vld [vmem:[#allocation14 + $0x6e4] sm:$0xf] }
 0x12e   :  { %1700 = vmatpush.bf16.msra.mxu2 %v4933_v8  ;;  %1714 = vmatpush.bf16.msra.mxu3 %v5061_v11  ;;  %v5193_v8 = vor.u32 %v6595_v61, %v5192_v59  ;;  %v5248_v11 = vld [vmem:[#allocation14 + $0x410] sm:$0xf]  ;;  %v6601_v59 = vld [vmem:[#allocation14 + $0x2f4] sm:$0xf0]  ;;  %v5289_v61 = vor.u32 %v6619_v52, %v5288_v51  ;;  %v5336_v51 = vld [vmem:[#allocation14 + $0x780] sm:$0xf] }
 0x12f   :  { %v5249_v22 = vor.u32 %v6609_v12, %v5248_v11  ;;  %v6594_v12 = vld [vmem:[#allocation14 + $0x1e4] sm:$0xf]  ;;  %v6631_v52 = vld [vmem:[#allocation14 + $0x7a4] sm:$0xf0] }
 0x130   :  { %v5197_v17 = vor.u32 %v6594_v12, %v5194_v14 }
 0x132   :  { %1701 = vmatpush.bf16.msra.mxu2 %v4917_v20  ;;  %1715 = vmatpush.bf16.msra.mxu3 %v5045_v24  ;;  %v5176_v20 = vld [vmem:[#allocation14 + $0x140] sm:$0xf]  ;;  %v6607_v24 = vld [vmem:[#allocation14 + $0x3e4] sm:$0xf0] }
 0x133   :  { %v5177_v31 = vor.u32 %v6591_v21, %v5176_v20  ;;  %v5241_v34 = vor.u32 %v6607_v24, %v5240_v23  ;;  %v5186_v20 = vld [vmem:[#allocation14 + $0x1b8] sm:$0xf0]  ;;  %v5178_v23 = vld [vmem:[#allocation14 + $0x168] sm:$0xf0] }
 0x136   :  { %1702 = vmatpush.bf16.msra.mxu2 %v4901_v32  ;;  %1716 = vmatpush.bf16.msra.mxu3 %v5029_v33  ;;  %v5168_v32 = vld [vmem:[#allocation14 + $0xf0] sm:$0xf]  ;;  %v6589_v33 = vld [vmem:[#allocation14 + $0x114] sm:$0xf0] }
 0x137   :  { %v5169_v43 = vor.u32 %v6589_v33, %v5168_v32  ;;  %v6615_v32 = vld [vmem:[#allocation14 + $0x524] sm:$0xf0] }
 0x19c   :  { %v1192_v35 = vpop.f32.mrf.mxu2  ;;  %v1206_v36 = vpop.f32.mrf.mxu3 }
 0x19d   :  { %v1193_v39 = vadd.f32 %v1192_v35, %v1099_v37  ;;  %v1207_v40 = vadd.f32 %v1206_v36, %v1100_v38  ;;  %v5232_v35 = vld [vmem:[#allocation14 + $0x370] sm:$0xf]  ;;  %v6605_v36 = vld [vmem:[#allocation14 + $0x394] sm:$0xf0] }
 0x19f   :  { %v1211_v49 = vmax.f32 %v1193_v39, 0.0  ;;  %v1212_v50 = vmax.f32 %v1207_v40, 0.0  ;;  %v5369_v39 = vor.u32 %v6639_v30, %v5368_v29  ;;  %v6621_v40 = vld [vmem:[#allocation14 + $0x614] sm:$0xf0]  ;;  %v5250_v29 = vld [vmem:[#allocation14 + $0x438] sm:$0xf0] }
 0x1a4   :  { %v1194_v41 = vpop.f32.mrf.mxu2  ;;  %v1208_v42 = vpop.f32.mrf.mxu3 }
 0x1a5   :  { %v1195_v44 = vadd.f32 %v1194_v41, %v1099_v37  ;;  %v1209_v45 = vadd.f32 %v1208_v42, %v1100_v38  ;;  %v5305_v37 = vor.u32 %v6623_v28, %v5304_v26  ;;  %v5296_v38 = vld [vmem:[#allocation14 + $0x5f0] sm:$0xf]  ;;  %v6637_v42 = vld [vmem:[#allocation14 + $0x894] sm:$0xf0]  ;;  %v6635_v26 = vld [vmem:[#allocation14 + $0x844] sm:$0xf0] }
 0x1a6   :  { %v5360_v41 = vld [vmem:[#allocation14 + $0x870] sm:$0xf]  ;;  %v6608_v28 = vld [vmem:[#allocation14 + $0x414] sm:$0xf] }
 0x1a7   :  { %v1213_v53 = vmax.f32 %v1195_v44, 0.0  ;;  %v1214_v54 = vmax.f32 %v1209_v45, 0.0  ;;  %v5160_v44 = vld [vmem:[#allocation14 + $0xa0] sm:$0xf]  ;;  %v5233_v45 = vor.u32 %v6605_v36, %v5232_v35  ;;  %v5253_v30 = vor.u32 %v6608_v28, %v5250_v29  ;;  %v5170_v35 = vld [vmem:[#allocation14 + $0x118] sm:$0xf0] }
 0x1a8   :  { %v6628_v36 = vld [vmem:[#allocation14 + $0x734] sm:$0xf]  ;;  %v5370_v28 = vld [vmem:[#allocation14 + $0x8e8] sm:$0xf0] }
 0x1a9   :  { %v7306_v58 = vpack.c.bf16 %v1213_v53, %v1211_v49  ;;  %v7308_v57 = vpack.c.bf16 %v1214_v54, %v1212_v50  ;;  %v5297_v49 = vor.u32 %v6621_v40, %v5296_v38  ;;  %v5361_v50 = vor.u32 %v6637_v42, %v5360_v41  ;;  %v5152_v54 = vld [vmem:[#allocation14 + $0x50] sm:$0xf]  ;;  %v5330_v38 = vld [vmem:[#allocation14 + $0x758] sm:$0xf0]  ;;  %v6633_v40 = vld [vmem:[#allocation14 + $0x7f4] sm:$0xf0] }
 0x1aa   :  { %v5161_v53 = vor.u32 %v6587_v46, %v5160_v44  ;;  %v5153_v0 = vor.u32 %v6585_v56, %v5152_v54  ;;  %v5333_v41 = vor.u32 %v6628_v36, %v5330_v38  ;;  %v5242_v44 = vld [vmem:[#allocation14 + $0x3e8] sm:$0xf0]  ;;  %v6586_v46 = vld [vmem:[#allocation14 + $0xa4] sm:$0xf]  ;;  %v5337_v54 = vor.u32 %v6631_v52, %v5336_v51  ;;  %v5234_v56 = vld [vmem:[#allocation14 + $0x398] sm:$0xf0] }
 0x1ab   :  { %1619 = vmatmul.bf16.vlgmr.msrb.gmra.mxu0 %v7306_v58  ;;  %1633 = vmatmul.bf16.vlgmr.msrb.gmra.mxu1 %v7308_v57  ;;  %v6616_v36 = vld [vmem:[#allocation14 + $0x554] sm:$0xf] }
 0x1ac   :  { %1647 = vmatmul.bf16.vlgmr.msrb.gmra.mxu2 %v7306_v58  ;;  %1661 = vmatmul.bf16.vlgmr.msrb.gmra.mxu3 %v7308_v57 }
 0x1ad   :  { %2125 = vmatpush.bf16.msrb.mxu0 %v5201_v60  ;;  %2139 = vmatpush.bf16.msrb.mxu1 %v5265_v62  ;;  %v5216_v60 = vld [vmem:[#allocation14 + $0x2d0] sm:$0xf] }
 0x1ae   :  { %2153 = vmatpush.bf16.msrb.mxu2 %v5329_v1  ;;  %2167 = vmatpush.bf16.msrb.mxu3 %v5393_v3  ;;  %v5280_v62 = vld [vmem:[#allocation14 + $0x550] sm:$0xf]  ;;  %v5144_v1 = vld [vmem:[#allocation14] sm:$0xf]  ;;  %v5217_v2 = vor.u32 %v6601_v59, %v5216_v60  ;;  %v6644_v60 = vld [vmem:[#allocation14 + $0x9b4] sm:$0xf] }
 0x1af   :  { %v5208_v3 = vld [vmem:[#allocation14 + $0x280] sm:$0xf]  ;;  %v5281_v6 = vor.u32 %v6617_v63, %v5280_v62  ;;  %v6584_v63 = vld [vmem:[#allocation14 + $0x54] sm:$0xf] }
 0x1b1   :  { %2126 = vmatpush.bf16.msrb.mxu0 %v5193_v8  ;;  %2140 = vmatpush.bf16.msrb.mxu1 %v5257_v10  ;;  %v6612_v8 = vld [vmem:[#allocation14 + $0x4b4] sm:$0xf]  ;;  %v5209_v10 = vor.u32 %v6599_v5, %v5208_v3  ;;  %v6602_v3 = vld [vmem:[#allocation14 + $0x324] sm:$0xf]  ;;  %v5226_v5 = vld [vmem:[#allocation14 + $0x348] sm:$0xf0] }
 0x1b2   :  { %2154 = vmatpush.bf16.msrb.mxu2 %v5321_v13  ;;  %2168 = vmatpush.bf16.msrb.mxu3 %v5385_v15  ;;  %v5269_v13 = vor.u32 %v6612_v8, %v5266_v4  ;;  %v6610_v15 = vld [vmem:[#allocation14 + $0x464] sm:$0xf]  ;;  %v5386_v8 = vld [vmem:[#allocation14 + $0x988] sm:$0xf0] }
 0x1b3   :  { %v5261_v18 = vor.u32 %v6610_v15, %v5258_v16  ;;  %v6600_v15 = vld [vmem:[#allocation14 + $0x2d4] sm:$0xf]  ;;  %v5218_v16 = vld [vmem:[#allocation14 + $0x2f8] sm:$0xf0] }
 0x1b5   :  { %2127 = vmatpush.bf16.msrb.mxu0 %v5185_v19  ;;  %2141 = vmatpush.bf16.msrb.mxu1 %v5249_v22  ;;  %v6592_v19 = vld [vmem:[#allocation14 + $0x194] sm:$0xf]  ;;  %v6590_v22 = vld [vmem:[#allocation14 + $0x144] sm:$0xf] }
 0x1b6   :  { %2155 = vmatpush.bf16.msrb.mxu2 %v5313_v25  ;;  %2169 = vmatpush.bf16.msrb.mxu3 %v5377_v27  ;;  %v5189_v21 = vor.u32 %v6592_v19, %v5186_v20  ;;  %v5181_v24 = vor.u32 %v6590_v22, %v5178_v23  ;;  %v5352_v25 = vld [vmem:[#allocation14 + $0x820] sm:$0xf]  ;;  %v5378_v19 = vld [vmem:[#allocation14 + $0x938] sm:$0xf0] }
 0x1b7   :  { %v5353_v27 = vor.u32 %v6635_v26, %v5352_v25  ;;  %v5298_v22 = vld [vmem:[#allocation14 + $0x618] sm:$0xf0]  ;;  %v5210_v25 = vld [vmem:[#allocation14 + $0x2a8] sm:$0xf0]  ;;  %v6638_v26 = vld [vmem:[#allocation14 + $0x8c4] sm:$0xf] }
 0x1b8   :  { %v5373_v29 = vor.u32 %v6638_v26, %v5370_v28  ;;  %v5512_v28 = vld [vmem:[#allocation14 + $0x468] sm:$0xf] }
 0x1b9   :  { %2128 = vmatpush.bf16.msrb.mxu0 %v5177_v31  ;;  %2142 = vmatpush.bf16.msrb.mxu1 %v5241_v34  ;;  %v5272_v31 = vld [vmem:[#allocation14 + $0x500] sm:$0xf]  ;;  %v6588_v34 = vld [vmem:[#allocation14 + $0xf4] sm:$0xf] }
 0x1ba   :  { %2156 = vmatpush.bf16.msrb.mxu2 %v5305_v37  ;;  %2170 = vmatpush.bf16.msrb.mxu3 %v5369_v39  ;;  %v5273_v33 = vor.u32 %v6615_v32, %v5272_v31  ;;  %v5173_v37 = vor.u32 %v6588_v34, %v5170_v35  ;;  %v5344_v39 = vld [vmem:[#allocation14 + $0x7d0] sm:$0xf]  ;;  %v5290_v31 = vld [vmem:[#allocation14 + $0x5c8] sm:$0xf0]  ;;  %v5362_v34 = vld [vmem:[#allocation14 + $0x898] sm:$0xf0] }
 0x1bb   :  { %1675 = vmatmul.bf16.vlgmr.msra.gmra.mxu0 %v7306_v58  ;;  %1689 = vmatmul.bf16.vlgmr.msra.gmra.mxu1 %v7308_v57  ;;  %v5345_v42 = vor.u32 %v6633_v40, %v5344_v39  ;;  %v6634_v39 = vld [vmem:[#allocation14 + $0x824] sm:$0xf]  ;;  %v5354_v40 = vld [vmem:[#allocation14 + $0x848] sm:$0xf0] }
 0x1bc   :  { %1703 = vmatmul.bf16.vlgmr.msra.gmra.mxu2 %v7306_v58  ;;  %1717 = vmatmul.bf16.vlgmr.msra.gmra.mxu3 %v7308_v57  ;;  %v6583_v58 = vld [vmem:[#allocation14 + $0x24] sm:$0xf0]  ;;  %v6596_v57 = vld [vmem:[#allocation14 + $0x234] sm:$0xf] }
 0x1bd   :  { %2129 = vmatpush.bf16.msrb.mxu0 %v5169_v43  ;;  %2143 = vmatpush.bf16.msrb.mxu1 %v5233_v45  ;;  %v5145_v9 = vor.u32 %v6583_v58, %v5144_v1  ;;  %v5205_v11 = vor.u32 %v6596_v57, %v5202_v7  ;;  %v6606_v43 = vld [vmem:[#allocation14 + $0x3c4] sm:$0xf]  ;;  %v6624_v1 = vld [vmem:[#allocation14 + $0x694] sm:$0xf]  ;;  %v5229_v7 = vor.u32 %v6602_v3, %v5226_v5 }
 0x1be   :  { %2157 = vmatpush.bf16.msrb.mxu2 %v5297_v49  ;;  %2171 = vmatpush.bf16.msrb.mxu3 %v5361_v50  ;;  %v5245_v45 = vor.u32 %v6606_v43, %v5242_v44  ;;  %v5165_v49 = vor.u32 %v6586_v46, %v5162_v47  ;;  %v5322_v50 = vld [vmem:[#allocation14 + $0x708] sm:$0xf0]  ;;  %v6614_v43 = vld [vmem:[#allocation14 + $0x504] sm:$0xf] }
 0x1bf   :  { %v5274_v44 = vld [vmem:[#allocation14 + $0x528] sm:$0xf0] }
 0x1c0   :  { %v5277_v47 = vor.u32 %v6614_v43, %v5274_v44  ;;  %v6673_v43 = vld [vmem:[#allocation14 + $0x43c] sm:$0xf0] }
 0x1c1   :  { %2130 = vmatpush.bf16.msrb.mxu0 %v5161_v53  ;;  %2144 = vmatpush.bf16.msrb.mxu1 %v5225_v55  ;;  %v5325_v53 = vor.u32 %v6626_v48, %v5322_v50  ;;  %v6604_v55 = vld [vmem:[#allocation14 + $0x374] sm:$0xf]  ;;  %v5346_v50 = vld [vmem:[#allocation14 + $0x7f8] sm:$0xf0] }
 0x1c2   :  { %2158 = vmatpush.bf16.msrb.mxu2 %v5289_v61  ;;  %2172 = vmatpush.bf16.msrb.mxu3 %v5353_v27  ;;  %v5237_v59 = vor.u32 %v6604_v55, %v5234_v56  ;;  %v5394_v61 = vld [vmem:[#allocation14 + $0x9d8] sm:$0xf0] }
 0x1c3   :  { %v5397_v62 = vor.u32 %v6644_v60, %v5394_v61 }
 0x1c5   :  { %2131 = vmatpush.bf16.msrb.mxu0 %v5153_v0  ;;  %2145 = vmatpush.bf16.msrb.mxu1 %v5217_v2  ;;  %v5154_v0 = vld [vmem:[#allocation14 + $0x78] sm:$0xf0] }
 0x1c6   :  { %2159 = vmatpush.bf16.msrb.mxu2 %v5281_v6  ;;  %2173 = vmatpush.bf16.msrb.mxu3 %v5345_v42  ;;  %v5157_v58 = vor.u32 %v6584_v63, %v5154_v0  ;;  %v5314_v2 = vld [vmem:[#allocation14 + $0x6b8] sm:$0xf0]  ;;  %v6642_v6 = vld [vmem:[#allocation14 + $0x964] sm:$0xf]  ;;  %v5357_v42 = vor.u32 %v6634_v39, %v5354_v40 }
 0x1c7   :  { %v5317_v57 = vor.u32 %v6624_v1, %v5314_v2  ;;  %v5389_v4 = vor.u32 %v6642_v6, %v5386_v8  ;;  %v6661_v2 = vld [vmem:[#allocation14 + $0x25c] sm:$0xf0] }
 0x1c9   :  { %2132 = vmatpush.bf16.msrb.mxu0 %v5145_v9  ;;  %2146 = vmatpush.bf16.msrb.mxu1 %v5209_v10  ;;  %v6582_v9 = vld [vmem:[#allocation14 + $0x4] sm:$0xf]  ;;  %v5146_v10 = vld [vmem:[#allocation14 + $0x28] sm:$0xf0] }
 0x1ca   :  { %2160 = vmatpush.bf16.msrb.mxu2 %v5273_v33  ;;  %2174 = vmatpush.bf16.msrb.mxu3 %v5337_v54  ;;  %v5149_v12 = vor.u32 %v6582_v9, %v5146_v10  ;;  %v6636_v33 = vld [vmem:[#allocation14 + $0x874] sm:$0xf]  ;;  %v5338_v54 = vld [vmem:[#allocation14 + $0x7a8] sm:$0xf0]  ;;  %v5448_v9 = vld [vmem:[#allocation14 + $0x1e8] sm:$0xf] }
 0x1cb   :  { %v5365_v35 = vor.u32 %v6636_v33, %v5362_v34  ;;  %v6659_v10 = vld [vmem:[#allocation14 + $0x20c] sm:$0xf0] }
 0x1cc   :  { %v6655_v33 = vld [vmem:[#allocation14 + $0x16c] sm:$0xf0] }
 0x1cd   :  { %2181 = vmatpush.bf16.msra.mxu0 %v5205_v11  ;;  %2195 = vmatpush.bf16.msra.mxu1 %v5269_v13  ;;  %v6622_v11 = vld [vmem:[#allocation14 + $0x644] sm:$0xf]  ;;  %v5306_v13 = vld [vmem:[#allocation14 + $0x668] sm:$0xf0] }
 0x1ce   :  { %2209 = vmatpush.bf16.msra.mxu2 %v5333_v41  ;;  %2223 = vmatpush.bf16.msra.mxu3 %v5397_v62  ;;  %v5309_v14 = vor.u32 %v6622_v11, %v5306_v13  ;;  %v7318_v41 = vld [vmem:[#allocation13] sm:$0xf] }
 0x1cf   :  { %v1283_v48 = vperm.slane %v7318_v41, 0  ;;  %v1286_v34 = vperm.slane %v7318_v41, 3 }
 0x1d1   :  { %2182 = vmatpush.bf16.msra.mxu0 %v5197_v17  ;;  %2196 = vmatpush.bf16.msra.mxu1 %v5261_v18  ;;  %v5221_v17 = vor.u32 %v6600_v15, %v5218_v16  ;;  %v6640_v18 = vld [vmem:[#allocation14 + $0x914] sm:$0xf]  ;;  %v1285_v15 = vperm.slane %v7318_v41, 2 }
 0x1d2   :  { %2210 = vmatpush.bf16.msra.mxu2 %v5325_v53  ;;  %2224 = vmatpush.bf16.msra.mxu3 %v5389_v4  ;;  %v5381_v20 = vor.u32 %v6640_v18, %v5378_v19  ;;  %v6630_v53 = vld [vmem:[#allocation14 + $0x784] sm:$0xf]  ;;  %v5520_v18 = vld [vmem:[#allocation14 + $0x4b8] sm:$0xf]  ;;  %v6677_v19 = vld [vmem:[#allocation14 + $0x4dc] sm:$0xf0] }
 0x1d3   :  { %v5341_v60 = vor.u32 %v6630_v53, %v5338_v54  ;;  %v5496_v53 = vld [vmem:[#allocation14 + $0x3c8] sm:$0xf]  ;;  %v6671_v54 = vld [vmem:[#allocation14 + $0x3ec] sm:$0xf0] }
 0x1d5   :  { %2183 = vmatpush.bf16.msra.mxu0 %v5189_v21  ;;  %2197 = vmatpush.bf16.msra.mxu1 %v5253_v30  ;;  %v6620_v21 = vld [vmem:[#allocation14 + $0x5f4] sm:$0xf]  ;;  %v6618_v30 = vld [vmem:[#allocation14 + $0x5a4] sm:$0xf] }
 0x1d6   :  { %2211 = vmatpush.bf16.msra.mxu2 %v5317_v57  ;;  %v5301_v23 = vor.u32 %v6620_v21, %v5298_v22  ;;  %2225 = vmatpush.bf16.msra.mxu3 %v5381_v20  ;;  %v5293_v32 = vor.u32 %v6618_v30, %v5290_v31  ;;  %v5440_v20 = vld [vmem:[#allocation14 + $0x198] sm:$0xf]  ;;  %v6657_v21 = vld [vmem:[#allocation14 + $0x1bc] sm:$0xf0] }
 0x1d9   :  { %2184 = vmatpush.bf16.msra.mxu0 %v5181_v24  ;;  %2198 = vmatpush.bf16.msra.mxu1 %v5245_v45  ;;  %v6598_v24 = vld [vmem:[#allocation14 + $0x284] sm:$0xf] }
 0x1da   :  { %2212 = vmatpush.bf16.msra.mxu2 %v5309_v14  ;;  %v5213_v27 = vor.u32 %v6598_v24, %v5210_v25  ;;  %2226 = vmatpush.bf16.msra.mxu3 %v5373_v29  ;;  %v5521_v25 = vor.u32 %v6677_v19, %v5520_v18  ;;  %v6675_v29 = vld [vmem:[#allocation14 + $0x48c] sm:$0xf0]  ;;  %v5480_v18 = vld [vmem:[#allocation14 + $0x328] sm:$0xf] }
 0x1dd   :  { %2185 = vmatpush.bf16.msra.mxu0 %v5173_v37  ;;  %2199 = vmatpush.bf16.msra.mxu1 %v5237_v59  ;;  %v5282_v37 = vld [vmem:[#allocation14 + $0x578] sm:$0xf0]  ;;  %v1284_v59 = vperm.slane %v7318_v41, 1 }
 0x1de   :  { %2213 = vmatpush.bf16.msra.mxu2 %v5301_v23  ;;  %2227 = vmatpush.bf16.msra.mxu3 %v5365_v35  ;;  %v5285_v38 = vor.u32 %v6616_v36, %v5282_v37 }
 0x1e1   :  { %2186 = vmatpush.bf16.msra.mxu0 %v5165_v49  ;;  %2200 = vmatpush.bf16.msra.mxu1 %v5229_v7  ;;  %v6632_v49 = vld [vmem:[#allocation14 + $0x7d4] sm:$0xf] }
 0x1e2   :  { %2214 = vmatpush.bf16.msra.mxu2 %v5293_v32  ;;  %2228 = vmatpush.bf16.msra.mxu3 %v5357_v42  ;;  %v5349_v51 = vor.u32 %v6632_v49, %v5346_v50  ;;  %v5432_v32 = vld [vmem:[#allocation14 + $0x148] sm:$0xf]  ;;  %v5504_v42 = vld [vmem:[#allocation14 + $0x418] sm:$0xf]  ;;  %v6653_v49 = vld [vmem:[#allocation14 + $0x11c] sm:$0xf0] }
 0x1e3   :  { %v5433_v40 = vor.u32 %v6655_v33, %v5432_v32  ;;  %v6660_v32 = vld [vmem:[#allocation14 + $0x23c] sm:$0xf]  ;;  %v5458_v33 = vld [vmem:[#allocation14 + $0x260] sm:$0xf0] }
 0x1e5   :  { %2187 = vmatpush.bf16.msra.mxu0 %v5157_v58  ;;  %2201 = vmatpush.bf16.msra.mxu1 %v5221_v17  ;;  %v5456_v58 = vld [vmem:[#allocation14 + $0x238] sm:$0xf]  ;;  %v5449_v17 = vor.u32 %v6659_v10, %v5448_v9 }
 0x1e6   :  { %2215 = vmatpush.bf16.msra.mxu2 %v5285_v38  ;;  %2229 = vmatpush.bf16.msra.mxu3 %v5349_v51  ;;  %v5457_v6 = vor.u32 %v6661_v2, %v5456_v58  ;;  %v5513_v38 = vor.u32 %v6675_v29, %v5512_v28  ;;  %v5505_v51 = vor.u32 %v6673_v43, %v5504_v42  ;;  %v5568_v10 = vld [vmem:[#allocation14 + $0x698] sm:$0xf]  ;;  %v5400_v28 = vld [vmem:[#allocation14 + $0x8] sm:$0xf]  ;;  %v6647_v29 = vld [vmem:[#allocation14 + $0x2c] sm:$0xf0] }
 0x1e7   :  { %v5497_v2 = vor.u32 %v6671_v54, %v5496_v53  ;;  %v5552_v42 = vld [vmem:[#allocation14 + $0x5f8] sm:$0xf]  ;;  %v6685_v43 = vld [vmem:[#allocation14 + $0x61c] sm:$0xf0]  ;;  %v5522_v53 = vld [vmem:[#allocation14 + $0x4e0] sm:$0xf0] }
 0x1e9   :  { %2188 = vmatpush.bf16.msra.mxu0 %v5149_v12  ;;  %2202 = vmatpush.bf16.msra.mxu1 %v5213_v27  ;;  %v5441_v27 = vor.u32 %v6657_v21, %v5440_v20  ;;  %v6667_v21 = vld [vmem:[#allocation14 + $0x34c] sm:$0xf0] }
 0x1ea   :  { %2216 = vmatpush.bf16.msra.mxu2 %v5277_v47  ;;  %2230 = vmatpush.bf16.msra.mxu3 %v5341_v60 }
 0x228   :  { %v1620_v45 = vpop.f32.mrf.mxu0  ;;  %v1634_v46 = vpop.f32.mrf.mxu1 }
 0x229   :  { %v1621_v52 = vadd.f32 %v1620_v45, %v1283_v48  ;;  %v5584_v45 = vld [vmem:[#allocation14 + $0x738] sm:$0xf] }
 0x22b   :  { %v1635_v63 = vadd.f32 %v1634_v46, %v1621_v52  ;;  %v6693_v46 = vld [vmem:[#allocation14 + $0x75c] sm:$0xf0] }
 0x22c   :  { %v5585_v52 = vor.u32 %v6693_v46, %v5584_v45  ;;  %v6658_v46 = vld [vmem:[#allocation14 + $0x1ec] sm:$0xf] }
 0x22d   :  { %v1723_v3 = vmax.f32 %v1635_v63, 0.0 }
 0x22f   :  { %v1648_v55 = vpop.f32.mrf.mxu2  ;;  %v1662_v56 = vpop.f32.mrf.mxu3 }
 0x230   :  { %v1622_v61 = vpop.f32.mrf.mxu0  ;;  %v1636_v62 = vpop.f32.mrf.mxu1  ;;  %v1649_v57 = vadd.f32 %v1648_v55, %v1284_v59 }
 0x231   :  { %v1623_v0 = vadd.f32 %v1622_v61, %v1283_v48  ;;  %v5424_v48 = vld [vmem:[#allocation14 + $0xf8] sm:$0xf]  ;;  %v6691_v61 = vld [vmem:[#allocation14 + $0x70c] sm:$0xf0] }
 0x232   :  { %v1663_v11 = vadd.f32 %v1662_v56, %v1649_v57  ;;  %v5425_v60 = vor.u32 %v6653_v49, %v5424_v48  ;;  %v5488_v57 = vld [vmem:[#allocation14 + $0x378] sm:$0xf]  ;;  %v5464_v48 = vld [vmem:[#allocation14 + $0x288] sm:$0xf]  ;;  %v6663_v49 = vld [vmem:[#allocation14 + $0x2ac] sm:$0xf0] }
 0x233   :  { %v1637_v1 = vadd.f32 %v1636_v62, %v1623_v0  ;;  %v5416_v0 = vld [vmem:[#allocation14 + $0xa8] sm:$0xf] }
 0x234   :  { %v1724_v22 = vmax.f32 %v1663_v11, 0.0  ;;  %v6689_v11 = vld [vmem:[#allocation14 + $0x6bc] sm:$0xf0] }
 0x235   :  { %v1727_v5 = vmax.f32 %v1637_v1, 0.0  ;;  %v6651_v1 = vld [vmem:[#allocation14 + $0xcc] sm:$0xf0]  ;;  %v5569_v20 = vor.u32 %v6689_v11, %v5568_v10  ;;  %v5434_v10 = vld [vmem:[#allocation14 + $0x170] sm:$0xf0] }
 0x236   :  { %v5417_v9 = vor.u32 %v6651_v1, %v5416_v0  ;;  %v5616_v1 = vld [vmem:[#allocation14 + $0x878] sm:$0xf] }
 0x237   :  { %v7322_v7 = vpack.c.bf16 %v1727_v5, %v1723_v3  ;;  %v1650_v8 = vpop.f32.mrf.mxu2  ;;  %v1664_v4 = vpop.f32.mrf.mxu3 }
 0x238   :  { %v1651_v12 = vadd.f32 %v1650_v8, %v1284_v59  ;;  %v1676_v13 = vpop.f32.mrf.mxu0  ;;  %v1690_v14 = vpop.f32.mrf.mxu1  ;;  %v5576_v59 = vld [vmem:[#allocation14 + $0x6e8] sm:$0xf]  ;;  %v5648_v8 = vld [vmem:[#allocation14 + $0x9b8] sm:$0xf] }
 0x239   :  { %2133 = vmatmul.bf16.vlgmr.msrb.gmra.mxu0 %v7322_v7  ;;  %v1677_v24 = vadd.f32 %v1676_v13, %v1285_v15  ;;  %v5577_v5 = vor.u32 %v6691_v61, %v5576_v59  ;;  %v5465_v59 = vor.u32 %v6663_v49, %v5464_v48 }
 0x23a   :  { %v1665_v16 = vadd.f32 %v1664_v4, %v1651_v12  ;;  %2677 = vmatpush.bf16.msrb.mxu0 %v5457_v6  ;;  %v6669_v6 = vld [vmem:[#allocation14 + $0x39c] sm:$0xf0] }
 0x23b   :  { %v1691_v36 = vadd.f32 %v1690_v14, %v1677_v24  ;;  %v6709_v4 = vld [vmem:[#allocation14 + $0x9dc] sm:$0xf0]  ;;  %v5408_v14 = vld [vmem:[#allocation14 + $0x58] sm:$0xf] }
 0x23c   :  { %v1728_v23 = vmax.f32 %v1665_v16, 0.0  ;;  %v5489_v16 = vor.u32 %v6669_v6, %v5488_v57  ;;  %v6674_v57 = vld [vmem:[#allocation14 + $0x46c] sm:$0xf]  ;;  %v5536_v6 = vld [vmem:[#allocation14 + $0x558] sm:$0xf] }
 0x23d   :  { %v1725_v50 = vmax.f32 %v1691_v36, 0.0  ;;  %v6665_v36 = vld [vmem:[#allocation14 + $0x2fc] sm:$0xf0] }
 0x23e   :  { %v7326_v26 = vpack.c.bf16 %v1728_v23, %v1724_v22  ;;  %2678 = vmatpush.bf16.msrb.mxu0 %v5449_v17  ;;  %v5649_v17 = vor.u32 %v6709_v4, %v5648_v8  ;;  %v5640_v22 = vld [vmem:[#allocation14 + $0x968] sm:$0xf]  ;;  %v6707_v23 = vld [vmem:[#allocation14 + $0x98c] sm:$0xf0]  ;;  %v6681_v8 = vld [vmem:[#allocation14 + $0x57c] sm:$0xf0] }
 0x23f   :  { %v1704_v30 = vpop.f32.mrf.mxu2  ;;  %v1718_v31 = vpop.f32.mrf.mxu3 }
 0x240   :  { %2147 = vmatmul.bf16.vlgmr.msrb.gmra.mxu1 %v7326_v26  ;;  %v1678_v35 = vpop.f32.mrf.mxu0  ;;  %v1692_v39 = vpop.f32.mrf.mxu1  ;;  %v1705_v47 = vadd.f32 %v1704_v30, %v1286_v34  ;;  %v5481_v30 = vor.u32 %v6667_v21, %v5480_v18  ;;  %v5528_v18 = vld [vmem:[#allocation14 + $0x508] sm:$0xf]  ;;  %v6652_v21 = vld [vmem:[#allocation14 + $0xfc] sm:$0xf] }
 0x241   :  { %2691 = vmatpush.bf16.msrb.mxu1 %v5521_v25  ;;  %v1679_v37 = vadd.f32 %v1678_v35, %v1285_v15  ;;  %v6649_v15 = vld [vmem:[#allocation14 + $0x7c] sm:$0xf0]  ;;  %v5560_v25 = vld [vmem:[#allocation14 + $0x648] sm:$0xf] }
 0x242   :  { %2679 = vmatpush.bf16.msrb.mxu0 %v5441_v27  ;;  %v1719_v62 = vadd.f32 %v1718_v31, %v1705_v47  ;;  %v5409_v24 = vor.u32 %v6649_v15, %v5408_v14  ;;  %v6687_v27 = vld [vmem:[#allocation14 + $0x66c] sm:$0xf0]  ;;  %v5641_v31 = vor.u32 %v6707_v23, %v5640_v22  ;;  %v5450_v47 = vld [vmem:[#allocation14 + $0x210] sm:$0xf0]  ;;  %v5537_v14 = vor.u32 %v6681_v8, %v5536_v6  ;;  %v6672_v15 = vld [vmem:[#allocation14 + $0x41c] sm:$0xf] }
 0x243   :  { %v1693_v44 = vadd.f32 %v1692_v39, %v1679_v37  ;;  %v5561_v35 = vor.u32 %v6687_v27, %v5560_v25  ;;  %v5632_v37 = vld [vmem:[#allocation14 + $0x918] sm:$0xf]  ;;  %v5401_v39 = vor.u32 %v6647_v29, %v5400_v28  ;;  %v5453_v54 = vor.u32 %v6658_v46, %v5450_v47  ;;  %v5426_v23 = vld [vmem:[#allocation14 + $0x120] sm:$0xf0]  ;;  %v6697_v29 = vld [vmem:[#allocation14 + $0x7fc] sm:$0xf0] }
 0x244   :  { %v1726_v12 = vmax.f32 %v1719_v62, 0.0  ;;  %v6656_v62 = vld [vmem:[#allocation14 + $0x19c] sm:$0xf]  ;;  %v5586_v25 = vld [vmem:[#allocation14 + $0x760] sm:$0xf0] }
 0x245   :  { %v1729_v41 = vmax.f32 %v1693_v44, 0.0  ;;  %2692 = vmatpush.bf16.msrb.mxu1 %v5513_v38  ;;  %v6705_v38 = vld [vmem:[#allocation14 + $0x93c] sm:$0xf0]  ;;  %v5600_v28 = vld [vmem:[#allocation14 + $0x7d8] sm:$0xf] }
 0x246   :  { %2680 = vmatpush.bf16.msrb.mxu0 %v5433_v40  ;;  %v5461_v40 = vor.u32 %v6660_v32, %v5458_v33  ;;  %v5633_v45 = vor.u32 %v6705_v38, %v5632_v37  ;;  %v5498_v32 = vld [vmem:[#allocation14 + $0x3f0] sm:$0xf0]  ;;  %v5429_v33 = vor.u32 %v6652_v21, %v5426_v23  ;;  %v6690_v38 = vld [vmem:[#allocation14 + $0x6ec] sm:$0xf]  ;;  %v6708_v46 = vld [vmem:[#allocation14 + $0x9bc] sm:$0xf] }
 0x247   :  { %v7330_v55 = vpack.c.bf16 %v1729_v41, %v1725_v50  ;;  %v1706_v56 = vpop.f32.mrf.mxu2  ;;  %v1720_v58 = vpop.f32.mrf.mxu3  ;;  %v5624_v50 = vld [vmem:[#allocation14 + $0x8c8] sm:$0xf]  ;;  %v6703_v41 = vld [vmem:[#allocation14 + $0x8ec] sm:$0xf0]  ;;  %v5418_v37 = vld [vmem:[#allocation14 + $0xd0] sm:$0xf0] }
 0x248   :  { %v1707_v63 = vadd.f32 %v1706_v56, %v1286_v34  ;;  %v5472_v34 = vld [vmem:[#allocation14 + $0x2d8] sm:$0xf]  ;;  %v5544_v56 = vld [vmem:[#allocation14 + $0x5a8] sm:$0xf]  ;;  %v5625_v61 = vor.u32 %v6703_v41, %v5624_v50  ;;  %v5650_v47 = vld [vmem:[#allocation14 + $0x9e0] sm:$0xf0] }
 0x249   :  { %2693 = vmatpush.bf16.msrb.mxu1 %v5505_v51  ;;  %2161 = vmatmul.bf16.vlgmr.msrb.gmra.mxu2 %v7330_v55  ;;  %v5473_v44 = vor.u32 %v6665_v36, %v5472_v34  ;;  %v5553_v51 = vor.u32 %v6685_v43, %v5552_v42  ;;  %v5601_v36 = vor.u32 %v6697_v29, %v5600_v28  ;;  %v5592_v42 = vld [vmem:[#allocation14 + $0x788] sm:$0xf]  ;;  %v6695_v43 = vld [vmem:[#allocation14 + $0x7ac] sm:$0xf0]  ;;  %v6648_v50 = vld [vmem:[#allocation14 + $0x5c] sm:$0xf] }
 0x24a   :  { %v1721_v3 = vadd.f32 %v1720_v58, %v1707_v63  ;;  %2189 = vmatmul.bf16.vlgmr.msra.gmra.mxu0 %v7322_v7  ;;  %2705 = vmatpush.bf16.msrb.mxu2 %v5585_v52  ;;  %v6676_v52 = vld [vmem:[#allocation14 + $0x4bc] sm:$0xf]  ;;  %v5442_v63 = vld [vmem:[#allocation14 + $0x1c0] sm:$0xf0]  ;;  %v6701_v58 = vld [vmem:[#allocation14 + $0x89c] sm:$0xf0]  ;;  %v5593_v41 = vor.u32 %v6695_v43, %v5592_v42 }
 0x24b   :  { %2681 = vmatpush.bf16.msrb.mxu0 %v5425_v60  ;;  %v6683_v60 = vld [vmem:[#allocation14 + $0x5cc] sm:$0xf0]  ;;  %v5525_v0 = vor.u32 %v6676_v52, %v5522_v53  ;;  %v5617_v4 = vor.u32 %v6701_v58, %v5616_v1  ;;  %v6688_v52 = vld [vmem:[#allocation14 + $0x69c] sm:$0xf]  ;;  %v5570_v53 = vld [vmem:[#allocation14 + $0x6c0] sm:$0xf0] }
 0x24c   :  { %v1730_v13 = vmax.f32 %v1721_v3, 0.0  ;;  %v5514_v3 = vld [vmem:[#allocation14 + $0x490] sm:$0xf0]  ;;  %v6646_v1 = vld [vmem:[#allocation14 + $0xc] sm:$0xf] }
 0x24d   :  { %2694 = vmatpush.bf16.msrb.mxu1 %v5497_v2  ;;  %v5545_v2 = vor.u32 %v6683_v60, %v5544_v56  ;;  %v5517_v11 = vor.u32 %v6674_v57, %v5514_v3  ;;  %v5653_v56 = vor.u32 %v6708_v46, %v5650_v47  ;;  %v6666_v60 = vld [vmem:[#allocation14 + $0x32c] sm:$0xf]  ;;  %v5402_v58 = vld [vmem:[#allocation14 + $0x30] sm:$0xf0]  ;;  %v5712_v6 = vld [vmem:[#allocation14 + $0x240] sm:$0xf] }
 0x24e   :  { %v7334_v19 = vpack.c.bf16 %v1730_v13, %v1726_v12  ;;  %2706 = vmatpush.bf16.msrb.mxu2 %v5577_v5  ;;  %v5445_v5 = vor.u32 %v6656_v62, %v5442_v63  ;;  %v5608_v12 = vld [vmem:[#allocation14 + $0x828] sm:$0xf]  ;;  %v6699_v13 = vld [vmem:[#allocation14 + $0x84c] sm:$0xf0]  ;;  %v5642_v62 = vld [vmem:[#allocation14 + $0x990] sm:$0xf0] }
 0x24f   :  { %2682 = vmatpush.bf16.msrb.mxu0 %v5417_v9  ;;  %v6654_v9 = vld [vmem:[#allocation14 + $0x14c] sm:$0xf]  ;;  %v5609_v22 = vor.u32 %v6699_v13, %v5608_v12  ;;  %v5562_v57 = vld [vmem:[#allocation14 + $0x670] sm:$0xf0]  ;;  %v6725_v8 = vld [vmem:[#allocation14 + $0x264] sm:$0xf0]  ;;  %v5405_v12 = vor.u32 %v6646_v1, %v5402_v58 }
 0x250   :  { %2175 = vmatmul.bf16.vlgmr.msrb.gmra.mxu3 %v7334_v19  ;;  %2203 = vmatmul.bf16.vlgmr.msra.gmra.mxu1 %v7326_v26  ;;  %v6723_v21 = vld [vmem:[#allocation14 + $0x214] sm:$0xf0]  ;;  %v5466_v23 = vld [vmem:[#allocation14 + $0x2b0] sm:$0xf0]  ;;  %v5776_v28 = vld [vmem:[#allocation14 + $0x4c0] sm:$0xf] }
 0x251   :  { %2695 = vmatpush.bf16.msrb.mxu1 %v5489_v16  ;;  %2719 = vmatpush.bf16.msrb.mxu3 %v5649_v17  ;;  %v5506_v16 = vld [vmem:[#allocation14 + $0x440] sm:$0xf0]  ;;  %v5437_v17 = vor.u32 %v6654_v9, %v5434_v10  ;;  %v6704_v10 = vld [vmem:[#allocation14 + $0x91c] sm:$0xf]  ;;  %v6741_v29 = vld [vmem:[#allocation14 + $0x4e4] sm:$0xf0] }
 0x252   :  { %2707 = vmatpush.bf16.msrb.mxu2 %v5569_v20  ;;  %v6679_v20 = vld [vmem:[#allocation14 + $0x52c] sm:$0xf0]  ;;  %v5509_v27 = vor.u32 %v6672_v15, %v5506_v16  ;;  %v5474_v9 = vld [vmem:[#allocation14 + $0x300] sm:$0xf0]  ;;  %v6684_v15 = vld [vmem:[#allocation14 + $0x5fc] sm:$0xf] }
 0x253   :  { %2683 = vmatpush.bf16.msrb.mxu0 %v5409_v24  ;;  %v6692_v24 = vld [vmem:[#allocation14 + $0x73c] sm:$0xf]  ;;  %v5554_v16 = vld [vmem:[#allocation14 + $0x620] sm:$0xf0]  ;;  %v5768_v42 = vld [vmem:[#allocation14 + $0x470] sm:$0xf] }
 0x254   :  { %v5589_v34 = vor.u32 %v6692_v24, %v5586_v25  ;;  %v6702_v24 = vld [vmem:[#allocation14 + $0x8cc] sm:$0xf]  ;;  %v5626_v25 = vld [vmem:[#allocation14 + $0x8f0] sm:$0xf0]  ;;  %v6739_v43 = vld [vmem:[#allocation14 + $0x494] sm:$0xf0] }
 0x255   :  { %2696 = vmatpush.bf16.msrb.mxu1 %v5481_v30  ;;  %2720 = vmatpush.bf16.msrb.mxu3 %v5641_v31  ;;  %v5529_v30 = vor.u32 %v6679_v20, %v5528_v18  ;;  %v6670_v31 = vld [vmem:[#allocation14 + $0x3cc] sm:$0xf]  ;;  %v5704_v20 = vld [vmem:[#allocation14 + $0x1f0] sm:$0xf]  ;;  %v5538_v46 = vld [vmem:[#allocation14 + $0x580] sm:$0xf0] }
 0x256   :  { %2708 = vmatpush.bf16.msrb.mxu2 %v5561_v35  ;;  %v6650_v35 = vld [vmem:[#allocation14 + $0xac] sm:$0xf]  ;;  %v6757_v1 = vld [vmem:[#allocation14 + $0x764] sm:$0xf0] }
 0x257   :  { %2684 = vmatpush.bf16.msrb.mxu0 %v5401_v39  ;;  %v5578_v39 = vld [vmem:[#allocation14 + $0x710] sm:$0xf0]  ;;  %v5421_v48 = vor.u32 %v6650_v35, %v5418_v37  ;;  %v5696_v35 = vld [vmem:[#allocation14 + $0x1a0] sm:$0xf]  ;;  %v5777_v37 = vor.u32 %v6741_v29, %v5776_v28 }
 0x258   :  { %v5581_v49 = vor.u32 %v6690_v38, %v5578_v39  ;;  %v6700_v38 = vld [vmem:[#allocation14 + $0x87c] sm:$0xf]  ;;  %v5618_v39 = vld [vmem:[#allocation14 + $0x8a0] sm:$0xf0] }
 0x259   :  { %2697 = vmatpush.bf16.msrb.mxu1 %v5473_v44  ;;  %2721 = vmatpush.bf16.msrb.mxu3 %v5633_v45  ;;  %v6668_v44 = vld [vmem:[#allocation14 + $0x37c] sm:$0xf]  ;;  %v5490_v45 = vld [vmem:[#allocation14 + $0x3a0] sm:$0xf0]  ;;  %v5621_v47 = vor.u32 %v6700_v38, %v5618_v39  ;;  %v6711_v39 = vld [vmem:[#allocation14 + $0x34] sm:$0xf0] }
 0x25a   :  { %2217 = vmatmul.bf16.vlgmr.msra.gmra.mxu2 %v7330_v55  ;;  %2685 = vmatmul.bf16.vlgmr.msrb.gmra.mxu0 %v7322_v7 }
 0x25b   :  { %2733 = vmatpush.bf16.msra.mxu0 %v5461_v40  ;;  %2709 = vmatpush.bf16.msrb.mxu2 %v5553_v51  ;;  %v5501_v40 = vor.u32 %v6670_v31, %v5498_v32  ;;  %v5410_v51 = vld [vmem:[#allocation14 + $0x80] sm:$0xf0]  ;;  %v6682_v31 = vld [vmem:[#allocation14 + $0x5ac] sm:$0xf]  ;;  %v5546_v32 = vld [vmem:[#allocation14 + $0x5d0] sm:$0xf0] }
 0x25c   :  { %v5413_v63 = vor.u32 %v6648_v50, %v5410_v51  ;;  %v5769_v50 = vor.u32 %v6739_v43, %v5768_v42  ;;  %v5610_v51 = vld [vmem:[#allocation14 + $0x850] sm:$0xf0]  ;;  %v6751_v42 = vld [vmem:[#allocation14 + $0x674] sm:$0xf0] }
 0x25d   :  { %2698 = vmatpush.bf16.msrb.mxu1 %v5465_v59  ;;  %2722 = vmatpush.bf16.msrb.mxu3 %v5625_v61  ;;  %v5482_v59 = vld [vmem:[#allocation14 + $0x350] sm:$0xf0]  ;;  %v6706_v61 = vld [vmem:[#allocation14 + $0x96c] sm:$0xf] }
 0x25e   :  { %v5485_v3 = vor.u32 %v6666_v60, %v5482_v59  ;;  %v6678_v60 = vld [vmem:[#allocation14 + $0x50c] sm:$0xf]  ;;  %v5530_v59 = vld [vmem:[#allocation14 + $0x530] sm:$0xf0] }
 0x25f   :  { %2734 = vmatpush.bf16.msra.mxu0 %v5453_v54  ;;  %2710 = vmatpush.bf16.msrb.mxu2 %v5545_v2  ;;  %v5493_v54 = vor.u32 %v6668_v44, %v5490_v45  ;;  %v6686_v2 = vld [vmem:[#allocation14 + $0x64c] sm:$0xf]  ;;  %v6680_v45 = vld [vmem:[#allocation14 + $0x55c] sm:$0xf] }
 0x260   :  { %2231 = vmatmul.bf16.vlgmr.msra.gmra.mxu3 %v7334_v19  ;;  %2699 = vmatmul.bf16.vlgmr.msrb.gmra.mxu1 %v7326_v26  ;;  %v5565_v13 = vor.u32 %v6686_v2, %v5562_v57  ;;  %v6696_v2 = vld [vmem:[#allocation14 + $0x7dc] sm:$0xf]  ;;  %v5602_v57 = vld [vmem:[#allocation14 + $0x800] sm:$0xf0] }
 0x261   :  { %2747 = vmatpush.bf16.msra.mxu1 %v5525_v0  ;;  %2723 = vmatpush.bf16.msrb.mxu3 %v5617_v4  ;;  %v5573_v0 = vor.u32 %v6688_v52, %v5570_v53  ;;  %v6664_v4 = vld [vmem:[#allocation14 + $0x2dc] sm:$0xf]  ;;  %v5541_v52 = vor.u32 %v6680_v45, %v5538_v46  ;;  %v5760_v53 = vld [vmem:[#allocation14 + $0x420] sm:$0xf]  ;;  %v6724_v45 = vld [vmem:[#allocation14 + $0x244] sm:$0xf] }
 0x262   :  { %v5714_v46 = vld [vmem:[#allocation14 + $0x268] sm:$0xf0] }
 0x263   :  { %2735 = vmatpush.bf16.msra.mxu0 %v5445_v5  ;;  %2711 = vmatpush.bf16.msrb.mxu2 %v5537_v14  ;;  %v5645_v5 = vor.u32 %v6706_v61, %v5642_v62  ;;  %v5713_v14 = vor.u32 %v6725_v8, %v5712_v6  ;;  %v5680_v61 = vld [vmem:[#allocation14 + $0x100] sm:$0xf]  ;;  %v6735_v6 = vld [vmem:[#allocation14 + $0x3f4] sm:$0xf0] }
 0x265   :  { %2748 = vmatpush.bf16.msra.mxu1 %v5517_v11  ;;  %2724 = vmatpush.bf16.msrb.mxu3 %v5609_v22  ;;  %v5634_v11 = vld [vmem:[#allocation14 + $0x940] sm:$0xf0]  ;;  %v6662_v22 = vld [vmem:[#allocation14 + $0x28c] sm:$0xf] }
 0x266   :  { %v5637_v18 = vor.u32 %v6704_v10, %v5634_v11  ;;  %v5605_v10 = vor.u32 %v6696_v2, %v5602_v57  ;;  %v6715_v11 = vld [vmem:[#allocation14 + $0xd4] sm:$0xf0]  ;;  %v5778_v2 = vld [vmem:[#allocation14 + $0x4e8] sm:$0xf0] }
 0x267   :  { %2736 = vmatpush.bf16.msra.mxu0 %v5437_v17  ;;  %2712 = vmatpush.bf16.msrb.mxu2 %v5529_v30  ;;  %v5477_v17 = vor.u32 %v6664_v4, %v5474_v9  ;;  %v5705_v30 = vor.u32 %v6723_v21, %v5704_v20  ;;  %v5672_v9 = vld [vmem:[#allocation14 + $0xb0] sm:$0xf]  ;;  %v5904_v20 = vld [vmem:[#allocation14 + $0x9c0] sm:$0xf]  ;;  %v6773_v21 = vld [vmem:[#allocation14 + $0x9e4] sm:$0xf0] }
 0x268   :  { %v5905_v29 = vor.u32 %v6773_v21, %v5904_v20  ;;  %v5792_v20 = vld [vmem:[#allocation14 + $0x560] sm:$0xf]  ;;  %v6745_v21 = vld [vmem:[#allocation14 + $0x584] sm:$0xf0] }
 0x269   :  { %2749 = vmatpush.bf16.msra.mxu1 %v5509_v27  ;;  %2725 = vmatpush.bf16.msrb.mxu3 %v5601_v36  ;;  %v5557_v27 = vor.u32 %v6684_v15, %v5554_v16  ;;  %v6721_v36 = vld [vmem:[#allocation14 + $0x1c4] sm:$0xf0]  ;;  %v6694_v15 = vld [vmem:[#allocation14 + $0x78c] sm:$0xf]  ;;  %v5594_v16 = vld [vmem:[#allocation14 + $0x7b0] sm:$0xf0] }
 0x26a   :  { %2713 = vmatmul.bf16.vlgmr.msrb.gmra.mxu2 %v7330_v55  ;;  %v5697_v44 = vor.u32 %v6721_v36, %v5696_v35  ;;  %v6771_v35 = vld [vmem:[#allocation14 + $0x994] sm:$0xf0] }
 0x26b   :  { %2737 = vmatpush.bf16.msra.mxu0 %v5429_v33  ;;  %2761 = vmatpush.bf16.msra.mxu2 %v5589_v34  ;;  %v5469_v33 = vor.u32 %v6662_v22, %v5466_v23  ;;  %v5629_v34 = vor.u32 %v6702_v24, %v5626_v25  ;;  %v5673_v22 = vor.u32 %v6715_v11, %v5672_v9  ;;  %v5664_v25 = vld [vmem:[#allocation14 + $0x60] sm:$0xf]  ;;  %v6720_v9 = vld [vmem:[#allocation14 + $0x1a4] sm:$0xf]  ;;  %v5698_v11 = vld [vmem:[#allocation14 + $0x1c8] sm:$0xf0] }
 0x26c   :  { %v5597_v24 = vor.u32 %v6694_v15, %v5594_v16  ;;  %v5770_v15 = vld [vmem:[#allocation14 + $0x498] sm:$0xf0] }
 0x26d   :  { %2750 = vmatpush.bf16.msra.mxu1 %v5501_v40  ;;  %2726 = vmatpush.bf16.msrb.mxu3 %v5593_v41  ;;  %v5549_v40 = vor.u32 %v6682_v31, %v5546_v32  ;;  %v6698_v41 = vld [vmem:[#allocation14 + $0x82c] sm:$0xf]  ;;  %v6753_v31 = vld [vmem:[#allocation14 + $0x6c4] sm:$0xf0]  ;;  %v5736_v32 = vld [vmem:[#allocation14 + $0x330] sm:$0xf] }
 0x26e   :  { %v5613_v62 = vor.u32 %v6698_v41, %v5610_v51 }
 0x26f   :  { %2738 = vmatpush.bf16.msra.mxu0 %v5421_v48  ;;  %2762 = vmatpush.bf16.msra.mxu2 %v5581_v49  ;;  %v5688_v48 = vld [vmem:[#allocation14 + $0x150] sm:$0xf]  ;;  %v6719_v49 = vld [vmem:[#allocation14 + $0x174] sm:$0xf0] }
 0x270   :  { %2727 = vmatmul.bf16.vlgmr.msrb.gmra.mxu3 %v7334_v19 }
 0x271   :  { %2751 = vmatpush.bf16.msra.mxu1 %v5493_v54  ;;  %2775 = vmatpush.bf16.msra.mxu3 %v5653_v56  ;;  %v6737_v54 = vld [vmem:[#allocation14 + $0x444] sm:$0xf0]  ;;  %v5689_v56 = vor.u32 %v6719_v49, %v5688_v48  ;;  %v5888_v49 = vld [vmem:[#allocation14 + $0x920] sm:$0xf] }
 0x272   :  { %v5761_v58 = vor.u32 %v6737_v54, %v5760_v53  ;;  %v6729_v48 = vld [vmem:[#allocation14 + $0x304] sm:$0xf0]  ;;  %v5808_v53 = vld [vmem:[#allocation14 + $0x600] sm:$0xf] }
 0x273   :  { %2739 = vmatpush.bf16.msra.mxu0 %v5413_v63  ;;  %2763 = vmatpush.bf16.msra.mxu2 %v5573_v0  ;;  %v6717_v63 = vld [vmem:[#allocation14 + $0x124] sm:$0xf0]  ;;  %v5840_v0 = vld [vmem:[#allocation14 + $0x740] sm:$0xf] }
 0x274   :  { %v5681_v8 = vor.u32 %v6717_v63, %v5680_v61  ;;  %v5841_v4 = vor.u32 %v6757_v1, %v5840_v0  ;;  %v6749_v54 = vld [vmem:[#allocation14 + $0x624] sm:$0xf0]  ;;  %v5706_v61 = vld [vmem:[#allocation14 + $0x218] sm:$0xf0]  ;;  %v6727_v63 = vld [vmem:[#allocation14 + $0x2b4] sm:$0xf0] }
 0x275   :  { %2752 = vmatpush.bf16.msra.mxu1 %v5485_v3  ;;  %2776 = vmatpush.bf16.msra.mxu3 %v5645_v5  ;;  %v5533_v3 = vor.u32 %v6678_v60, %v5530_v59  ;;  %v5752_v5 = vld [vmem:[#allocation14 + $0x3d0] sm:$0xf]  ;;  %v6722_v59 = vld [vmem:[#allocation14 + $0x1f4] sm:$0xf]  ;;  %v6767_v1 = vld [vmem:[#allocation14 + $0x8f4] sm:$0xf0]  ;;  %v5809_v57 = vor.u32 %v6749_v54, %v5808_v53 }
 0x276   :  { %v5880_v0 = vld [vmem:[#allocation14 + $0x8d0] sm:$0xf]  ;;  %v6759_v54 = vld [vmem:[#allocation14 + $0x7b4] sm:$0xf0] }
 0x277   :  { %2740 = vmatpush.bf16.msra.mxu0 %v5405_v12  ;;  %2764 = vmatpush.bf16.msra.mxu2 %v5565_v13  ;;  %v5832_v12 = vld [vmem:[#allocation14 + $0x6f0] sm:$0xf]  ;;  %v6755_v13 = vld [vmem:[#allocation14 + $0x714] sm:$0xf0] }
 0x278   :  { %v5833_v23 = vor.u32 %v6755_v13, %v5832_v12  ;;  %v5872_v12 = vld [vmem:[#allocation14 + $0x880] sm:$0xf]  ;;  %v6765_v13 = vld [vmem:[#allocation14 + $0x8a4] sm:$0xf0]  ;;  %v5848_v53 = vld [vmem:[#allocation14 + $0x790] sm:$0xf] }
 0x279   :  { %2753 = vmatpush.bf16.msra.mxu1 %v5477_v17  ;;  %2777 = vmatpush.bf16.msra.mxu3 %v5637_v18  ;;  %v5744_v17 = vld [vmem:[#allocation14 + $0x380] sm:$0xf]  ;;  %v6733_v18 = vld [vmem:[#allocation14 + $0x3a4] sm:$0xf0] }
 0x27a   :  { %2741 = vmatmul.bf16.vlgmr.msra.gmra.mxu0 %v7322_v7  ;;  %v5745_v28 = vor.u32 %v6733_v18, %v5744_v17  ;;  %v5701_v17 = vor.u32 %v6720_v9, %v5698_v11  ;;  %v5873_v18 = vor.u32 %v6765_v13, %v5872_v12  ;;  %v5898_v9 = vld [vmem:[#allocation14 + $0x998] sm:$0xf0]  ;;  %v6710_v11 = vld [vmem:[#allocation14 + $0x14] sm:$0xf] }
 0x27b   :  { %3225 = vmatpush.bf16.msrb.mxu0 %v5713_v14  ;;  %2765 = vmatpush.bf16.msra.mxu2 %v5557_v27  ;;  %v5753_v14 = vor.u32 %v6735_v6, %v5752_v5  ;;  %v6713_v27 = vld [vmem:[#allocation14 + $0x84] sm:$0xf0]  ;;  %v5881_v6 = vor.u32 %v6767_v1, %v5880_v0  ;;  %v5849_v0 = vor.u32 %v6759_v54, %v5848_v53  ;;  %v6803_v53 = vld [vmem:[#allocation14 + $0x49c] sm:$0xf0] }
 0x27c   :  { %v5665_v36 = vor.u32 %v6713_v27, %v5664_v25  ;;  %v5864_v25 = vld [vmem:[#allocation14 + $0x830] sm:$0xf]  ;;  %v6763_v27 = vld [vmem:[#allocation14 + $0x854] sm:$0xf0] }
 0x27d   :  { %2754 = vmatpush.bf16.msra.mxu1 %v5469_v33  ;;  %2778 = vmatpush.bf16.msra.mxu3 %v5629_v34  ;;  %v6731_v33 = vld [vmem:[#allocation14 + $0x354] sm:$0xf0]  ;;  %v5896_v34 = vld [vmem:[#allocation14 + $0x970] sm:$0xf] }
 0x27e   :  { %v5737_v43 = vor.u32 %v6731_v33, %v5736_v32  ;;  %v5865_v33 = vor.u32 %v6763_v27, %v5864_v25 }
 0x27f   :  { %3226 = vmatpush.bf16.msrb.mxu0 %v5705_v30  ;;  %2766 = vmatpush.bf16.msra.mxu2 %v5549_v40  ;;  %v5824_v30 = vld [vmem:[#allocation14 + $0x6a0] sm:$0xf]  ;;  %v5816_v40 = vld [vmem:[#allocation14 + $0x650] sm:$0xf] }
 0x280   :  { %2755 = vmatmul.bf16.vlgmr.msra.gmra.mxu1 %v7326_v26  ;;  %v5825_v38 = vor.u32 %v6753_v31, %v5824_v30  ;;  %v5817_v51 = vor.u32 %v6751_v42, %v5816_v40  ;;  %v5793_v30 = vor.u32 %v6745_v21, %v5792_v20  ;;  %v5784_v31 = vld [vmem:[#allocation14 + $0x510] sm:$0xf]  ;;  %v5856_v40 = vld [vmem:[#allocation14 + $0x7e0] sm:$0xf]  ;;  %v6761_v42 = vld [vmem:[#allocation14 + $0x804] sm:$0xf0] }
 0x281   :  { %3239 = vmatpush.bf16.msrb.mxu1 %v5777_v37  ;;  %2779 = vmatpush.bf16.msra.mxu3 %v5621_v47  ;;  %v5656_v37 = vld [vmem:[#allocation14 + $0x10] sm:$0xf]  ;;  %v5728_v47 = vld [vmem:[#allocation14 + $0x2e0] sm:$0xf]  ;;  %v6728_v21 = vld [vmem:[#allocation14 + $0x2e4] sm:$0xf] }
 0x282   :  { %v5657_v41 = vor.u32 %v6711_v39, %v5656_v37  ;;  %v5842_v39 = vld [vmem:[#allocation14 + $0x768] sm:$0xf0]  ;;  %v6789_v20 = vld [vmem:[#allocation14 + $0x26c] sm:$0xf0] }
 0x283   :  { %3227 = vmatpush.bf16.msrb.mxu0 %v5697_v44  ;;  %2767 = vmatpush.bf16.msra.mxu2 %v5541_v52  ;;  %v5897_v44 = vor.u32 %v6771_v35, %v5896_v34  ;;  %v5717_v52 = vor.u32 %v6724_v45, %v5714_v46  ;;  %v6743_v34 = vld [vmem:[#allocation14 + $0x534] sm:$0xf0]  ;;  %v6716_v35 = vld [vmem:[#allocation14 + $0x104] sm:$0xf] }
 0x284   :  { %v5785_v45 = vor.u32 %v6743_v34, %v5784_v31  ;;  %v6787_v34 = vld [vmem:[#allocation14 + $0x21c] sm:$0xf0] }
 0x285   :  { %3240 = vmatpush.bf16.msrb.mxu1 %v5769_v50  ;;  %2780 = vmatpush.bf16.msra.mxu3 %v5613_v62  ;;  %v6769_v50 = vld [vmem:[#allocation14 + $0x944] sm:$0xf0]  ;;  %v5720_v62 = vld [vmem:[#allocation14 + $0x290] sm:$0xf] }
 0x286   :  { %v5889_v60 = vor.u32 %v6769_v50, %v5888_v49  ;;  %v5721_v5 = vor.u32 %v6727_v63, %v5720_v62  ;;  %v5674_v49 = vld [vmem:[#allocation14 + $0xd8] sm:$0xf0]  ;;  %v5857_v50 = vor.u32 %v6761_v42, %v5856_v40  ;;  %v6805_v40 = vld [vmem:[#allocation14 + $0x4ec] sm:$0xf0] }
 0x287   :  { %3228 = vmatpush.bf16.msrb.mxu0 %v5689_v56  ;;  %2768 = vmatpush.bf16.msra.mxu2 %v5533_v3  ;;  %v5729_v56 = vor.u32 %v6729_v48, %v5728_v47  ;;  %v5709_v3 = vor.u32 %v6722_v59, %v5706_v61  ;;  %v6714_v48 = vld [vmem:[#allocation14 + $0xb4] sm:$0xf]  ;;  %v6772_v59 = vld [vmem:[#allocation14 + $0x9c4] sm:$0xf]  ;;  %v5906_v61 = vld [vmem:[#allocation14 + $0x9e8] sm:$0xf0] }
 0x288   :  { %v5677_v62 = vor.u32 %v6714_v48, %v5674_v49  ;;  %v5952_v48 = vld [vmem:[#allocation14 + $0x1a8] sm:$0xf] }
 0x289   :  { %3241 = vmatpush.bf16.msrb.mxu1 %v5761_v58  ;;  %2781 = vmatpush.bf16.msra.mxu3 %v5605_v10  ;;  %v6740_v58 = vld [vmem:[#allocation14 + $0x4c4] sm:$0xf] }
 0x28a   :  { %2769 = vmatmul.bf16.vlgmr.msra.gmra.mxu2 %v7330_v55  ;;  %v5781_v10 = vor.u32 %v6740_v58, %v5778_v2  ;;  %v6712_v58 = vld [vmem:[#allocation14 + $0x64] sm:$0xf]  ;;  %v5666_v2 = vld [vmem:[#allocation14 + $0x88] sm:$0xf0] }
 0x28b   :  { %3229 = vmatpush.bf16.msrb.mxu0 %v5681_v8  ;;  %3253 = vmatpush.bf16.msrb.mxu2 %v5841_v4  ;;  %v5800_v8 = vld [vmem:[#allocation14 + $0x5b0] sm:$0xf]  ;;  %v6747_v4 = vld [vmem:[#allocation14 + $0x5d4] sm:$0xf0] }
 0x28c   :  { %v5801_v16 = vor.u32 %v6747_v4, %v5800_v8  ;;  %v5738_v8 = vld [vmem:[#allocation14 + $0x358] sm:$0xf0]  ;;  %v6770_v4 = vld [vmem:[#allocation14 + $0x974] sm:$0xf] }
 0x28d   :  { %3242 = vmatpush.bf16.msrb.mxu1 %v5753_v14  ;;  %2782 = vmatpush.bf16.msra.mxu3 %v5597_v24  ;;  %v6738_v14 = vld [vmem:[#allocation14 + $0x474] sm:$0xf]  ;;  %v5690_v24 = vld [vmem:[#allocation14 + $0x178] sm:$0xf0] }
 0x28f   :  { %3230 = vmatpush.bf16.msrb.mxu0 %v5673_v22  ;;  %3254 = vmatpush.bf16.msrb.mxu2 %v5833_v23  ;;  %v6718_v22 = vld [vmem:[#allocation14 + $0x154] sm:$0xf]  ;;  %v5773_v23 = vor.u32 %v6738_v14, %v5770_v15  ;;  %v5658_v14 = vld [vmem:[#allocation14 + $0x38] sm:$0xf0] }
 0x290   :  { %2783 = vmatmul.bf16.vlgmr.msra.gmra.mxu3 %v7334_v19  ;;  %v5693_v32 = vor.u32 %v6718_v22, %v5690_v24  ;;  %v6750_v15 = vld [vmem:[#allocation14 + $0x654] sm:$0xf]  ;;  %v5730_v22 = vld [vmem:[#allocation14 + $0x308] sm:$0xf0]  ;;  %v5661_v25 = vor.u32 %v6710_v11, %v5658_v14  ;;  %v6760_v14 = vld [vmem:[#allocation14 + $0x7e4] sm:$0xf] }
 0x291   :  { %3243 = vmatpush.bf16.msrb.mxu1 %v5745_v28  ;;  %3267 = vmatpush.bf16.msrb.mxu3 %v5905_v29  ;;  %v6736_v28 = vld [vmem:[#allocation14 + $0x424] sm:$0xf]  ;;  %v5762_v29 = vld [vmem:[#allocation14 + $0x448] sm:$0xf0]  ;;  %v5733_v31 = vor.u32 %v6728_v21, %v5730_v22  ;;  %v5928_v22 = vld [vmem:[#allocation14 + $0xb8] sm:$0xf] }
 0x292   :  { %v5765_v37 = vor.u32 %v6736_v28, %v5762_v29  ;;  %v5890_v24 = vld [vmem:[#allocation14 + $0x948] sm:$0xf0]  ;;  %v6748_v29 = vld [vmem:[#allocation14 + $0x604] sm:$0xf] }
 0x293   :  { %3231 = vmatpush.bf16.msrb.mxu0 %v5665_v36  ;;  %3255 = vmatpush.bf16.msrb.mxu2 %v5825_v38  ;;  %v5682_v36 = vld [vmem:[#allocation14 + $0x128] sm:$0xf0]  ;;  %v6756_v38 = vld [vmem:[#allocation14 + $0x744] sm:$0xf] }
 0x294   :  { %v5685_v46 = vor.u32 %v6716_v35, %v5682_v36  ;;  %v5845_v47 = vor.u32 %v6756_v38, %v5842_v39  ;;  %v6726_v35 = vld [vmem:[#allocation14 + $0x294] sm:$0xf]  ;;  %v5722_v36 = vld [vmem:[#allocation14 + $0x2b8] sm:$0xf0]  ;;  %v6032_v39 = vld [vmem:[#allocation14 + $0x4c8] sm:$0xf] }
 0x295   :  { %3244 = vmatpush.bf16.msrb.mxu1 %v5737_v43  ;;  %3268 = vmatpush.bf16.msrb.mxu3 %v5897_v44  ;;  %v6734_v43 = vld [vmem:[#allocation14 + $0x3d4] sm:$0xf]  ;;  %v5754_v44 = vld [vmem:[#allocation14 + $0x3f8] sm:$0xf0]  ;;  %v6033_v49 = vor.u32 %v6805_v40, %v6032_v39  ;;  %v5920_v39 = vld [vmem:[#allocation14 + $0x68] sm:$0xf] }
 0x296   :  { %v5882_v38 = vld [vmem:[#allocation14 + $0x8f8] sm:$0xf0]  ;;  %v6777_v40 = vld [vmem:[#allocation14 + $0x8c] sm:$0xf0] }
 0x297   :  { %3232 = vmatpush.bf16.msrb.mxu0 %v5657_v41  ;;  %3256 = vmatpush.bf16.msrb.mxu2 %v5817_v51  ;;  %v5757_v41 = vor.u32 %v6734_v43, %v5754_v44  ;;  %v6754_v51 = vld [vmem:[#allocation14 + $0x6f4] sm:$0xf]  ;;  %v5725_v44 = vor.u32 %v6726_v35, %v5722_v36 }
 0x299   :  { %3245 = vmatpush.bf16.msrb.mxu1 %v5729_v56  ;;  %3269 = vmatpush.bf16.msrb.mxu3 %v5889_v60  ;;  %v6732_v56 = vld [vmem:[#allocation14 + $0x384] sm:$0xf]  ;;  %v5746_v60 = vld [vmem:[#allocation14 + $0x3a8] sm:$0xf0] }
 0x29a   :  { %3233 = vmatmul.bf16.vlgmr.msrb.gmra.mxu0 %v7322_v7  ;;  %v5749_v1 = vor.u32 %v6732_v56, %v5746_v60 }
 0x29b   :  { %3281 = vmatpush.bf16.msra.mxu0 %v5717_v52  ;;  %3257 = vmatpush.bf16.msrb.mxu2 %v5809_v57  ;;  %v5834_v52 = vld [vmem:[#allocation14 + $0x718] sm:$0xf0]  ;;  %v6752_v57 = vld [vmem:[#allocation14 + $0x6a4] sm:$0xf] }
 0x29c   :  { %v5837_v63 = vor.u32 %v6754_v51, %v5834_v52  ;;  %v5874_v51 = vld [vmem:[#allocation14 + $0x8a8] sm:$0xf0]  ;;  %v6024_v52 = vld [vmem:[#allocation14 + $0x478] sm:$0xf] }
 0x29d   :  { %3246 = vmatpush.bf16.msrb.mxu1 %v5721_v5  ;;  %3270 = vmatpush.bf16.msrb.mxu3 %v5881_v6  ;;  %v5826_v5 = vld [vmem:[#allocation14 + $0x6c8] sm:$0xf0]  ;;  %v6730_v6 = vld [vmem:[#allocation14 + $0x334] sm:$0xf] }
 0x29e   :  { %v5829_v12 = vor.u32 %v6752_v57, %v5826_v5  ;;  %v5741_v13 = vor.u32 %v6730_v6, %v5738_v8  ;;  %v6801_v57 = vld [vmem:[#allocation14 + $0x44c] sm:$0xf0]  ;;  %v6742_v5 = vld [vmem:[#allocation14 + $0x514] sm:$0xf] }
 0x29f   :  { %3282 = vmatpush.bf16.msra.mxu0 %v5709_v3  ;;  %3258 = vmatpush.bf16.msrb.mxu2 %v5801_v16  ;;  %v5909_v3 = vor.u32 %v6772_v59, %v5906_v61  ;;  %v5818_v16 = vld [vmem:[#allocation14 + $0x678] sm:$0xf0]  ;;  %v6744_v59 = vld [vmem:[#allocation14 + $0x564] sm:$0xf]  ;;  %v5794_v61 = vld [vmem:[#allocation14 + $0x588] sm:$0xf0] }
 0x2a0   :  { %3247 = vmatmul.bf16.vlgmr.msrb.gmra.mxu1 %v7326_v26  ;;  %v5821_v27 = vor.u32 %v6750_v15, %v5818_v16  ;;  %v5858_v15 = vld [vmem:[#allocation14 + $0x808] sm:$0xf0]  ;;  %v6008_v16 = vld [vmem:[#allocation14 + $0x3d8] sm:$0xf] }
 0x2a1   :  { %3295 = vmatpush.bf16.msra.mxu1 %v5781_v10  ;;  %3271 = vmatpush.bf16.msrb.mxu3 %v5873_v18  ;;  %v5669_v10 = vor.u32 %v6712_v58, %v5666_v2  ;;  %v5968_v18 = vld [vmem:[#allocation14 + $0x248] sm:$0xf]  ;;  %v5866_v58 = vld [vmem:[#allocation14 + $0x858] sm:$0xf0] }
 0x2a2   :  { %v5969_v28 = vor.u32 %v6789_v20, %v5968_v18  ;;  %v6016_v2 = vld [vmem:[#allocation14 + $0x428] sm:$0xf] }
 0x2a3   :  { %3283 = vmatpush.bf16.msra.mxu0 %v5701_v17  ;;  %3259 = vmatpush.bf16.msrb.mxu2 %v5793_v30  ;;  %v5901_v17 = vor.u32 %v6770_v4, %v5898_v9  ;;  %v5810_v30 = vld [vmem:[#allocation14 + $0x628] sm:$0xf0]  ;;  %v5786_v4 = vld [vmem:[#allocation14 + $0x538] sm:$0xf0]  ;;  %v5936_v9 = vld [vmem:[#allocation14 + $0x108] sm:$0xf]  ;;  %v6017_v11 = vor.u32 %v6801_v57, %v6016_v2 }
 0x2a4   :  { %v5813_v42 = vor.u32 %v6748_v29, %v5810_v30  ;;  %v5789_v18 = vor.u32 %v6742_v5, %v5786_v4  ;;  %v6758_v29 = vld [vmem:[#allocation14 + $0x794] sm:$0xf]  ;;  %v5850_v30 = vld [vmem:[#allocation14 + $0x7b8] sm:$0xf0]  ;;  %v6064_v5 = vld [vmem:[#allocation14 + $0x608] sm:$0xf] }
 0x2a5   :  { %3296 = vmatpush.bf16.msra.mxu1 %v5773_v23  ;;  %3272 = vmatpush.bf16.msrb.mxu3 %v5865_v33  ;;  %v6768_v23 = vld [vmem:[#allocation14 + $0x924] sm:$0xf]  ;;  %v5960_v33 = vld [vmem:[#allocation14 + $0x1f8] sm:$0xf] }
 0x2a6   :  { %v5961_v43 = vor.u32 %v6787_v34, %v5960_v33  ;;  %v6160_v33 = vld [vmem:[#allocation14 + $0x9c8] sm:$0xf]  ;;  %v6837_v34 = vld [vmem:[#allocation14 + $0x9ec] sm:$0xf0] }
 0x2a7   :  { %3284 = vmatpush.bf16.msra.mxu0 %v5693_v32  ;;  %3260 = vmatpush.bf16.msrb.mxu2 %v5785_v45  ;;  %v5893_v32 = vor.u32 %v6768_v23, %v5890_v24  ;;  %v6779_v23 = vld [vmem:[#allocation14 + $0xdc] sm:$0xf0]  ;;  %v5861_v24 = vor.u32 %v6760_v14, %v5858_v15  ;;  %v6136_v14 = vld [vmem:[#allocation14 + $0x8d8] sm:$0xf] }
 0x2a8   :  { %v5929_v35 = vor.u32 %v6779_v23, %v5928_v22  ;;  %v6831_v15 = vld [vmem:[#allocation14 + $0x8fc] sm:$0xf0] }
 0x2a9   :  { %3297 = vmatpush.bf16.msra.mxu1 %v5765_v37  ;;  %3273 = vmatpush.bf16.msrb.mxu3 %v5857_v50  ;;  %v6766_v37 = vld [vmem:[#allocation14 + $0x8d4] sm:$0xf]  ;;  %v6785_v50 = vld [vmem:[#allocation14 + $0x1cc] sm:$0xf0]  ;;  %v6137_v23 = vor.u32 %v6831_v15, %v6136_v14  ;;  %v5930_v14 = vld [vmem:[#allocation14 + $0xe0] sm:$0xf0] }
 0x2aa   :  { %3261 = vmatmul.bf16.vlgmr.msrb.gmra.mxu2 %v7330_v55  ;;  %v5885_v45 = vor.u32 %v6766_v37, %v5882_v38  ;;  %v5953_v56 = vor.u32 %v6785_v50, %v5952_v48  ;;  %v5853_v37 = vor.u32 %v6758_v29, %v5850_v30  ;;  %v6152_v48 = vld [vmem:[#allocation14 + $0x978] sm:$0xf]  ;;  %v5921_v50 = vor.u32 %v6777_v40, %v5920_v39  ;;  %v5954_v30 = vld [vmem:[#allocation14 + $0x1d0] sm:$0xf0]  ;;  %v6048_v40 = vld [vmem:[#allocation14 + $0x568] sm:$0xf] }
 0x2ab   :  { %3285 = vmatpush.bf16.msra.mxu0 %v5685_v46  ;;  %3309 = vmatpush.bf16.msra.mxu2 %v5845_v47  ;;  %v6746_v46 = vld [vmem:[#allocation14 + $0x5b4] sm:$0xf]  ;;  %v5802_v47 = vld [vmem:[#allocation14 + $0x5d8] sm:$0xf0] }
 0x2ac   :  { %v5805_v54 = vor.u32 %v6746_v46, %v5802_v47  ;;  %v6795_v46 = vld [vmem:[#allocation14 + $0x35c] sm:$0xf0] }
 0x2ad   :  { %3298 = vmatpush.bf16.msra.mxu1 %v5757_v41  ;;  %3274 = vmatpush.bf16.msrb.mxu3 %v5849_v0  ;;  %v6764_v41 = vld [vmem:[#allocation14 + $0x884] sm:$0xf]  ;;  %v6783_v0 = vld [vmem:[#allocation14 + $0x17c] sm:$0xf0] }
 0x2ae   :  { %v5877_v60 = vor.u32 %v6764_v41, %v5874_v51  ;;  %v5912_v41 = vld [vmem:[#allocation14 + $0x18] sm:$0xf] }
 0x2af   :  { %3286 = vmatpush.bf16.msra.mxu0 %v5677_v62  ;;  %3310 = vmatpush.bf16.msra.mxu2 %v5837_v63  ;;  %v5944_v62 = vld [vmem:[#allocation14 + $0x158] sm:$0xf]  ;;  %v6025_v63 = vor.u32 %v6803_v53, %v6024_v52 }
 0x2b0   :  { %3275 = vmatmul.bf16.vlgmr.msrb.gmra.mxu3 %v7334_v19  ;;  %v5945_v6 = vor.u32 %v6783_v0, %v5944_v62  ;;  %v5970_v62 = vld [vmem:[#allocation14 + $0x270] sm:$0xf0]  ;;  %v6793_v0 = vld [vmem:[#allocation14 + $0x30c] sm:$0xf0] }
 0x2b1   :  { %3299 = vmatpush.bf16.msra.mxu1 %v5749_v1  ;;  %3323 = vmatpush.bf16.msra.mxu3 %v5909_v3  ;;  %v6762_v1 = vld [vmem:[#allocation14 + $0x834] sm:$0xf]  ;;  %v5797_v3 = vor.u32 %v6744_v59, %v5794_v61  ;;  %v6788_v61 = vld [vmem:[#allocation14 + $0x24c] sm:$0xf] }
 0x2b2   :  { %v5869_v8 = vor.u32 %v6762_v1, %v5866_v58  ;;  %v6144_v1 = vld [vmem:[#allocation14 + $0x928] sm:$0xf]  ;;  %v6833_v58 = vld [vmem:[#allocation14 + $0x94c] sm:$0xf0] }
 0x2b3   :  { %3287 = vmatpush.bf16.msra.mxu0 %v5669_v10  ;;  %3311 = vmatpush.bf16.msra.mxu2 %v5829_v12  ;;  %v6781_v10 = vld [vmem:[#allocation14 + $0x12c] sm:$0xf0]  ;;  %v6096_v12 = vld [vmem:[#allocation14 + $0x748] sm:$0xf]  ;;  %v6145_v4 = vor.u32 %v6833_v58, %v6144_v1  ;;  %v6820_v1 = vld [vmem:[#allocation14 + $0x74c] sm:$0xf] }
 0x2b4   :  { %v5937_v20 = vor.u32 %v6781_v10, %v5936_v9  ;;  %v6786_v9 = vld [vmem:[#allocation14 + $0x1fc] sm:$0xf]  ;;  %v5962_v10 = vld [vmem:[#allocation14 + $0x220] sm:$0xf0]  ;;  %v6098_v58 = vld [vmem:[#allocation14 + $0x770] sm:$0xf0] }
 0x2b5   :  { %3300 = vmatpush.bf16.msra.mxu1 %v5741_v13  ;;  %3324 = vmatpush.bf16.msra.mxu3 %v5901_v17  ;;  %v6821_v13 = vld [vmem:[#allocation14 + $0x76c] sm:$0xf0]  ;;  %v6799_v17 = vld [vmem:[#allocation14 + $0x3fc] sm:$0xf0] }
 0x2b6   :  { %v6097_v21 = vor.u32 %v6821_v13, %v6096_v12  ;;  %v7355_v47 = vpop.f32.mrf.mxu0  ;;  %v6791_v13 = vld [vmem:[#allocation14 + $0x2bc] sm:$0xf0] }
 0x2b7   :  { %3288 = vmatpush.bf16.msra.mxu0 %v5661_v25  ;;  %3312 = vmatpush.bf16.msra.mxu2 %v5821_v27  ;;  %v6009_v25 = vor.u32 %v6799_v17, %v6008_v16  ;;  %v6088_v27 = vld [vmem:[#allocation14 + $0x6f8] sm:$0xf]  ;;  %v6804_v16 = vld [vmem:[#allocation14 + $0x4cc] sm:$0xf]  ;;  %v6034_v17 = vld [vmem:[#allocation14 + $0x4f0] sm:$0xf0] }
 0x2b8   :  { %v6037_v29 = vor.u32 %v6804_v16, %v6034_v17  ;;  %v6818_v17 = vld [vmem:[#allocation14 + $0x6fc] sm:$0xf] }
 0x2b9   :  { %3301 = vmatpush.bf16.msra.mxu1 %v5733_v31  ;;  %3325 = vmatpush.bf16.msra.mxu3 %v5893_v32  ;;  %v6000_v31 = vld [vmem:[#allocation14 + $0x388] sm:$0xf]  ;;  %v6797_v32 = vld [vmem:[#allocation14 + $0x3ac] sm:$0xf0] }
 0x2ba   :  { %3289 = vmatmul.bf16.vlgmr.msra.gmra.mxu0 %v7322_v7  ;;  %v6001_v38 = vor.u32 %v6797_v32, %v6000_v31  ;;  %v6128_v31 = vld [vmem:[#allocation14 + $0x888] sm:$0xf]  ;;  %v6829_v32 = vld [vmem:[#allocation14 + $0x8ac] sm:$0xf0] }
 0x2bb   :  { %3773 = vmatpush.bf16.msrb.mxu0 %v5969_v28  ;;  %3313 = vmatpush.bf16.msra.mxu2 %v5813_v42  ;;  %v6819_v28 = vld [vmem:[#allocation14 + $0x71c] sm:$0xf0]  ;;  %v6080_v42 = vld [vmem:[#allocation14 + $0x6a8] sm:$0xf]  ;;  %v6129_v39 = vor.u32 %v6829_v32, %v6128_v31  ;;  %v6162_v31 = vld [vmem:[#allocation14 + $0x9f0] sm:$0xf0] }
 0x2bc   :  { %v6089_v36 = vor.u32 %v6819_v28, %v6088_v27  ;;  %v6784_v27 = vld [vmem:[#allocation14 + $0x1ac] sm:$0xf] }
 0x2bd   :  { %3302 = vmatpush.bf16.msra.mxu1 %v5725_v44  ;;  %3326 = vmatpush.bf16.msra.mxu3 %v5885_v45  ;;  %v6817_v44 = vld [vmem:[#allocation14 + $0x6cc] sm:$0xf0]  ;;  %v5992_v45 = vld [vmem:[#allocation14 + $0x338] sm:$0xf]  ;;  %v7357_v51 = vpop.f32.mrf.mxu1 }
 0x2be   :  { %v6081_v52 = vor.u32 %v6817_v44, %v6080_v42  ;;  %v5993_v53 = vor.u32 %v6795_v46, %v5992_v45  ;;  %v6809_v42 = vld [vmem:[#allocation14 + $0x58c] sm:$0xf0]  ;;  %v5946_v46 = vld [vmem:[#allocation14 + $0x180] sm:$0xf0] }
 0x2bf   :  { %3774 = vmatpush.bf16.msrb.mxu0 %v5961_v43  ;;  %3314 = vmatpush.bf16.msra.mxu2 %v5805_v54  ;;  %v6161_v43 = vor.u32 %v6837_v34, %v6160_v33  ;;  %v6775_v54 = vld [vmem:[#allocation14 + $0x3c] sm:$0xf0]  ;;  %v6802_v33 = vld [vmem:[#allocation14 + $0x47c] sm:$0xf]  ;;  %v6026_v34 = vld [vmem:[#allocation14 + $0x4a0] sm:$0xf0] }
 0x2c0   :  { %3303 = vmatmul.bf16.vlgmr.msra.gmra.mxu1 %v7326_v26  ;;  %v5913_v2 = vor.u32 %v6775_v54, %v5912_v41  ;;  %v6029_v45 = vor.u32 %v6802_v33, %v6026_v34  ;;  %v6018_v41 = vld [vmem:[#allocation14 + $0x450] sm:$0xf0]  ;;  %v6040_v54 = vld [vmem:[#allocation14 + $0x518] sm:$0xf] }
 0x2c1   :  { %3787 = vmatpush.bf16.msrb.mxu1 %v6033_v49  ;;  %3327 = vmatpush.bf16.msra.mxu3 %v5877_v60  ;;  %v6835_v49 = vld [vmem:[#allocation14 + $0x99c] sm:$0xf0] }
 0x2c2   :  { %v6815_v60 = vld [vmem:[#allocation14 + $0x67c] sm:$0xf0]  ;;  %v6153_v59 = vor.u32 %v6835_v49, %v6152_v48  ;;  %v6120_v48 = vld [vmem:[#allocation14 + $0x838] sm:$0xf] }
 0x2c3   :  { %3775 = vmatpush.bf16.msrb.mxu0 %v5953_v56  ;;  %3315 = vmatpush.bf16.msra.mxu2 %v5797_v3  ;;  %v6072_v56 = vld [vmem:[#allocation14 + $0x658] sm:$0xf]  ;;  %v5973_v3 = vor.u32 %v6788_v61, %v5970_v62  ;;  %v6827_v49 = vld [vmem:[#allocation14 + $0x85c] sm:$0xf0]  ;;  %v6780_v61 = vld [vmem:[#allocation14 + $0x10c] sm:$0xf] }
 0x2c4   :  { %v6073_v57 = vor.u32 %v6815_v60, %v6072_v56  ;;  %v6121_v60 = vor.u32 %v6827_v49, %v6120_v48  ;;  %v5938_v62 = vld [vmem:[#allocation14 + $0x130] sm:$0xf0]  ;;  %v5994_v48 = vld [vmem:[#allocation14 + $0x360] sm:$0xf0] }
 0x2c5   :  { %3788 = vmatpush.bf16.msrb.mxu1 %v6025_v63  ;;  %3328 = vmatpush.bf16.msra.mxu3 %v5869_v8  ;;  %v5984_v63 = vld [vmem:[#allocation14 + $0x2e8] sm:$0xf]  ;;  %v7364_v28 = vpop.f32.mrf.mxu1 }
 0x2c6   :  { %v5985_v8 = vor.u32 %v6793_v0, %v5984_v63 }
 0x2c7   :  { %3776 = vmatpush.bf16.msrb.mxu0 %v5945_v6  ;;  %3316 = vmatpush.bf16.msra.mxu2 %v5789_v18  ;;  %v6813_v6 = vld [vmem:[#allocation14 + $0x62c] sm:$0xf0]  ;;  %v7362_v18 = vpop.f32.mrf.mxu0 }
 0x2c9   :  { %3789 = vmatpush.bf16.msrb.mxu1 %v6017_v11  ;;  %3329 = vmatpush.bf16.msra.mxu3 %v5861_v24  ;;  %v5976_v11 = vld [vmem:[#allocation14 + $0x298] sm:$0xf] }
 0x2ca   :  { %3317 = vmatmul.bf16.vlgmr.msra.gmra.mxu2 %v7330_v55  ;;  %v5977_v22 = vor.u32 %v6791_v13, %v5976_v11  ;;  %v6056_v24 = vld [vmem:[#allocation14 + $0x5b8] sm:$0xf]  ;;  %v6101_v11 = vor.u32 %v6820_v1, %v6098_v58  ;;  %v6778_v13 = vld [vmem:[#allocation14 + $0xbc] sm:$0xf] }
 0x2cb   :  { %3777 = vmatpush.bf16.msrb.mxu0 %v5937_v20  ;;  %3801 = vmatpush.bf16.msrb.mxu2 %v6097_v21  ;;  %v6065_v20 = vor.u32 %v6813_v6, %v6064_v5  ;;  %v5965_v21 = vor.u32 %v6786_v9, %v5962_v10  ;;  %v6010_v5 = vld [vmem:[#allocation14 + $0x400] sm:$0xf0]  ;;  %v5941_v10 = vor.u32 %v6780_v61, %v5938_v62  ;;  %v6774_v61 = vld [vmem:[#allocation14 + $0x1c] sm:$0xf] }
 0x2cc   :  { %v7360_v12 = vpop.f32.mrf.mxu2  ;;  %v5933_v33 = vor.u32 %v6778_v13, %v5930_v14  ;;  %v5914_v62 = vld [vmem:[#allocation14 + $0x40] sm:$0xf0]  ;;  %v6814_v58 = vld [vmem:[#allocation14 + $0x65c] sm:$0xf]  ;;  %v6146_v13 = vld [vmem:[#allocation14 + $0x950] sm:$0xf0] }
 0x2cd   :  { %3790 = vmatpush.bf16.msrb.mxu1 %v6009_v25  ;;  %3330 = vmatpush.bf16.msra.mxu3 %v5853_v37  ;;  %v6811_v25 = vld [vmem:[#allocation14 + $0x5dc] sm:$0xf0] }
 0x2cf   :  { %3778 = vmatpush.bf16.msrb.mxu0 %v5929_v35  ;;  %3802 = vmatpush.bf16.msrb.mxu2 %v6089_v36  ;;  %v7367_v35 = vld [vmem:[#allocation16] sm:$0x3]  ;;  %v6057_v36 = vor.u32 %v6811_v25, %v6056_v24  ;;  %v2190_v63 = vpop.f32.mrf.mxu0  ;;  %v6796_v25 = vld [vmem:[#allocation14 + $0x38c] sm:$0xf] }
 0x2d0   :  { %3331 = vmatmul.bf16.vlgmr.msra.gmra.mxu3 %v7334_v19  ;;  %v1802_v6 = vperm.slane %v7367_v35, 1  ;;  %v6823_v24 = vld [vmem:[#allocation14 + $0x7bc] sm:$0xf0] }
 0x2d1   :  { %3791 = vmatpush.bf16.msrb.mxu1 %v6001_v38  ;;  %3815 = vmatpush.bf16.msrb.mxu3 %v6161_v43  ;;  %v5957_v38 = vor.u32 %v6784_v27, %v5954_v30  ;;  %v6782_v43 = vld [vmem:[#allocation14 + $0x15c] sm:$0xf]  ;;  %v6002_v27 = vld [vmem:[#allocation14 + $0x3b0] sm:$0xf0]  ;;  %v6836_v30 = vld [vmem:[#allocation14 + $0x9cc] sm:$0xf] }
 0x2d2   :  { %v5949_v56 = vor.u32 %v6782_v43, %v5946_v46  ;;  %v6082_v43 = vld [vmem:[#allocation14 + $0x6d0] sm:$0xf0]  ;;  %v6794_v46 = vld [vmem:[#allocation14 + $0x33c] sm:$0xf] }
 0x2d3   :  { %3779 = vmatpush.bf16.msrb.mxu0 %v5921_v50  ;;  %3803 = vmatpush.bf16.msrb.mxu2 %v6081_v52  ;;  %v7369_v37 = vpop.f32.mrf.mxu3  ;;  %v6800_v50 = vld [vmem:[#allocation14 + $0x42c] sm:$0xf]  ;;  %v1801_v52 = vperm.slane %v7367_v35, 0  ;;  %v5997_v1 = vor.u32 %v6794_v46, %v5994_v48  ;;  %v5917_v35 = vor.u32 %v6774_v61, %v5914_v62  ;;  %v6867_v62 = vld [vmem:[#allocation14 + $0x4a4] sm:$0xf0] }
 0x2d4   :  { %v7371_v44 = vpop.f32.mrf.mxu2  ;;  %v6021_v0 = vor.u32 %v6800_v50, %v6018_v41  ;;  %v6834_v41 = vld [vmem:[#allocation14 + $0x97c] sm:$0xf] }
 0x2d5   :  { %3792 = vmatpush.bf16.msrb.mxu1 %v5993_v53  ;;  %3816 = vmatpush.bf16.msrb.mxu3 %v6153_v59  ;;  %v6049_v53 = vor.u32 %v6809_v42, %v6048_v40  ;;  %v6807_v59 = vld [vmem:[#allocation14 + $0x53c] sm:$0xf0]  ;;  %v5922_v40 = vld [vmem:[#allocation14 + $0x90] sm:$0xf0]  ;;  %v6816_v42 = vld [vmem:[#allocation14 + $0x6ac] sm:$0xf] }
 0x2d7   :  { %3780 = vmatpush.bf16.msrb.mxu0 %v5913_v2  ;;  %3804 = vmatpush.bf16.msrb.mxu2 %v6073_v57  ;;  %v6112_v2 = vld [vmem:[#allocation14 + $0x7e8] sm:$0xf]  ;;  %v6825_v57 = vld [vmem:[#allocation14 + $0x80c] sm:$0xf0]  ;;  %v2192_v49 = vpop.f32.mrf.mxu0 }
 0x2d8   :  { %v6113_v15 = vor.u32 %v6825_v57, %v6112_v2  ;;  %v6074_v2 = vld [vmem:[#allocation14 + $0x680] sm:$0xf0]  ;;  %v6224_v57 = vld [vmem:[#allocation14 + $0x250] sm:$0xf] }
 0x2d9   :  { %3793 = vmatpush.bf16.msrb.mxu1 %v5985_v8  ;;  %3817 = vmatpush.bf16.msrb.mxu3 %v6145_v4  ;;  %v2204_v8 = vpop.f32.mrf.mxu1  ;;  %v6041_v4 = vor.u32 %v6807_v59, %v6040_v54  ;;  %v2137_v54 = vadd.f32 %v7362_v18, %v1801_v52  ;;  %v6085_v59 = vor.u32 %v6816_v42, %v6082_v43 }
 0x2da   :  { %3781 = vmatmul.bf16.vlgmr.msrb.gmra.mxu0 %v7322_v7  ;;  %v2193_v18 = vadd.f32 %v2192_v49, %v1802_v6  ;;  %v6058_v49 = vld [vmem:[#allocation14 + $0x5e0] sm:$0xf0] }
 0x2db   :  { %3829 = vmatpush.bf16.msra.mxu0 %v5973_v3  ;;  %3805 = vmatpush.bf16.msrb.mxu2 %v6065_v20  ;;  %v6798_v3 = vld [vmem:[#allocation14 + $0x3dc] sm:$0xf]  ;;  %v7376_v9 = vpop.f32.mrf.mxu3  ;;  %v6090_v20 = vld [vmem:[#allocation14 + $0x720] sm:$0xf0] }
 0x2dc   :  { %v6013_v16 = vor.u32 %v6798_v3, %v6010_v5  ;;  %v6093_v34 = vor.u32 %v6818_v17, %v6090_v20  ;;  %v6853_v3 = vld [vmem:[#allocation14 + $0x274] sm:$0xf0]  ;;  %v6792_v5 = vld [vmem:[#allocation14 + $0x2ec] sm:$0xf]  ;;  %v6077_v17 = vor.u32 %v6814_v58, %v6074_v2 }
 0x2dd   :  { %3794 = vmatpush.bf16.msrb.mxu1 %v5977_v22  ;;  %3818 = vmatpush.bf16.msrb.mxu3 %v6137_v23  ;;  %v2135_v22 = vadd.f32 %v7355_v47, %v1801_v52  ;;  %v2218_v23 = vpop.f32.mrf.mxu2  ;;  %v6225_v20 = vor.u32 %v6853_v3, %v6224_v57  ;;  %v6847_v57 = vld [vmem:[#allocation14 + $0x184] sm:$0xf0]  ;;  %v6826_v3 = vld [vmem:[#allocation14 + $0x83c] sm:$0xf] }
 0x2df   :  { %3830 = vmatpush.bf16.msra.mxu0 %v5965_v21  ;;  %3806 = vmatpush.bf16.msrb.mxu2 %v6057_v36  ;;  %v6104_v21 = vld [vmem:[#allocation14 + $0x798] sm:$0xf]  ;;  %v2149_v32 = vadd.f32 %v7357_v51, %v2135_v22  ;;  %v6776_v36 = vld [vmem:[#allocation14 + $0x6c] sm:$0xf] }
 0x2e0   :  { %3795 = vmatmul.bf16.vlgmr.msrb.gmra.mxu1 %v7326_v26  ;;  %v6105_v47 = vor.u32 %v6823_v24, %v6104_v21  ;;  %v6851_v21 = vld [vmem:[#allocation14 + $0x224] sm:$0xf0] }
 0x2e1   :  { %3843 = vmatpush.bf16.msra.mxu1 %v6037_v29  ;;  %3819 = vmatpush.bf16.msrb.mxu3 %v6129_v39  ;;  %v2191_v29 = vadd.f32 %v2190_v63, %v1802_v6  ;;  %v6005_v39 = vor.u32 %v6796_v25, %v6002_v27  ;;  %v2163_v51 = vadd.f32 %v7360_v12, %v2149_v32  ;;  %v6812_v6 = vld [vmem:[#allocation14 + $0x60c] sm:$0xf]  ;;  %v6790_v27 = vld [vmem:[#allocation14 + $0x29c] sm:$0xf] }
 0x2e3   :  { %3831 = vmatpush.bf16.msra.mxu0 %v5957_v38  ;;  %3807 = vmatpush.bf16.msrb.mxu2 %v6049_v53  ;;  %v2205_v38 = vadd.f32 %v2204_v8, %v2191_v29  ;;  %v6154_v53 = vld [vmem:[#allocation14 + $0x9a0] sm:$0xf0]  ;;  %v2177_v63 = vadd.f32 %v7369_v37, %v2163_v51  ;;  %v2151_v8 = vadd.f32 %v7364_v28, %v2137_v54  ;;  %v6216_v28 = vld [vmem:[#allocation14 + $0x200] sm:$0xf] }
 0x2e4   :  { %v6157_v52 = vor.u32 %v6834_v41, %v6154_v53  ;;  %v5978_v29 = vld [vmem:[#allocation14 + $0x2c0] sm:$0xf0]  ;;  %v6217_v51 = vor.u32 %v6851_v21, %v6216_v28  ;;  %v6849_v41 = vld [vmem:[#allocation14 + $0x1d4] sm:$0xf0]  ;;  %v6192_v28 = vld [vmem:[#allocation14 + $0x110] sm:$0xf] }
 0x2e5   :  { %3844 = vmatpush.bf16.msra.mxu1 %v6029_v45  ;;  %3820 = vmatpush.bf16.msrb.mxu3 %v6121_v60  ;;  %v6165_v45 = vor.u32 %v6836_v30, %v6162_v31  ;;  %v2219_v50 = vadd.f32 %v2218_v23, %v2205_v38  ;;  %v5925_v60 = vor.u32 %v6776_v36, %v5922_v40  ;;  %v2220_v37 = vpop.f32.mrf.mxu2  ;;  %v6830_v30 = vld [vmem:[#allocation14 + $0x8dc] sm:$0xf]  ;;  %v6138_v36 = vld [vmem:[#allocation14 + $0x900] sm:$0xf0]  ;;  %v6288_v38 = vld [vmem:[#allocation14 + $0x4d0] sm:$0xf] }
 0x2e6   :  { %v2165_v22 = vadd.f32 %v7371_v44, %v2151_v8  ;;  %v5981_v53 = vor.u32 %v6790_v27, %v5978_v29  ;;  %v6141_v54 = vor.u32 %v6830_v30, %v6138_v36  ;;  %v6845_v21 = vld [vmem:[#allocation14 + $0x134] sm:$0xf0]  ;;  %v6824_v30 = vld [vmem:[#allocation14 + $0x7ec] sm:$0xf] }
 0x2e7   :  { %3832 = vmatpush.bf16.msra.mxu0 %v5949_v56  ;;  %3808 = vmatpush.bf16.msrb.mxu2 %v6041_v4  ;;  %v2232_v56 = vpop.f32.mrf.mxu3  ;;  %v6885_v27 = vld [vmem:[#allocation14 + $0x774] sm:$0xf0] }
 0x2e8   :  { %v2233_v12 = vadd.f32 %v2232_v56, %v2219_v50  ;;  %v2179_v46 = vadd.f32 %v7376_v9, %v2165_v22  ;;  %v6208_v50 = vld [vmem:[#allocation14 + $0x1b0] sm:$0xf]  ;;  %v6828_v56 = vld [vmem:[#allocation14 + $0x88c] sm:$0xf]  ;;  %v6280_v9 = vld [vmem:[#allocation14 + $0x480] sm:$0xf] }
 0x2e9   :  { %3845 = vmatpush.bf16.msra.mxu1 %v6021_v0  ;;  %3821 = vmatpush.bf16.msrb.mxu3 %v6113_v15  ;;  %v2206_v0 = vpop.f32.mrf.mxu1  ;;  %v6066_v15 = vld [vmem:[#allocation14 + $0x630] sm:$0xf0]  ;;  %v6209_v58 = vor.u32 %v6849_v41, %v6208_v50  ;;  %v6416_v50 = vld [vmem:[#allocation14 + $0x9d0] sm:$0xf]  ;;  %v6901_v41 = vld [vmem:[#allocation14 + $0x9f4] sm:$0xf0] }
 0x2ea   :  { %3809 = vmatmul.bf16.vlgmr.msrb.gmra.mxu2 %v7330_v55  ;;  %v2237_v4 = vpack.c.bf16 %v2233_v12, %v2177_v63  ;;  %v2207_v14 = vadd.f32 %v2206_v0, %v2193_v18  ;;  %v6069_v43 = vor.u32 %v6812_v6, %v6066_v15  ;;  %v6808_v12 = vld [vmem:[#allocation14 + $0x56c] sm:$0xf]  ;;  %v6281_v18 = vor.u32 %v6867_v62, %v6280_v9  ;;  %v6176_v9 = vld [vmem:[#allocation14 + $0x70] sm:$0xf]  ;;  %v6841_v62 = vld [vmem:[#allocation14 + $0x94] sm:$0xf0] }
 0x2eb   :  { %3833 = vmatpush.bf16.msra.mxu0 %v5941_v10  ;;  %3857 = vmatpush.bf16.msra.mxu2 %v6101_v11  ;;  %v5986_v10 = vld [vmem:[#allocation14 + $0x310] sm:$0xf0]  ;;  %v6832_v11 = vld [vmem:[#allocation14 + $0x92c] sm:$0xf] }
 0x2ec   :  { %v2221_v23 = vadd.f32 %v2220_v37, %v2207_v14  ;;  %v5989_v24 = vor.u32 %v6792_v5, %v5986_v10  ;;  %v6149_v25 = vor.u32 %v6832_v11, %v6146_v13  ;;  %v6122_v10 = vld [vmem:[#allocation14 + $0x860] sm:$0xf0]  ;;  %v6272_v11 = vld [vmem:[#allocation14 + $0x430] sm:$0xf]  ;;  %v6865_v13 = vld [vmem:[#allocation14 + $0x454] sm:$0xf0]  ;;  %v7405_v14 = vpop.f32.mrf.mxu0 }
 0x2ed   :  { %3846 = vmatpush.bf16.msra.mxu1 %v6013_v16  ;;  %3822 = vmatpush.bf16.msrb.mxu3 %v6105_v47  ;;  %v2241_v16 = vrot.slane %v2237_v4, 3  ;;  %v6869_v47 = vld [vmem:[#allocation14 + $0x4f4] sm:$0xf0]  ;;  %v6273_v29 = vor.u32 %v6865_v13, %v6272_v11  ;;  %v6328_v11 = vld [vmem:[#allocation14 + $0x660] sm:$0xf] }
 0x2ee   :  { %v6289_v61 = vor.u32 %v6869_v47, %v6288_v38  ;;  %v6193_v38 = vor.u32 %v6845_v21, %v6192_v28  ;;  %v6879_v13 = vld [vmem:[#allocation14 + $0x684] sm:$0xf0]  ;;  %v6897_v28 = vld [vmem:[#allocation14 + $0x954] sm:$0xf0] }
 0x2ef   :  { %3834 = vmatpush.bf16.msra.mxu0 %v5933_v33  ;;  %3858 = vmatpush.bf16.msra.mxu2 %v6093_v34  ;;  %v2246_v31 = vsel %vm2243_vm0, %v2237_v4, %v2241_v16  ;;  %v2248_v32 = vsel %vm2247_vm1, %v2237_v4, %v2241_v16  ;;  %v2252_v33 = vsel %vm2251_vm2, %v2237_v4, %v2241_v16  ;;  %v2234_v42 = vpop.f32.mrf.mxu3 }
 0x2f0   :  { %3823 = vmatmul.bf16.vlgmr.msrb.gmra.mxu3 %v7334_v19  ;;  %v2256_v34 = vsel %vm2255_vm3, %v2237_v4, %v2241_v16  ;;  %v2254_v44 = vrot.slane %v2252_v33, 2  ;;  %2279 = vst [vmem:[#allocation17] sm:$0x3] %v2246_v31  ;;  %v2235_v48 = vadd.f32 %v2234_v42, %v2221_v23  ;;  %v6806_v16 = vld [vmem:[#allocation14 + $0x51c] sm:$0xf] }
 0x2f1   :  { %3847 = vmatpush.bf16.msra.mxu1 %v6005_v39  ;;  %3871 = vmatpush.bf16.msra.mxu3 %v6165_v45  ;;  %v2250_v39 = vrot.slane %v2248_v32, 1  ;;  %v2258_v40 = vrot.slane %v2256_v34, 3  ;;  %v6810_v45 = vld [vmem:[#allocation14 + $0x5bc] sm:$0xf]  ;;  %v7408_v22 = vpop.f32.mrf.mxu1  ;;  %v6114_v31 = vld [vmem:[#allocation14 + $0x810] sm:$0xf0]  ;;  %v7410_v34 = vpop.f32.mrf.mxu2 }
 0x2f2   :  { %2281 = vst [vmem:[#allocation17 + $0x14] sm:$0x3] %v2254_v44  ;;  %v6061_v0 = vor.u32 %v6810_v45, %v6058_v49  ;;  %v6264_v32 = vld [vmem:[#allocation14 + $0x3e0] sm:$0xf]  ;;  %v6863_v33 = vld [vmem:[#allocation14 + $0x404] sm:$0xf0] }
 0x2f3   :  { %3835 = vmatpush.bf16.msra.mxu0 %v5925_v60  ;;  %3859 = vmatpush.bf16.msra.mxu2 %v6085_v59  ;;  %2280 = vst [vmem:[#allocation17 + $0xa] sm:$0x3] %v2250_v39  ;;  %v6130_v60 = vld [vmem:[#allocation14 + $0x8b0] sm:$0xf0]  ;;  %v2238_v59 = vpack.c.bf16 %v2235_v48, %v2179_v46  ;;  %v6184_v39 = vld [vmem:[#allocation14 + $0xc0] sm:$0xf]  ;;  %v6265_v42 = vor.u32 %v6863_v33, %v6264_v32 }
 0x2f4   :  { %2282 = vst [vmem:[#allocation17 + $0x1e] sm:$0x3] %v2258_v40  ;;  %v6133_v2 = vor.u32 %v6828_v56, %v6130_v60  ;;  %v6843_v44 = vld [vmem:[#allocation14 + $0xe4] sm:$0xf0]  ;;  %v6117_v40 = vor.u32 %v6824_v30, %v6114_v31  ;;  %v6822_v46 = vld [vmem:[#allocation14 + $0x79c] sm:$0xf] }
 0x2f5   :  { %3848 = vmatpush.bf16.msra.mxu1 %v5997_v1  ;;  %3872 = vmatpush.bf16.msra.mxu3 %v6157_v52  ;;  %v2242_v63 = vrot.slane %v2238_v59, 3  ;;  %v6050_v1 = vld [vmem:[#allocation14 + $0x590] sm:$0xf0]  ;;  %v6200_v52 = vld [vmem:[#allocation14 + $0x160] sm:$0xf] }
 0x2f6   :  { %v6201_v23 = vor.u32 %v6847_v57, %v6200_v52  ;;  %v6883_v45 = vld [vmem:[#allocation14 + $0x724] sm:$0xf0]  ;;  %v6106_v48 = vld [vmem:[#allocation14 + $0x7c0] sm:$0xf0]  ;;  %v6861_v49 = vld [vmem:[#allocation14 + $0x3b4] sm:$0xf0] }
 0x2f7   :  { %3836 = vmatpush.bf16.msra.mxu0 %v5917_v35  ;;  %3860 = vmatpush.bf16.msra.mxu2 %v6077_v17  ;;  %v2261_v5 = vsel %vm2243_vm0, %v2238_v59, %v2242_v63  ;;  %v2262_v8 = vsel %vm2247_vm1, %v2238_v59, %v2242_v63  ;;  %v2265_v4 = vsel %vm2251_vm2, %v2238_v59, %v2242_v63  ;;  %v7414_v60 = vpop.f32.mrf.mxu3  ;;  %v6899_v52 = vld [vmem:[#allocation14 + $0x9a4] sm:$0xf0]  ;;  %v7419_v57 = vld [vmem:[#allocation16 + $0x2] sm:$0x3]  ;;  %v6320_v30 = vld [vmem:[#allocation14 + $0x610] sm:$0xf] }
 0x2f8   :  { %v2268_v37 = vsel %vm2255_vm3, %v2238_v59, %v2242_v63  ;;  %v2264_v35 = vrot.slane %v2262_v8, 1  ;;  %v2267_v6 = vrot.slane %v2265_v4, 2  ;;  %2283 = vst [vmem:[#allocation17 + $0x28] sm:$0x3] %v2261_v5  ;;  %v6053_v17 = vor.u32 %v6808_v12, %v6050_v1  ;;  %v6336_v63 = vld [vmem:[#allocation14 + $0x6b0] sm:$0xf] }
 0x2f9   :  { %3849 = vmatpush.bf16.msra.mxu1 %v5989_v24  ;;  %3873 = vmatpush.bf16.msra.mxu3 %v6149_v25  ;;  %v2270_v15 = vrot.slane %v2268_v37, 3  ;;  %v6125_v24 = vor.u32 %v6826_v3, %v6122_v10  ;;  %v6352_v25 = vld [vmem:[#allocation14 + $0x750] sm:$0xf]  ;;  %v6109_v59 = vor.u32 %v6822_v46, %v6106_v48  ;;  %v6417_v12 = vor.u32 %v6901_v41, %v6416_v50  ;;  %v6881_v1 = vld [vmem:[#allocation14 + $0x6d4] sm:$0xf0]  ;;  %v7421_v8 = vpop.f32.mrf.mxu2 }
 0x2fa   :  { %3837 = vmatmul.bf16.vlgmr.msra.gmra.mxu0 %v7322_v7  ;;  %2284 = vst [vmem:[#allocation17 + $0x32] sm:$0x3] %v2264_v35  ;;  %v6353_v47 = vor.u32 %v6885_v27, %v6352_v25  ;;  %v6177_v3 = vor.u32 %v6841_v62, %v6176_v9  ;;  %v6168_v5 = vld [vmem:[#allocation14 + $0x20] sm:$0xf]  ;;  %v6337_v4 = vor.u32 %v6881_v1, %v6336_v63  ;;  %v6839_v10 = vld [vmem:[#allocation14 + $0x44] sm:$0xf0] }
 0x2fb   :  { %4321 = vmatpush.bf16.msrb.mxu0 %v6225_v20  ;;  %3861 = vmatpush.bf16.msra.mxu2 %v6069_v43  ;;  %v6042_v20 = vld [vmem:[#allocation14 + $0x540] sm:$0xf0]  ;;  %2285 = vst [vmem:[#allocation17 + $0x3c] sm:$0x3] %v2267_v6  ;;  %v6344_v43 = vld [vmem:[#allocation14 + $0x700] sm:$0xf]  ;;  %v6329_v27 = vor.u32 %v6879_v13, %v6328_v11 }
 0x2fc   :  { %2286 = vst [vmem:[#allocation17 + $0x46] sm:$0x3] %v2270_v15  ;;  %v6045_v36 = vor.u32 %v6806_v16, %v6042_v20  ;;  %v6345_v56 = vor.u32 %v6883_v45, %v6344_v43  ;;  %v6852_v6 = vld [vmem:[#allocation14 + $0x254] sm:$0xf]  ;;  %v6226_v15 = vld [vmem:[#allocation14 + $0x278] sm:$0xf0] }
 0x2fd   :  { %3850 = vmatpush.bf16.msra.mxu1 %v5981_v53  ;;  %3874 = vmatpush.bf16.msra.mxu3 %v6141_v54  ;;  %v7412_v53 = vpop.f32.mrf.mxu0  ;;  %v6185_v54 = vor.u32 %v6843_v44, %v6184_v39  ;;  %v6240_v16 = vld [vmem:[#allocation14 + $0x2f0] sm:$0xf]  ;;  %v2354_v25 = vperm.slane %v7419_v57, 1  ;;  %v6877_v31 = vld [vmem:[#allocation14 + $0x634] sm:$0xf0] }
 0x2fe   :  { %v6400_v20 = vld [vmem:[#allocation14 + $0x930] sm:$0xf]  ;;  %v6232_v39 = vld [vmem:[#allocation14 + $0x2a0] sm:$0xf]  ;;  %v6895_v43 = vld [vmem:[#allocation14 + $0x904] sm:$0xf0] }
 0x2ff   :  { %4322 = vmatpush.bf16.msrb.mxu0 %v6217_v51  ;;  %3862 = vmatpush.bf16.msra.mxu2 %v6061_v0  ;;  %v6256_v51 = vld [vmem:[#allocation14 + $0x390] sm:$0xf]  ;;  %v7416_v0 = vpop.f32.mrf.mxu1  ;;  %v7426_v44 = vpop.f32.mrf.mxu3  ;;  %v6868_v45 = vld [vmem:[#allocation14 + $0x4d4] sm:$0xf]  ;;  %v6290_v46 = vld [vmem:[#allocation14 + $0x4f8] sm:$0xf0] }
 0x300   :  { %3851 = vmatmul.bf16.vlgmr.msra.gmra.mxu1 %v7326_v26  ;;  %v6848_v9 = vld [vmem:[#allocation14 + $0x1b4] sm:$0xf]  ;;  %v6210_v63 = vld [vmem:[#allocation14 + $0x1d8] sm:$0xf0]  ;;  %v6893_v1 = vld [vmem:[#allocation14 + $0x8b4] sm:$0xf0] }
 0x301   :  { %4335 = vmatpush.bf16.msrb.mxu1 %v6289_v61  ;;  %3875 = vmatpush.bf16.msra.mxu3 %v6133_v2  ;;  %v6257_v61 = vor.u32 %v6861_v49, %v6256_v51  ;;  %v6859_v2 = vld [vmem:[#allocation14 + $0x364] sm:$0xf0]  ;;  %v6321_v51 = vor.u32 %v6877_v31, %v6320_v30  ;;  %v6873_v11 = vld [vmem:[#allocation14 + $0x594] sm:$0xf0]  ;;  %v6846_v13 = vld [vmem:[#allocation14 + $0x164] sm:$0xf] }
 0x302   :  { %v6871_v30 = vld [vmem:[#allocation14 + $0x544] sm:$0xf0] }
 0x303   :  { %4323 = vmatpush.bf16.msrb.mxu0 %v6209_v58  ;;  %3863 = vmatpush.bf16.msra.mxu2 %v6053_v17  ;;  %v6248_v58 = vld [vmem:[#allocation14 + $0x340] sm:$0xf]  ;;  %v6857_v17 = vld [vmem:[#allocation14 + $0x314] sm:$0xf0] }
 0x304   :  { %v6249_v37 = vor.u32 %v6859_v2, %v6248_v58  ;;  %v6241_v33 = vor.u32 %v6857_v17, %v6240_v16  ;;  %v6866_v2 = vld [vmem:[#allocation14 + $0x484] sm:$0xf]  ;;  %v6376_v16 = vld [vmem:[#allocation14 + $0x840] sm:$0xf]  ;;  %v6891_v17 = vld [vmem:[#allocation14 + $0x864] sm:$0xf0] }
 0x305   :  { %4336 = vmatpush.bf16.msrb.mxu1 %v6281_v18  ;;  %3876 = vmatpush.bf16.msra.mxu3 %v6125_v24  ;;  %v6408_v18 = vld [vmem:[#allocation14 + $0x980] sm:$0xf]  ;;  %v2742_v21 = vpop.f32.mrf.mxu0  ;;  %v2353_v24 = vperm.slane %v7419_v57, 0  ;;  %v6377_v57 = vor.u32 %v6891_v17, %v6376_v16  ;;  %v6880_v17 = vld [vmem:[#allocation14 + $0x6b4] sm:$0xf] }
 0x306   :  { %v6409_v35 = vor.u32 %v6899_v52, %v6408_v18  ;;  %v2743_v41 = vadd.f32 %v2742_v21, %v2354_v25  ;;  %v6282_v18 = vld [vmem:[#allocation14 + $0x4a8] sm:$0xf0] }
 0x307   :  { %4324 = vmatpush.bf16.msrb.mxu0 %v6201_v23  ;;  %3864 = vmatpush.bf16.msra.mxu2 %v6045_v36  ;;  %v6169_v23 = vor.u32 %v6839_v10, %v6168_v5  ;;  %v2756_v32 = vpop.f32.mrf.mxu1  ;;  %v6401_v36 = vor.u32 %v6897_v28, %v6400_v20  ;;  %v2687_v48 = vadd.f32 %v7405_v14, %v2353_v24  ;;  %v6304_v5 = vld [vmem:[#allocation14 + $0x570] sm:$0xf]  ;;  %v6864_v20 = vld [vmem:[#allocation14 + $0x434] sm:$0xf] }
 0x308   :  { %v6293_v14 = vor.u32 %v6868_v45, %v6290_v46  ;;  %v2757_v58 = vadd.f32 %v2756_v32, %v2743_v41  ;;  %v6305_v32 = vor.u32 %v6873_v11, %v6304_v5  ;;  %v6418_v11 = vld [vmem:[#allocation14 + $0x9f8] sm:$0xf0] }
 0x309   :  { %4337 = vmatpush.bf16.msrb.mxu1 %v6273_v29  ;;  %3877 = vmatpush.bf16.msra.mxu3 %v6117_v40  ;;  %v6229_v29 = vor.u32 %v6852_v6, %v6226_v15  ;;  %v6855_v40 = vld [vmem:[#allocation14 + $0x2c4] sm:$0xf0]  ;;  %v2701_v62 = vadd.f32 %v7408_v22, %v2687_v48  ;;  %v6213_v22 = vor.u32 %v6848_v9, %v6210_v63  ;;  %v6346_v63 = vld [vmem:[#allocation14 + $0x728] sm:$0xf0] }
 0x30a   :  { %3865 = vmatmul.bf16.vlgmr.msra.gmra.mxu2 %v7330_v55  ;;  %v6285_v15 = vor.u32 %v6866_v2, %v6282_v18 }
 0x30b   :  { %4325 = vmatpush.bf16.msrb.mxu0 %v6193_v38  ;;  %4349 = vmatpush.bf16.msrb.mxu2 %v6353_v47  ;;  %v6850_v38 = vld [vmem:[#allocation14 + $0x204] sm:$0xf]  ;;  %v6218_v47 = vld [vmem:[#allocation14 + $0x228] sm:$0xf0]  ;;  %v2715_v52 = vadd.f32 %v7410_v34, %v2701_v62  ;;  %v2689_v34 = vadd.f32 %v7412_v53, %v2353_v24 }
 0x30c   :  { %v6221_v50 = vor.u32 %v6850_v38, %v6218_v47  ;;  %v6884_v38 = vld [vmem:[#allocation14 + $0x754] sm:$0xf] }
 0x30d   :  { %4338 = vmatpush.bf16.msrb.mxu1 %v6265_v42  ;;  %3878 = vmatpush.bf16.msra.mxu3 %v6109_v59  ;;  %v6392_v42 = vld [vmem:[#allocation14 + $0x8e0] sm:$0xf]  ;;  %v2770_v49 = vpop.f32.mrf.mxu2  ;;  %v2729_v28 = vadd.f32 %v7414_v60, %v2715_v52  ;;  %v2703_v47 = vadd.f32 %v7416_v0, %v2689_v34 }
 0x30e   :  { %v6312_v59 = vld [vmem:[#allocation14 + $0x5c0] sm:$0xf] }
 0x30f   :  { %4326 = vmatpush.bf16.msrb.mxu0 %v6185_v54  ;;  %4350 = vmatpush.bf16.msrb.mxu2 %v6345_v56  ;;  %v6233_v54 = vor.u32 %v6855_v40, %v6232_v39  ;;  %v6393_v56 = vor.u32 %v6895_v43, %v6392_v42  ;;  %v2758_v21 = vpop.f32.mrf.mxu1  ;;  %v6354_v39 = vld [vmem:[#allocation14 + $0x778] sm:$0xf0]  ;;  %v6368_v40 = vld [vmem:[#allocation14 + $0x7f0] sm:$0xf]  ;;  %v6889_v42 = vld [vmem:[#allocation14 + $0x814] sm:$0xf0]  ;;  %v2717_v45 = vadd.f32 %v7421_v8, %v2703_v47 }
 0x310   :  { %3879 = vmatmul.bf16.vlgmr.msra.gmra.mxu3 %v7334_v19  ;;  %v6357_v41 = vor.u32 %v6884_v38, %v6354_v39  ;;  %v6882_v8 = vld [vmem:[#allocation14 + $0x704] sm:$0xf] }
 0x311   :  { %4339 = vmatpush.bf16.msrb.mxu1 %v6257_v61  ;;  %4363 = vmatpush.bf16.msrb.mxu3 %v6417_v12  ;;  %v6875_v61 = vld [vmem:[#allocation14 + $0x5e4] sm:$0xf0]  ;;  %v6384_v12 = vld [vmem:[#allocation14 + $0x890] sm:$0xf]  ;;  %v6349_v16 = vor.u32 %v6882_v8, %v6346_v63  ;;  %v6838_v47 = vld [vmem:[#allocation14 + $0x24] sm:$0xf] }
 0x312   :  { %v6385_v10 = vor.u32 %v6893_v1, %v6384_v12  ;;  %v6360_v12 = vld [vmem:[#allocation14 + $0x7a0] sm:$0xf] }
 0x313   :  { %4327 = vmatpush.bf16.msrb.mxu0 %v6177_v3  ;;  %4351 = vmatpush.bf16.msrb.mxu2 %v6337_v4  ;;  %v6313_v3 = vor.u32 %v6875_v61, %v6312_v59  ;;  %v2744_v4 = vpop.f32.mrf.mxu0  ;;  %v2784_v6 = vpop.f32.mrf.mxu3  ;;  %v6186_v59 = vld [vmem:[#allocation14 + $0xe8] sm:$0xf0] }
 0x314   :  { %v2745_v31 = vadd.f32 %v2744_v4, %v2354_v25  ;;  %v6887_v4 = vld [vmem:[#allocation14 + $0x7c4] sm:$0xf0] }
 0x315   :  { %4340 = vmatpush.bf16.msrb.mxu1 %v6249_v37  ;;  %4364 = vmatpush.bf16.msrb.mxu3 %v6409_v35  ;;  %v2771_v37 = vadd.f32 %v2770_v49, %v2757_v58  ;;  %v6202_v35 = vld [vmem:[#allocation14 + $0x188] sm:$0xf0]  ;;  %v2772_v60 = vpop.f32.mrf.mxu2 }
 0x316   :  { %v6205_v24 = vor.u32 %v6846_v13, %v6202_v35  ;;  %v2759_v43 = vadd.f32 %v2758_v21, %v2745_v31  ;;  %v6266_v49 = vld [vmem:[#allocation14 + $0x408] sm:$0xf0]  ;;  %v6338_v21 = vld [vmem:[#allocation14 + $0x6d8] sm:$0xf0] }
 0x317   :  { %4328 = vmatpush.bf16.msrb.mxu0 %v6169_v23  ;;  %4352 = vmatpush.bf16.msrb.mxu2 %v6329_v27  ;;  %v2785_v23 = vadd.f32 %v2784_v6, %v2771_v37  ;;  %v6274_v27 = vld [vmem:[#allocation14 + $0x458] sm:$0xf0]  ;;  %v6860_v37 = vld [vmem:[#allocation14 + $0x394] sm:$0xf]  ;;  %v6410_v31 = vld [vmem:[#allocation14 + $0x9a8] sm:$0xf0] }
 0x318   :  { %v6277_v25 = vor.u32 %v6864_v20, %v6274_v27  ;;  %v2773_v0 = vadd.f32 %v2772_v60, %v2759_v43  ;;  %v6840_v6 = vld [vmem:[#allocation14 + $0x74] sm:$0xf]  ;;  %v6878_v60 = vld [vmem:[#allocation14 + $0x664] sm:$0xf] }
 0x319   :  { %4341 = vmatpush.bf16.msrb.mxu1 %v6241_v33  ;;  %4365 = vmatpush.bf16.msrb.mxu3 %v6401_v36  ;;  %v6844_v33 = vld [vmem:[#allocation14 + $0x114] sm:$0xf]  ;;  %v6194_v36 = vld [vmem:[#allocation14 + $0x138] sm:$0xf0]  ;;  %v2789_v53 = vpack.c.bf16 %v2785_v23, %v2729_v28  ;;  %v6858_v23 = vld [vmem:[#allocation14 + $0x344] sm:$0xf] }
 0x31a   :  { %4329 = vmatmul.bf16.vlgmr.msrb.gmra.mxu0 %v7322_v7 }
 0x31b   :  { %4377 = vmatpush.bf16.msra.mxu0 %v6229_v29  ;;  %4353 = vmatpush.bf16.msrb.mxu2 %v6321_v51  ;;  %v6296_v29 = vld [vmem:[#allocation14 + $0x520] sm:$0xf]  ;;  %v2793_v46 = vrot.slane %v2789_v53, 3  ;;  %v6862_v51 = vld [vmem:[#allocation14 + $0x3e4] sm:$0xf]  ;;  %v2786_v18 = vpop.f32.mrf.mxu3 }
 0x31c   :  { %v6297_v48 = vor.u32 %v6871_v30, %v6296_v29  ;;  %v6269_v52 = vor.u32 %v6862_v51, %v6266_v49  ;;  %v2787_v5 = vadd.f32 %v2786_v18, %v2773_v0  ;;  %v6250_v29 = vld [vmem:[#allocation14 + $0x368] sm:$0xf0]  ;;  %v6898_v30 = vld [vmem:[#allocation14 + $0x984] sm:$0xf]  ;;  %v6402_v51 = vld [vmem:[#allocation14 + $0x958] sm:$0xf0] }
 0x31d   :  { %4342 = vmatpush.bf16.msrb.mxu1 %v6233_v54  ;;  %4366 = vmatpush.bf16.msrb.mxu3 %v6393_v56  ;;  %v6369_v54 = vor.u32 %v6889_v42, %v6368_v40  ;;  %v6842_v56 = vld [vmem:[#allocation14 + $0xc4] sm:$0xf]  ;;  %v2797_v61 = vsel %vm2243_vm0, %v2789_v53, %v2793_v46  ;;  %v2798_v9 = vsel %vm2247_vm1, %v2789_v53, %v2793_v46 }
 0x31e   :  { %v2801_v62 = vsel %vm2251_vm2, %v2789_v53, %v2793_v46  ;;  %v2800_v1 = vrot.slane %v2798_v9, 1  ;;  %2827 = vst [vmem:[#allocation17 + $0x2] sm:$0x3] %v2797_v61  ;;  %v6189_v35 = vor.u32 %v6842_v56, %v6186_v59  ;;  %v6341_v42 = vor.u32 %v6880_v17, %v6338_v21  ;;  %v6322_v56 = vld [vmem:[#allocation14 + $0x638] sm:$0xf0] }
 0x31f   :  { %4378 = vmatpush.bf16.msra.mxu0 %v6221_v50  ;;  %4354 = vmatpush.bf16.msrb.mxu2 %v6313_v3  ;;  %v6197_v50 = vor.u32 %v6844_v33, %v6194_v36  ;;  %v2803_v58 = vrot.slane %v2801_v62, 2  ;;  %v2731_v3 = vadd.f32 %v7426_v44, %v2717_v45  ;;  %v6361_v44 = vor.u32 %v6887_v4, %v6360_v12  ;;  %v6856_v45 = vld [vmem:[#allocation14 + $0x2f4] sm:$0xf]  ;;  %v6854_v59 = vld [vmem:[#allocation14 + $0x2a4] sm:$0xf] }
 0x320   :  { %4343 = vmatmul.bf16.vlgmr.msrb.gmra.mxu1 %v7326_v26  ;;  %2828 = vst [vmem:[#allocation17 + $0xc] sm:$0x3] %v2800_v1  ;;  %v6253_v43 = vor.u32 %v6858_v23, %v6250_v29  ;;  %v6234_v61 = vld [vmem:[#allocation14 + $0x2c8] sm:$0xf0]  ;;  %v6894_v9 = vld [vmem:[#allocation14 + $0x8e4] sm:$0xf] }
 0x321   :  { %4391 = vmatpush.bf16.msra.mxu1 %v6293_v14  ;;  %4367 = vmatpush.bf16.msrb.mxu3 %v6385_v10  ;;  %v2804_v14 = vsel %vm2255_vm3, %v2789_v53, %v2793_v46  ;;  %v6900_v10 = vld [vmem:[#allocation14 + $0x9d4] sm:$0xf]  ;;  %2829 = vst [vmem:[#allocation17 + $0x16] sm:$0x3] %v2803_v58  ;;  %v2790_v13 = vpack.c.bf16 %v2787_v5, %v2731_v3  ;;  %v6170_v53 = vld [vmem:[#allocation14 + $0x48] sm:$0xf0] }
 0x322   :  { %v2806_v2 = vrot.slane %v2804_v14, 3  ;;  %v6421_v28 = vor.u32 %v6900_v10, %v6418_v11  ;;  %v6242_v46 = vld [vmem:[#allocation14 + $0x318] sm:$0xf0]  ;;  %v6173_v49 = vor.u32 %v6838_v47, %v6170_v53  ;;  %v6394_v62 = vld [vmem:[#allocation14 + $0x908] sm:$0xf0]  ;;  %v6237_v8 = vor.u32 %v6854_v59, %v6234_v61  ;;  %v3248_v11 = vpop.f32.mrf.mxu1 }
 0x323   :  { %4379 = vmatpush.bf16.msra.mxu0 %v6213_v22  ;;  %4355 = vmatpush.bf16.msrb.mxu2 %v6305_v32  ;;  %v6258_v22 = vld [vmem:[#allocation14 + $0x3b8] sm:$0xf0]  ;;  %v2794_v20 = vrot.slane %v2790_v13, 3  ;;  %v6397_v63 = vor.u32 %v6894_v9, %v6394_v62  ;;  %v6874_v12 = vld [vmem:[#allocation14 + $0x5c4] sm:$0xf] }
 0x324   :  { %2830 = vst [vmem:[#allocation17 + $0x20] sm:$0x3] %v2806_v2  ;;  %v6261_v34 = vor.u32 %v6860_v37, %v6258_v22  ;;  %v6314_v1 = vld [vmem:[#allocation14 + $0x5e8] sm:$0xf0]  ;;  %v6892_v58 = vld [vmem:[#allocation14 + $0x894] sm:$0xf]  ;;  %v3234_v22 = vpop.f32.mrf.mxu0 }
 0x325   :  { %4392 = vmatpush.bf16.msra.mxu1 %v6285_v15  ;;  %4368 = vmatpush.bf16.msrb.mxu3 %v6377_v57  ;;  %v6178_v15 = vld [vmem:[#allocation14 + $0x98] sm:$0xf0]  ;;  %v2809_v32 = vsel %vm2243_vm0, %v2790_v13, %v2794_v20  ;;  %v2810_v33 = vsel %vm2247_vm1, %v2790_v13, %v2794_v20  ;;  %v2813_v36 = vsel %vm2251_vm2, %v2790_v13, %v2794_v20  ;;  %v6872_v3 = vld [vmem:[#allocation14 + $0x574] sm:$0xf]  ;;  %v6890_v4 = vld [vmem:[#allocation14 + $0x844] sm:$0xf] }
 0x326   :  { %v6181_v27 = vor.u32 %v6840_v6, %v6178_v15  ;;  %v2816_v38 = vsel %vm2255_vm3, %v2790_v13, %v2794_v20  ;;  %v2815_v39 = vrot.slane %v2813_v36, 2  ;;  %2831 = vst [vmem:[#allocation17 + $0x2a] sm:$0x3] %v2809_v32  ;;  %v6413_v57 = vor.u32 %v6898_v30, %v6410_v31  ;;  %v6386_v2 = vld [vmem:[#allocation14 + $0x8b8] sm:$0xf0] }
 0x327   :  { %4380 = vmatpush.bf16.msra.mxu0 %v6205_v24  ;;  %4356 = vmatpush.bf16.msrb.mxu2 %v6297_v48  ;;  %v2812_v24 = vrot.slane %v2810_v33, 1  ;;  %v2818_v40 = vrot.slane %v2816_v38, 3  ;;  %v6896_v48 = vld [vmem:[#allocation14 + $0x934] sm:$0xf]  ;;  %v6317_v18 = vor.u32 %v6874_v12, %v6314_v1  ;;  %v6306_v5 = vld [vmem:[#allocation14 + $0x598] sm:$0xf0] }
 0x328   :  { %2833 = vst [vmem:[#allocation17 + $0x3e] sm:$0x3] %v2815_v39  ;;  %v6378_v37 = vld [vmem:[#allocation14 + $0x868] sm:$0xf0]  ;;  %v6309_v10 = vor.u32 %v6872_v3, %v6306_v5  ;;  %v6888_v6 = vld [vmem:[#allocation14 + $0x7f4] sm:$0xf] }
 0x329   :  { %4393 = vmatpush.bf16.msra.mxu1 %v6277_v25  ;;  %4369 = vmatpush.bf16.msrb.mxu3 %v6369_v54  ;;  %v6330_v25 = vld [vmem:[#allocation14 + $0x688] sm:$0xf0]  ;;  %2832 = vst [vmem:[#allocation17 + $0x34] sm:$0x3] %v2812_v24  ;;  %v6876_v54 = vld [vmem:[#allocation14 + $0x614] sm:$0xf]  ;;  %v6381_v13 = vor.u32 %v6890_v4, %v6378_v37 }
 0x32a   :  { %4357 = vmatmul.bf16.vlgmr.msrb.gmra.mxu2 %v7330_v55  ;;  %2834 = vst [vmem:[#allocation17 + $0x48] sm:$0x3] %v2818_v40  ;;  %v6333_v0 = vor.u32 %v6878_v60, %v6330_v25  ;;  %v6325_v14 = vor.u32 %v6876_v54, %v6322_v56  ;;  %v6370_v15 = vld [vmem:[#allocation14 + $0x818] sm:$0xf0]  ;;  %v6886_v20 = vld [vmem:[#allocation14 + $0x7a4] sm:$0xf]  ;;  %v3250_v23 = vpop.f32.mrf.mxu1 }
 0x32b   :  { %4381 = vmatpush.bf16.msra.mxu0 %v6197_v50  ;;  %4405 = vmatpush.bf16.msra.mxu2 %v6357_v41  ;;  %v6245_v50 = vor.u32 %v6856_v45, %v6242_v46  ;;  %v6405_v41 = vor.u32 %v6896_v48, %v6402_v51  ;;  %v6373_v17 = vor.u32 %v6888_v6, %v6370_v15  ;;  %v2899_v29 = vld [vmem:[#allocation16 + $0x4] sm:$0x3]  ;;  %v3447_v15 = vld [vmem:[#allocation16 + $0x6] sm:$0x3] }
 0x32c   :  { %v2901_v31 = vperm.slane %v2899_v29, 0  ;;  %v2902_v32 = vperm.slane %v2899_v29, 1 }
 0x32d   :  { %4394 = vmatpush.bf16.msra.mxu1 %v6269_v52  ;;  %4370 = vmatpush.bf16.msrb.mxu3 %v6361_v44  ;;  %v6389_v52 = vor.u32 %v6892_v58, %v6386_v2 }
 0x32e   :  { %v3235_v47 = vadd.f32 %v3234_v22, %v2901_v31 }
 0x32f   :  { %4382 = vmatpush.bf16.msra.mxu0 %v6189_v35  ;;  %4406 = vmatpush.bf16.msra.mxu2 %v6349_v16  ;;  %v6298_v35 = vld [vmem:[#allocation14 + $0x548] sm:$0xf0]  ;;  %v3262_v16 = vpop.f32.mrf.mxu2 }
 0x330   :  { %4371 = vmatmul.bf16.vlgmr.msrb.gmra.mxu3 %v7334_v19  ;;  %v3249_v60 = vadd.f32 %v3248_v11, %v3235_v47 }
 0x331   :  { %4395 = vmatpush.bf16.msra.mxu1 %v6261_v34  ;;  %4419 = vmatpush.bf16.msra.mxu3 %v6421_v28  ;;  %v6362_v34 = vld [vmem:[#allocation14 + $0x7c8] sm:$0xf0]  ;;  %v3236_v28 = vpop.f32.mrf.mxu0 }
 0x332   :  { %v6365_v21 = vor.u32 %v6886_v20, %v6362_v34  ;;  %v3263_v39 = vadd.f32 %v3262_v16, %v3249_v60  ;;  %v3237_v45 = vadd.f32 %v3236_v28, %v2901_v31 }
 0x333   :  { %4383 = vmatpush.bf16.msra.mxu0 %v6181_v27  ;;  %4407 = vmatpush.bf16.msra.mxu2 %v6341_v42 }
 0x334   :  { %v3251_v51 = vadd.f32 %v3250_v23, %v3237_v45 }
 0x335   :  { %4396 = vmatpush.bf16.msra.mxu1 %v6253_v43  ;;  %4420 = vmatpush.bf16.msra.mxu3 %v6413_v57 }
 0x337   :  { %4384 = vmatpush.bf16.msra.mxu0 %v6173_v49  ;;  %4408 = vmatpush.bf16.msra.mxu2 %v6333_v0  ;;  %v3264_v27 = vpop.f32.mrf.mxu2 }
 0x339   :  { %4397 = vmatpush.bf16.msra.mxu1 %v6245_v50  ;;  %4421 = vmatpush.bf16.msra.mxu3 %v6405_v41  ;;  %v3290_v30 = vpop.f32.mrf.mxu0  ;;  %v3265_v50 = vadd.f32 %v3264_v27, %v3251_v51 }
 0x33a   :  { %4385 = vmatmul.bf16.vlgmr.msra.gmra.mxu0 %v7322_v7  ;;  %v6870_v7 = vld [vmem:[#allocation14 + $0x524] sm:$0xf]  ;;  %v3291_v53 = vadd.f32 %v3290_v30, %v2902_v32 }
 0x33b   :  { %4409 = vmatpush.bf16.msra.mxu2 %v6325_v14  ;;  %v6301_v44 = vor.u32 %v6870_v7, %v6298_v35 }
 0x33d   :  { %4398 = vmatpush.bf16.msra.mxu1 %v6237_v8  ;;  %4422 = vmatpush.bf16.msra.mxu3 %v6397_v63  ;;  %v3304_v33 = vpop.f32.mrf.mxu1 }
 0x33e   :  { %v3305_v24 = vadd.f32 %v3304_v33, %v3291_v53 }
 0x33f   :  { %4410 = vmatpush.bf16.msra.mxu2 %v6317_v18 }
 0x340   :  { %4399 = vmatmul.bf16.vlgmr.msra.gmra.mxu1 %v7326_v26  ;;  %v3276_v26 = vpop.f32.mrf.mxu3 }
 0x341   :  { %4423 = vmatpush.bf16.msra.mxu3 %v6389_v52  ;;  %v3292_v40 = vpop.f32.mrf.mxu0 }
 0x342   :  { %v3293_v46 = vadd.f32 %v3292_v40, %v2902_v32 }
 0x343   :  { %4411 = vmatpush.bf16.msra.mxu2 %v6309_v10 }
 0x345   :  { %4424 = vmatpush.bf16.msra.mxu3 %v6381_v13  ;;  %v3306_v57 = vpop.f32.mrf.mxu1 }
 0x346   :  { %v3307_v49 = vadd.f32 %v3306_v57, %v3293_v46 }
 0x347   :  { %4412 = vmatpush.bf16.msra.mxu2 %v6301_v44  ;;  %v3449_v44 = vperm.slane %v3447_v15, 0 }
 0x348   :  { %v3278_v36 = vpop.f32.mrf.mxu3 }
 0x349   :  { %4425 = vmatpush.bf16.msra.mxu3 %v6373_v17  ;;  %v3279_v63 = vadd.f32 %v3278_v36, %v3265_v50  ;;  %v3450_v17 = vperm.slane %v3447_v15, 1 }
 0x34a   :  { %4413 = vmatmul.bf16.vlgmr.msra.gmra.mxu2 %v7330_v55  ;;  %v3277_v55 = vadd.f32 %v3276_v26, %v3263_v39 }
 0x34d   :  { %4426 = vmatpush.bf16.msra.mxu3 %v6365_v21  ;;  %v3318_v38 = vpop.f32.mrf.mxu2 }
 0x34e   :  { %v3319_v42 = vadd.f32 %v3318_v38, %v3305_v24 }
 0x350   :  { %4427 = vmatmul.bf16.vlgmr.msra.gmra.mxu3 %v7334_v19 }
 0x353   :  { %v3332_v43 = vpop.f32.mrf.mxu3 }
 0x354   :  { %v3333_v25 = vadd.f32 %v3332_v43, %v3319_v42 }
 0x355   :  { %v3320_v48 = vpop.f32.mrf.mxu2 }
 0x356   :  { %v3337_v19 = vpack.c.bf16 %v3333_v25, %v3277_v55  ;;  %v3321_v41 = vadd.f32 %v3320_v48, %v3307_v49 }
 0x357   :  { %v3782_v22 = vpop.f32.mrf.mxu0 }
 0x358   :  { %v3341_v0 = vrot.slane %v3337_v19, 3  ;;  %v3783_v21 = vadd.f32 %v3782_v22, %v3449_v44 }
 0x35a   :  { %v3345_v54 = vsel %vm2243_vm0, %v3337_v19, %v3341_v0  ;;  %v3346_v56 = vsel %vm2247_vm1, %v3337_v19, %v3341_v0  ;;  %v3349_v59 = vsel %vm2251_vm2, %v3337_v19, %v3341_v0  ;;  %v3352_v61 = vsel %vm2255_vm3, %v3337_v19, %v3341_v0 }
 0x35b   :  { %v3348_v9 = vrot.slane %v3346_v56, 1  ;;  %v3351_v62 = vrot.slane %v3349_v59, 2  ;;  %v3354_v14 = vrot.slane %v3352_v61, 3  ;;  %3375 = vst [vmem:[#allocation17 + $0x4] sm:$0x3] %v3345_v54  ;;  %v3334_v8 = vpop.f32.mrf.mxu3 }
 0x35c   :  { %v3335_v12 = vadd.f32 %v3334_v8, %v3321_v41 }
 0x35d   :  { %3376 = vst [vmem:[#allocation17 + $0xe] sm:$0x3] %v3348_v9  ;;  %v3796_v10 = vpop.f32.mrf.mxu1 }
 0x35e   :  { %3377 = vst [vmem:[#allocation17 + $0x18] sm:$0x3] %v3351_v62  ;;  %v3338_v1 = vpack.c.bf16 %v3335_v12, %v3279_v63  ;;  %v3797_v23 = vadd.f32 %v3796_v10, %v3783_v21 }
 0x35f   :  { %3378 = vst [vmem:[#allocation17 + $0x22] sm:$0x3] %v3354_v14  ;;  %v3784_v13 = vpop.f32.mrf.mxu0 }
 0x360   :  { %v3342_v58 = vrot.slane %v3338_v1, 3  ;;  %v3785_v47 = vadd.f32 %v3784_v13, %v3449_v44 }
 0x362   :  { %v3357_v2 = vsel %vm2243_vm0, %v3338_v1, %v3342_v58  ;;  %v3358_v18 = vsel %vm2247_vm1, %v3338_v1, %v3342_v58  ;;  %v3361_v52 = vsel %vm2251_vm2, %v3338_v1, %v3342_v58  ;;  %v3364_v3 = vsel %vm2255_vm3, %v3338_v1, %v3342_v58 }
 0x363   :  { %v3360_v5 = vrot.slane %v3358_v18, 1  ;;  %v3363_v4 = vrot.slane %v3361_v52, 2  ;;  %v3366_v37 = vrot.slane %v3364_v3, 3  ;;  %3379 = vst [vmem:[#allocation17 + $0x2c] sm:$0x3] %v3357_v2 }
 0x364   :  { %v3995_v3 = vld [vmem:[#allocation16 + $0x8] sm:$0x3] }
 0x365   :  { %3380 = vst [vmem:[#allocation17 + $0x36] sm:$0x3] %v3360_v5  ;;  %v3798_v35 = vpop.f32.mrf.mxu1 }
 0x366   :  { %3381 = vst [vmem:[#allocation17 + $0x40] sm:$0x3] %v3363_v4  ;;  %v3799_v39 = vadd.f32 %v3798_v35, %v3785_v47  ;;  %v3997_v4 = vperm.slane %v3995_v3, 0 }
 0x367   :  { %3382 = vst [vmem:[#allocation17 + $0x4a] sm:$0x3] %v3366_v37  ;;  %v3998_v37 = vperm.slane %v3995_v3, 1 }
 0x36d   :  { %v3810_v11 = vpop.f32.mrf.mxu2 }
 0x36e   :  { %v3811_v29 = vadd.f32 %v3810_v11, %v3797_v23 }
 0x373   :  { %v3824_v7 = vpop.f32.mrf.mxu3 }
 0x374   :  { %v3825_v33 = vadd.f32 %v3824_v7, %v3811_v29 }
 0x375   :  { %v3812_v6 = vpop.f32.mrf.mxu2 }
 0x376   :  { %v3813_v43 = vadd.f32 %v3812_v6, %v3799_v39 }
 0x377   :  { %v3838_v16 = vpop.f32.mrf.mxu0 }
 0x378   :  { %v3839_v26 = vadd.f32 %v3838_v16, %v3450_v17 }
 0x37b   :  { %v3826_v34 = vpop.f32.mrf.mxu3 }
 0x37c   :  { %v3827_v0 = vadd.f32 %v3826_v34, %v3813_v43 }
 0x37d   :  { %v3852_v20 = vpop.f32.mrf.mxu1 }
 0x37e   :  { %v3853_v27 = vadd.f32 %v3852_v20, %v3839_v26 }
 0x37f   :  { %v3840_v30 = vpop.f32.mrf.mxu0 }
 0x380   :  { %v3841_v53 = vadd.f32 %v3840_v30, %v3450_v17 }
 0x385   :  { %v3854_v36 = vpop.f32.mrf.mxu1 }
 0x386   :  { %v3855_v40 = vadd.f32 %v3854_v36, %v3841_v53 }
 0x38d   :  { %v3866_v28 = vpop.f32.mrf.mxu2 }
 0x38e   :  { %v3867_v31 = vadd.f32 %v3866_v28, %v3853_v27 }
 0x393   :  { %v3880_v32 = vpop.f32.mrf.mxu3 }
 0x394   :  { %v3881_v38 = vadd.f32 %v3880_v32, %v3867_v31 }
 0x395   :  { %v3868_v24 = vpop.f32.mrf.mxu2 }
 0x396   :  { %v3885_v60 = vpack.c.bf16 %v3881_v38, %v3825_v33  ;;  %v3869_v55 = vadd.f32 %v3868_v24, %v3855_v40 }
 0x397   :  { %v4330_v63 = vpop.f32.mrf.mxu0 }
 0x398   :  { %v3889_v42 = vrot.slane %v3885_v60, 3  ;;  %v4331_v11 = vadd.f32 %v4330_v63, %v3997_v4 }
 0x39a   :  { %v3893_v57 = vsel %vm2243_vm0, %v3885_v60, %v3889_v42  ;;  %v3894_v25 = vsel %vm2247_vm1, %v3885_v60, %v3889_v42  ;;  %v3897_v45 = vsel %vm2251_vm2, %v3885_v60, %v3889_v42  ;;  %v3900_v46 = vsel %vm2255_vm3, %v3885_v60, %v3889_v42 }
 0x39b   :  { %v3896_v19 = vrot.slane %v3894_v25, 1  ;;  %v3899_v48 = vrot.slane %v3897_v45, 2  ;;  %v3902_v51 = vrot.slane %v3900_v46, 3  ;;  %3923 = vst [vmem:[#allocation17 + $0x6] sm:$0x3] %v3893_v57  ;;  %v3882_v49 = vpop.f32.mrf.mxu3 }
 0x39c   :  { %v3883_v50 = vadd.f32 %v3882_v49, %v3869_v55 }
 0x39d   :  { %3924 = vst [vmem:[#allocation17 + $0x10] sm:$0x3] %v3896_v19  ;;  %v4344_v12 = vpop.f32.mrf.mxu1 }
 0x39e   :  { %3925 = vst [vmem:[#allocation17 + $0x1a] sm:$0x3] %v3899_v48  ;;  %v3886_v41 = vpack.c.bf16 %v3883_v50, %v3827_v0  ;;  %v4345_v35 = vadd.f32 %v4344_v12, %v4331_v11 }
 0x39f   :  { %3926 = vst [vmem:[#allocation17 + $0x24] sm:$0x3] %v3902_v51  ;;  %v4332_v58 = vpop.f32.mrf.mxu0 }
 0x3a0   :  { %v3890_v54 = vrot.slane %v3886_v41, 3  ;;  %v4333_v21 = vadd.f32 %v4332_v58, %v3997_v4 }
 0x3a2   :  { %v3905_v56 = vsel %vm2243_vm0, %v3886_v41, %v3890_v54  ;;  %v3906_v59 = vsel %vm2247_vm1, %v3886_v41, %v3890_v54  ;;  %v3909_v61 = vsel %vm2251_vm2, %v3886_v41, %v3890_v54  ;;  %v3912_v9 = vsel %vm2255_vm3, %v3886_v41, %v3890_v54 }
 0x3a3   :  { %v3908_v62 = vrot.slane %v3906_v59, 1  ;;  %v3911_v14 = vrot.slane %v3909_v61, 2  ;;  %v3914_v8 = vrot.slane %v3912_v9, 3  ;;  %3927 = vst [vmem:[#allocation17 + $0x2e] sm:$0x3] %v3905_v56 }
 0x3a5   :  { %3928 = vst [vmem:[#allocation17 + $0x38] sm:$0x3] %v3908_v62  ;;  %v4346_v18 = vpop.f32.mrf.mxu1 }
 0x3a6   :  { %3929 = vst [vmem:[#allocation17 + $0x42] sm:$0x3] %v3911_v14  ;;  %v4347_v29 = vadd.f32 %v4346_v18, %v4333_v21 }
 0x3a7   :  { %3930 = vst [vmem:[#allocation17 + $0x4c] sm:$0x3] %v3914_v8 }
 0x3ad   :  { %v4358_v1 = vpop.f32.mrf.mxu2 }
 0x3ae   :  { %v4359_v15 = vadd.f32 %v4358_v1, %v4345_v35 }
 0x3b3   :  { %v4372_v2 = vpop.f32.mrf.mxu3 }
 0x3b4   :  { %v4373_v20 = vadd.f32 %v4372_v2, %v4359_v15 }
 0x3b5   :  { %v4360_v52 = vpop.f32.mrf.mxu2 }
 0x3b6   :  { %v4361_v32 = vadd.f32 %v4360_v52, %v4347_v29 }
 0x3b7   :  { %v4386_v5 = vpop.f32.mrf.mxu0 }
 0x3b8   :  { %v4387_v13 = vadd.f32 %v4386_v5, %v3998_v37 }
 0x3bb   :  { %v4374_v10 = vpop.f32.mrf.mxu3 }
 0x3bc   :  { %v4375_v42 = vadd.f32 %v4374_v10, %v4361_v32 }
 0x3bd   :  { %v4400_v22 = vpop.f32.mrf.mxu1 }
 0x3be   :  { %v4401_v6 = vadd.f32 %v4400_v22, %v4387_v13 }
 0x3bf   :  { %v4388_v16 = vpop.f32.mrf.mxu0 }
 0x3c0   :  { %v4389_v26 = vadd.f32 %v4388_v16, %v3998_v37 }
 0x3c5   :  { %v4402_v34 = vpop.f32.mrf.mxu1 }
 0x3c6   :  { %v4403_v30 = vadd.f32 %v4402_v34, %v4389_v26 }
 0x3cd   :  { %v4414_v7 = vpop.f32.mrf.mxu2 }
 0x3ce   :  { %v4415_v44 = vadd.f32 %v4414_v7, %v4401_v6 }
 0x3d3   :  { %v4428_v17 = vpop.f32.mrf.mxu3 }
 0x3d4   :  { %v4429_v28 = vadd.f32 %v4428_v17, %v4415_v44 }
 0x3d5   :  { %v4416_v27 = vpop.f32.mrf.mxu2 }
 0x3d6   :  { %v4433_v23 = vpack.c.bf16 %v4429_v28, %v4373_v20  ;;  %v4417_v33 = vadd.f32 %v4416_v27, %v4403_v30 }
 0x3d8   :  { %v4437_v31 = vrot.slane %v4433_v23, 3 }
 0x3da   :  { %v4441_v36 = vsel %vm2243_vm0, %v4433_v23, %v4437_v31  ;;  %v4442_v38 = vsel %vm2247_vm1, %v4433_v23, %v4437_v31  ;;  %v4445_v47 = vsel %vm2251_vm2, %v4433_v23, %v4437_v31  ;;  %v4448_v53 = vsel %vm2255_vm3, %v4433_v23, %v4437_v31 }
 0x3db   :  { %v4444_v60 = vrot.slane %v4442_v38, 1  ;;  %v4447_v24 = vrot.slane %v4445_v47, 2  ;;  %v4450_v39 = vrot.slane %v4448_v53, 3  ;;  %4471 = vst [vmem:[#allocation17 + $0x8] sm:$0x3] %v4441_v36  ;;  %v4430_v40 = vpop.f32.mrf.mxu3 }
 0x3dc   :  { %v4431_v43 = vadd.f32 %v4430_v40, %v4417_v33 }
 0x3dd   :  { %4472 = vst [vmem:[#allocation17 + $0x12] sm:$0x3] %v4444_v60 }
 0x3de   :  { %4473 = vst [vmem:[#allocation17 + $0x1c] sm:$0x3] %v4447_v24  ;;  %v4434_v55 = vpack.c.bf16 %v4431_v43, %v4375_v42 }
 0x3df   :  { %4474 = vst [vmem:[#allocation17 + $0x26] sm:$0x3] %v4450_v39 }
 0x3e0   :  { %v4438_v57 = vrot.slane %v4434_v55, 3 }
 0x3e2   :  { %v4453_v25 = vsel %vm2243_vm0, %v4434_v55, %v4438_v57  ;;  %v4454_v45 = vsel %vm2247_vm1, %v4434_v55, %v4438_v57  ;;  %v4457_v46 = vsel %vm2251_vm2, %v4434_v55, %v4438_v57  ;;  %v4460_v19 = vsel %vm2255_vm3, %v4434_v55, %v4438_v57 }
 0x3e3   :  { %v4456_v48 = vrot.slane %v4454_v45, 1  ;;  %v4459_v51 = vrot.slane %v4457_v46, 2  ;;  %v4462_v49 = vrot.slane %v4460_v19, 3  ;;  %4475 = vst [vmem:[#allocation17 + $0x30] sm:$0x3] %v4453_v25 }
 0x3e5   :  { %4476 = vst [vmem:[#allocation17 + $0x3a] sm:$0x3] %v4456_v48 }
 0x3e6   :  { %4477 = vst [vmem:[#allocation17 + $0x44] sm:$0x3] %v4459_v51 }
 0x3e7   :  { %4478 = vst [vmem:[#allocation17 + $0x4e] sm:$0x3] %v4462_v49 }
 0x3e8   :  { %4482 = vsyncadd [#allocation4], 1120  ;;  %s4485_s13 = sshll.u32 %s7496_s9, 4  ;;  %s7196_s14 = smov [#allocation17]   ;;  %s4486_s13 = int_to_ptr.hbm [resolvable:$true] %s4485_s13 }
 0x3e9   :  { %s4483_s5 = sshll.u32 %s7196_s14, 4  ;;  %s7197_s15 = smov 160   ;;  %s4484_s5 = int_to_ptr.vmem [resolvable:$true] %s4483_s5 }
 0x3ea   :  { %s7198_s16 = smov 10  }
 0x3eb   :  { %4491 = dma.vmem_to_hbm [thread:$0]  %s4484_s5, 160, %s4486_s13, [#allocation4], %s7197_s15, %s7197_s15, %s7198_s16  }
 0x3ec   :  { %7175 = dma.done.wait [#allocation4], 1280  }
 0x3ed   :  { %7176 = vsyncadd [#allocation4], 4294966016 }
 0x3ee   :  { %4496 = vsyncpa [#allocation3], 1 }
 0x3ef   :  { %4497 = vsyncpa [#allocation6], 1 }
 0x3f0   :  { %4498 = vsyncpa [#allocation9], 1 }
 0x3f1   :  { %4499 = vsyncpa [#allocation12], 1 }
 0x3f2   :  { %4500 = vsyncpa [#allocation15], 1 }
 0x3f3   :  { %4501 = vsyncpa [#allocation4], 1 }

</bundles_post_ra>
